<compile_context>
chip_gen: v7x
topology: tpu7x:2x2x1
jax: 0.10.0
libtpu: 0.0.40
codegen_flags: <defaults>
</compile_context>

<pallas_src>
import functools

import jax
import jax.numpy as jnp
from jax import lax
from jax.experimental import pallas as pl
from jax.experimental.pallas import tpu as pltpu

IMAGE_SIZE = (1, 32, 32)
INPUT_DIM = 1 * 32 * 32   # 1024
HIDDEN1 = 512
HIDDEN2 = 256
BN_EPS = 1e-5
LEAKY_SLOPE = 0.2


def _leaky_relu(x):
    return jnp.where(x > 0, x, LEAKY_SLOPE * x)


# ----------------------------------------------------------------------------
# Stage 1: per batch-tile, compute pre-BN activations of layer1 and accumulate
# the full-batch sum / sum-of-squares needed for BatchNorm1d batch statistics.
# ----------------------------------------------------------------------------
def stage1_kernel(x_ref, w1_ref, b1_ref, w2_ref, b2_ref, h2_ref, stats_ref):
    @pl.when(pl.program_id(0) == 0)
    def _():
        stats_ref[...] = jnp.zeros_like(stats_ref)

    x = x_ref[...]                                                     # (TB, 1024) bf16

    # input_layer: Linear(1024 -> 512) + LeakyReLU(0.2)   (bf16 MXU, f32 accumulate)
    h1 = jnp.dot(x, w1_ref[...], preferred_element_type=jnp.float32) + b1_ref[...]
    h1 = _leaky_relu(h1)                                               # (TB, 512) f32

    # layer1 Linear(512 -> 256), pre-BatchNorm
    h2 = jnp.dot(h1.astype(jnp.bfloat16), w2_ref[...],
                 preferred_element_type=jnp.float32) + b2_ref[...]     # (TB, 256) f32
    h2_ref[...] = h2

    # One-pass BN stats: accumulate sum and sum-of-squares over the batch tiles.
    s = jnp.sum(h2, axis=0, keepdims=True)                             # (1, 256)
    ss = jnp.sum(h2 * h2, axis=0, keepdims=True)                       # (1, 256)
    stats_ref[...] += jnp.concatenate([s, ss], axis=0)                 # (2, 256)


# ----------------------------------------------------------------------------
# Stage 2: normalize with the full-batch statistics, LeakyReLU, final Linear,
# Sigmoid. Independent per batch tile -> "parallel" (megacore on v7x).
# ----------------------------------------------------------------------------
def stage2_kernel(h2_ref, stats_ref, gamma_ref, beta_ref, w3_ref, b3_ref, o_ref,
                  *, inv_n):
    mean = stats_ref[0:1, :] * inv_n                                   # (1, 256)
    var = stats_ref[1:2, :] * inv_n - mean * mean                      # biased (1/N) var
    inv_std = lax.rsqrt(var + BN_EPS)

    h = (h2_ref[...] - mean) * inv_std * gamma_ref[...] + beta_ref[...]
    h = _leaky_relu(h)                                                 # (TB, 256) f32

    logits = jnp.dot(h.astype(jnp.bfloat16), w3_ref[...],
                     preferred_element_type=jnp.float32) + b3_ref[...] # (TB, nc) f32
    # Sigmoid: exp on EUP + approximate reciprocal on EUP (VPU stays free).
    o_ref[...] = pl.reciprocal(1.0 + jnp.exp(-logits), approx=True)


def _pick_batch_tile(batch):
    for tb in (512, 256, 128):
        if batch >= tb and batch % tb == 0:
            return tb
    return batch   # small / odd batches: single tile


@jax.jit
def discriminator_forward(x, w1, b1, w2, b2, gamma, beta, w3, b3):
    batch = x.shape[0]
    nc = w3.shape[1]
    tb = _pick_batch_tile(batch)
    num_tiles = batch // tb

    # bf16 matmul operands (weights stored (in, out) = W.T).
    xb = x.astype(jnp.bfloat16)
    w1b = w1.astype(jnp.bfloat16)
    w2b = w2.astype(jnp.bfloat16)
    w3b = w3.astype(jnp.bfloat16)

    const = lambda shape: pl.BlockSpec(shape, lambda i: (0,) * len(shape))
    tiled = lambda shape: pl.BlockSpec(shape, lambda i: (i,) + (0,) * (len(shape) - 1))

    # ---- Stage 1: h2_pre (B, 256) + BN sum/sumsq (2, 256) -------------------
    h2_pre, stats = pl.pallas_call(
        stage1_kernel,
        out_shape=(jax.ShapeDtypeStruct((batch, HIDDEN2), jnp.float32),
                   jax.ShapeDtypeStruct((2, HIDDEN2), jnp.float32)),
        grid=(num_tiles,),
        in_specs=[
            tiled((tb, INPUT_DIM)),                       # x tile
            const((INPUT_DIM, HIDDEN1)), const((1, HIDDEN1)),
            const((HIDDEN1, HIDDEN2)), const((1, HIDDEN2)),
        ],
        out_specs=(tiled((tb, HIDDEN2)),                  # h2_pre tile
                   const((2, HIDDEN2))),                  # resident accumulator
        compiler_params=pltpu.CompilerParams(
            # stats output is revisited across batch tiles -> must be "arbitrary"
            dimension_semantics=("arbitrary",),
            vmem_limit_bytes=32 << 20),                   # footprint ~4 MiB @ TB=128
    )(xb, w1b, b1, w2b, b2)

    # ---- Stage 2: BN finalize + LeakyReLU + Linear + Sigmoid ----------------
    out = pl.pallas_call(
        functools.partial(stage2_kernel, inv_n=1.0 / batch),
        out_shape=jax.ShapeDtypeStruct((batch, nc), jnp.float32),
        grid=(num_tiles,),
        in_specs=[
            tiled((tb, HIDDEN2)),
            const((2, HIDDEN2)),
            const((1, HIDDEN2)), const((1, HIDDEN2)),
            const((HIDDEN2, nc)), const((1, nc)),
        ],
        out_specs=tiled((tb, nc)),
        compiler_params=pltpu.CompilerParams(
            dimension_semantics=("parallel",),            # batch tiles independent
            vmem_limit_bytes=16 << 20),
    )(h2_pre, stats, gamma, beta, w3b, b3)
    return out


# ----------------------------------------------------------------------------
# Parameters + references
# ----------------------------------------------------------------------------
def init_params(key, nc=1):
    """Deterministic synthetic parameters (shapes match the PyTorch module)."""
    k1, k2, k3, k4, k5, k6 = jax.random.split(key, 6)

    def linear_init(kw, kb, fan_in, fan_out):
        bound = 1.0 / jnp.sqrt(fan_in)
        w = jax.random.uniform(kw, (fan_in, fan_out), jnp.float32, -bound, bound)
        b = jax.random.uniform(kb, (1, fan_out), jnp.float32, -bound, bound)
        return w, b

    w1, b1 = linear_init(k1, k2, INPUT_DIM, HIDDEN1)
    w2, b2 = linear_init(k3, k4, HIDDEN1, HIDDEN2)
    w3, b3 = linear_init(k5, k6, HIDDEN2, nc)
    gamma = jnp.ones((1, HIDDEN2), jnp.float32)   # BatchNorm1d default weight
    beta = jnp.zeros((1, HIDDEN2), jnp.float32)   # BatchNorm1d default bias
    return w1, b1, w2, b2, gamma, beta, w3, b3


def reference_forward_f32(x, w1, b1, w2, b2, gamma, beta, w3, b3):
    h1 = _leaky_relu(x @ w1 + b1)
    h2 = h1 @ w2 + b2
    mean = jnp.mean(h2, axis=0, keepdims=True)
    var = jnp.mean((h2 - mean) ** 2, axis=0, keepdims=True)
    h2 = (h2 - mean) / jnp.sqrt(var + BN_EPS) * gamma + beta
    h2 = _leaky_relu(h2)
    return jax.nn.sigmoid(h2 @ w3 + b3)


def reference_forward_bf16(x, w1, b1, w2, b2, gamma, beta, w3, b3):
    """Mirrors the kernel's mixed precision (bf16 matmul operands, f32 accumulate)."""
    xb, w1b, w2b, w3b = (a.astype(jnp.bfloat16) for a in (x, w1, w2, w3))
    h1 = _leaky_relu(jnp.dot(xb, w1b, preferred_element_type=jnp.float32) + b1)
    h2 = jnp.dot(h1.astype(jnp.bfloat16), w2b,
                 preferred_element_type=jnp.float32) + b2
    mean = jnp.mean(h2, axis=0, keepdims=True)
    var = jnp.mean(h2 * h2, axis=0, keepdims=True) - mean * mean
    h2 = (h2 - mean) * lax.rsqrt(var + BN_EPS) * gamma + beta
    h2 = _leaky_relu(h2)
    logits = jnp.dot(h2.astype(jnp.bfloat16), w3b,
                     preferred_element_type=jnp.float32) + b3
    return jax.nn.sigmoid(logits)


if __name__ == "__main__":
    key = jax.random.PRNGKey(0)
    k_params, k_x = jax.random.split(key)

    batch, nc = 256, 1               # batch tiled as 2 x 128 grid steps
    params = init_params(k_params, nc=nc)
    x = jax.random.normal(k_x, (batch, INPUT_DIM), jnp.float32)   # flattened 1x32x32

    out = discriminator_forward(x, *params)
    out = jax.block_until_ready(out)
    assert out.shape == (batch, nc)

    ref_bf16 = reference_forward_bf16(x, *params)
    ref_f32 = reference_forward_f32(x, *params)
    assert jnp.allclose(out, ref_bf16, atol=1e-2, rtol=1e-2), "mismatch vs bf16 reference"
    assert jnp.allclose(out, ref_f32, atol=5e-2, rtol=5e-2), "mismatch vs f32 reference"

    print("KERNEL_OK")
</pallas_src>

<mosaic_0001>
module attributes {stable_mosaic.version = 11 : i64} {
  func.func @stage1_kernel(%arg0: i32, %arg1: memref<256x1024xbf16, #tpu.memory_space<vmem>>, %arg2: memref<1024x512xbf16, #tpu.memory_space<vmem>>, %arg3: memref<1x512xf32, #tpu.memory_space<vmem>>, %arg4: memref<512x256xbf16, #tpu.memory_space<vmem>>, %arg5: memref<1x256xf32, #tpu.memory_space<vmem>>, %arg6: memref<256x256xf32, #tpu.memory_space<vmem>>, %arg7: memref<2x256xf32, #tpu.memory_space<vmem>>) attributes {dimension_semantics = [#tpu.dimension_semantics<arbitrary>], iteration_bounds = array<i64: 1>, scalar_prefetch = 0 : i64, scratch_operands = 0 : i64, tpu.core_type = #tpu.core_type<tc>, window_params = [{transform_indices = @transform_0, window_bounds = array<i64: 256, 1024>}, {pipeline_mode = #tpu.pipeline_mode<synchronous>, transform_indices = @transform_1, window_bounds = array<i64: 1024, 512>}, {pipeline_mode = #tpu.pipeline_mode<synchronous>, transform_indices = @transform_2, window_bounds = array<i64: 1, 512>}, {pipeline_mode = #tpu.pipeline_mode<synchronous>, transform_indices = @transform_3, window_bounds = array<i64: 512, 256>}, {pipeline_mode = #tpu.pipeline_mode<synchronous>, transform_indices = @transform_4, window_bounds = array<i64: 1, 256>}, {transform_indices = @transform_5, window_bounds = array<i64: 256, 256>}, {pipeline_mode = #tpu.pipeline_mode<synchronous>, transform_indices = @transform_6, window_bounds = array<i64: 2, 256>}]} {
    %c0_i32 = arith.constant 0 : i32
    %0 = arith.cmpi eq, %arg0, %c0_i32 : i32
    %1 = arith.extui %0 : i1 to i32
    %c0_i32_0 = arith.constant 0 : i32
    %2 = arith.cmpi ne, %1, %c0_i32_0 : i32
    scf.if %2 {
      %cst_21 = arith.constant 0.000000e+00 : f32
      %30 = vector.broadcast %cst_21 : f32 to vector<2x256xf32>
      %c0_22 = arith.constant 0 : index
      %c0_23 = arith.constant 0 : index
      %31 = vector.load %arg7[%c0_22, %c0_23] : memref<2x256xf32, #tpu.memory_space<vmem>>, vector<2x256xf32>
      tpu.vector_store %arg7[%c0_22, %c0_23], %30 {strides = array<i32>} : memref<2x256xf32, #tpu.memory_space<vmem>>, vector<2x256xf32>,
    } else {
    }
    %c0 = arith.constant 0 : index
    %c0_1 = arith.constant 0 : index
    %3 = vector.load %arg1[%c0, %c0_1] : memref<256x1024xbf16, #tpu.memory_space<vmem>>, vector<256x1024xbf16>
    %c0_2 = arith.constant 0 : index
    %c0_3 = arith.constant 0 : index
    %4 = vector.load %arg2[%c0_2, %c0_3] : memref<1024x512xbf16, #tpu.memory_space<vmem>>, vector<1024x512xbf16>
    %cst = arith.constant dense<0.000000e+00> : vector<256x512xf32>
    %5 = tpu.matmul %3, %4, %cst {dimension_numbers = #tpu.dot_dimension_numbers<[1], [0], [0], [1], [0, 0, 1, 1], [], []>} : vector<256x1024xbf16>, vector<1024x512xbf16>, vector<256x512xf32> -> vector<256x512xf32>
    %c0_4 = arith.constant 0 : index
    %c0_5 = arith.constant 0 : index
    %6 = vector.load %arg3[%c0_4, %c0_5] : memref<1x512xf32, #tpu.memory_space<vmem>>, vector<1x512xf32>
    %7 = vector.broadcast %6 : vector<1x512xf32> to vector<256x512xf32>
    %8 = arith.addf %5, %7 : vector<256x512xf32>
    %cst_6 = arith.constant 0.000000e+00 : f32
    %9 = vector.broadcast %cst_6 : f32 to vector<256x512xf32>
    %10 = arith.cmpf ogt, %8, %9 : vector<256x512xf32>
    %cst_7 = arith.constant 2.000000e-01 : f32
    %11 = vector.broadcast %cst_7 : f32 to vector<256x512xf32>
    %12 = arith.mulf %11, %8 : vector<256x512xf32>
    %13 = arith.select %10, %8, %12 : vector<256x512xi1>, vector<256x512xf32>
    %14 = arith.truncf %13 : vector<256x512xf32> to vector<256x512xbf16>
    %c0_8 = arith.constant 0 : index
    %c0_9 = arith.constant 0 : index
    %15 = vector.load %arg4[%c0_8, %c0_9] : memref<512x256xbf16, #tpu.memory_space<vmem>>, vector<512x256xbf16>
    %cst_10 = arith.constant dense<0.000000e+00> : vector<256x256xf32>
    %16 = tpu.matmul %14, %15, %cst_10 {dimension_numbers = #tpu.dot_dimension_numbers<[1], [0], [0], [1], [0, 0, 1, 1], [], []>} : vector<256x512xbf16>, vector<512x256xbf16>, vector<256x256xf32> -> vector<256x256xf32>
    %c0_11 = arith.constant 0 : index
    %c0_12 = arith.constant 0 : index
    %17 = vector.load %arg5[%c0_11, %c0_12] : memref<1x256xf32, #tpu.memory_space<vmem>>, vector<1x256xf32>
    %18 = vector.broadcast %17 : vector<1x256xf32> to vector<256x256xf32>
    %19 = arith.addf %16, %18 : vector<256x256xf32>
    %c0_13 = arith.constant 0 : index
    %c0_14 = arith.constant 0 : index
    %20 = vector.load %arg6[%c0_13, %c0_14] : memref<256x256xf32, #tpu.memory_space<vmem>>, vector<256x256xf32>
    tpu.vector_store %arg6[%c0_13, %c0_14], %19 {strides = array<i32>} : memref<256x256xf32, #tpu.memory_space<vmem>>, vector<256x256xf32>,
    %cst_15 = arith.constant dense<0.000000e+00> : vector<256xf32>
    %21 = vector.multi_reduction <add>, %19, %cst_15 [0] : vector<256x256xf32> to vector<256xf32>
    %22 = vector.shape_cast %21 : vector<256xf32> to vector<1x256xf32>
    %23 = arith.mulf %19, %19 : vector<256x256xf32>
    %cst_16 = arith.constant dense<0.000000e+00> : vector<256xf32>
    %24 = vector.multi_reduction <add>, %23, %cst_16 [0] : vector<256x256xf32> to vector<256xf32>
    %25 = vector.shape_cast %24 : vector<256xf32> to vector<1x256xf32>
    %c0_17 = arith.constant 0 : index
    %c0_18 = arith.constant 0 : index
    %26 = vector.load %arg7[%c0_17, %c0_18] : memref<2x256xf32, #tpu.memory_space<vmem>>, vector<2x256xf32>
    %27 = tpu.concatenate %22, %25 in 0 : vector<1x256xf32>, vector<1x256xf32> -> vector<2x256xf32>
    %28 = arith.addf %26, %27 : vector<2x256xf32>
    %c0_19 = arith.constant 0 : index
    %c0_20 = arith.constant 0 : index
    %29 = vector.load %arg7[%c0_19, %c0_20] : memref<2x256xf32, #tpu.memory_space<vmem>>, vector<2x256xf32>
    tpu.vector_store %arg7[%c0_19, %c0_20], %28 {strides = array<i32>} : memref<2x256xf32, #tpu.memory_space<vmem>>, vector<2x256xf32>,
    return
  }
  func.func @transform_0(%arg0: i32) -> (i32, i32) {
    %c0_i32 = arith.constant 0 : i32
    %c0_i32_0 = arith.constant 0 : i32
    return %arg0, %c0_i32 : i32, i32
  }
  func.func @transform_1(%arg0: i32) -> (i32, i32) {
    %c0_i32 = arith.constant 0 : i32
    %c0_i32_0 = arith.constant 0 : i32
    %c0_i32_1 = arith.constant 0 : i32
    return %c0_i32, %c0_i32_0 : i32, i32
  }
  func.func @transform_2(%arg0: i32) -> (i32, i32) {
    %c0_i32 = arith.constant 0 : i32
    %c0_i32_0 = arith.constant 0 : i32
    %c0_i32_1 = arith.constant 0 : i32
    return %c0_i32, %c0_i32_0 : i32, i32
  }
  func.func @transform_3(%arg0: i32) -> (i32, i32) {
    %c0_i32 = arith.constant 0 : i32
    %c0_i32_0 = arith.constant 0 : i32
    %c0_i32_1 = arith.constant 0 : i32
    return %c0_i32, %c0_i32_0 : i32, i32
  }
  func.func @transform_4(%arg0: i32) -> (i32, i32) {
    %c0_i32 = arith.constant 0 : i32
    %c0_i32_0 = arith.constant 0 : i32
    %c0_i32_1 = arith.constant 0 : i32
    return %c0_i32, %c0_i32_0 : i32, i32
  }
  func.func @transform_5(%arg0: i32) -> (i32, i32) {
    %c0_i32 = arith.constant 0 : i32
    %c0_i32_0 = arith.constant 0 : i32
    return %arg0, %c0_i32 : i32, i32
  }
  func.func @transform_6(%arg0: i32) -> (i32, i32) {
    %c0_i32 = arith.constant 0 : i32
    %c0_i32_0 = arith.constant 0 : i32
    %c0_i32_1 = arith.constant 0 : i32
    return %c0_i32, %c0_i32_0 : i32, i32
  }
}

module attributes {stable_mosaic.version = 11 : i64} {
  func.func @stage2_kernel(%arg0: i32, %arg1: memref<256x256xf32, #tpu.memory_space<vmem>>, %arg2: memref<2x256xf32, #tpu.memory_space<vmem>>, %arg3: memref<1x256xf32, #tpu.memory_space<vmem>>, %arg4: memref<1x256xf32, #tpu.memory_space<vmem>>, %arg5: memref<256x1xbf16, #tpu.memory_space<vmem>>, %arg6: memref<1x1xf32, #tpu.memory_space<vmem>>, %arg7: memref<256x1xf32, #tpu.memory_space<vmem>>) attributes {dimension_semantics = [#tpu.dimension_semantics<parallel>], iteration_bounds = array<i64: 1>, scalar_prefetch = 0 : i64, scratch_operands = 0 : i64, tpu.core_type = #tpu.core_type<tc>, window_params = [{transform_indices = @transform_0, window_bounds = array<i64: 256, 256>}, {pipeline_mode = #tpu.pipeline_mode<synchronous>, transform_indices = @transform_1, window_bounds = array<i64: 2, 256>}, {pipeline_mode = #tpu.pipeline_mode<synchronous>, transform_indices = @transform_2, window_bounds = array<i64: 1, 256>}, {pipeline_mode = #tpu.pipeline_mode<synchronous>, transform_indices = @transform_3, window_bounds = array<i64: 1, 256>}, {pipeline_mode = #tpu.pipeline_mode<synchronous>, transform_indices = @transform_4, window_bounds = array<i64: 256, 1>}, {pipeline_mode = #tpu.pipeline_mode<synchronous>, transform_indices = @transform_5, window_bounds = array<i64: 1, 1>}, {transform_indices = @transform_6, window_bounds = array<i64: 256, 1>}]} {
    %c0 = arith.constant 0 : index
    %c0_0 = arith.constant 0 : index
    %0 = vector.load %arg2[%c0, %c0_0] : memref<2x256xf32, #tpu.memory_space<vmem>>, vector<1x256xf32>
    %cst = arith.constant 3.906250e-03 : f32
    %1 = vector.broadcast %cst : f32 to vector<1x256xf32>
    %2 = arith.mulf %0, %1 : vector<1x256xf32>
    %c1 = arith.constant 1 : index
    %c0_1 = arith.constant 0 : index
    %3 = vector.load %arg2[%c1, %c0_1] : memref<2x256xf32, #tpu.memory_space<vmem>>, vector<1x256xf32>
    %cst_2 = arith.constant 3.906250e-03 : f32
    %4 = vector.broadcast %cst_2 : f32 to vector<1x256xf32>
    %5 = arith.mulf %3, %4 : vector<1x256xf32>
    %6 = arith.mulf %2, %2 : vector<1x256xf32>
    %7 = arith.subf %5, %6 : vector<1x256xf32>
    %cst_3 = arith.constant 9.99999974E-6 : f32
    %8 = vector.broadcast %cst_3 : f32 to vector<1x256xf32>
    %9 = arith.addf %7, %8 : vector<1x256xf32>
    %10 = math.rsqrt %9 : vector<1x256xf32>
    %c0_4 = arith.constant 0 : index
    %c0_5 = arith.constant 0 : index
    %11 = vector.load %arg1[%c0_4, %c0_5] : memref<256x256xf32, #tpu.memory_space<vmem>>, vector<256x256xf32>
    %12 = vector.broadcast %2 : vector<1x256xf32> to vector<256x256xf32>
    %13 = arith.subf %11, %12 : vector<256x256xf32>
    %14 = vector.broadcast %10 : vector<1x256xf32> to vector<256x256xf32>
    %15 = arith.mulf %13, %14 : vector<256x256xf32>
    %c0_6 = arith.constant 0 : index
    %c0_7 = arith.constant 0 : index
    %16 = vector.load %arg3[%c0_6, %c0_7] : memref<1x256xf32, #tpu.memory_space<vmem>>, vector<1x256xf32>
    %17 = vector.broadcast %16 : vector<1x256xf32> to vector<256x256xf32>
    %18 = arith.mulf %15, %17 : vector<256x256xf32>
    %c0_8 = arith.constant 0 : index
    %c0_9 = arith.constant 0 : index
    %19 = vector.load %arg4[%c0_8, %c0_9] : memref<1x256xf32, #tpu.memory_space<vmem>>, vector<1x256xf32>
    %20 = vector.broadcast %19 : vector<1x256xf32> to vector<256x256xf32>
    %21 = arith.addf %18, %20 : vector<256x256xf32>
    %cst_10 = arith.constant 0.000000e+00 : f32
    %22 = vector.broadcast %cst_10 : f32 to vector<256x256xf32>
    %23 = arith.cmpf ogt, %21, %22 : vector<256x256xf32>
    %cst_11 = arith.constant 2.000000e-01 : f32
    %24 = vector.broadcast %cst_11 : f32 to vector<256x256xf32>
    %25 = arith.mulf %24, %21 : vector<256x256xf32>
    %26 = arith.select %23, %21, %25 : vector<256x256xi1>, vector<256x256xf32>
    %27 = arith.truncf %26 : vector<256x256xf32> to vector<256x256xbf16>
    %c0_12 = arith.constant 0 : index
    %c0_13 = arith.constant 0 : index
    %28 = vector.load %arg5[%c0_12, %c0_13] : memref<256x1xbf16, #tpu.memory_space<vmem>>, vector<256x1xbf16>
    %cst_14 = arith.constant dense<0.000000e+00> : vector<256x1xf32>
    %29 = tpu.matmul %27, %28, %cst_14 {dimension_numbers = #tpu.dot_dimension_numbers<[1], [0], [0], [1], [0, 0, 1, 1], [], []>} : vector<256x256xbf16>, vector<256x1xbf16>, vector<256x1xf32> -> vector<256x1xf32>
    %c0_15 = arith.constant 0 : index
    %c0_16 = arith.constant 0 : index
    %30 = vector.load %arg6[%c0_15, %c0_16] : memref<1x1xf32, #tpu.memory_space<vmem>>, vector<1x1xf32>
    %31 = vector.broadcast %30 : vector<1x1xf32> to vector<256x1xf32>
    %32 = arith.addf %29, %31 : vector<256x1xf32>
    %cst_17 = arith.constant 0.000000e+00 : f32
    %33 = vector.broadcast %cst_17 : f32 to vector<256x1xf32>
    %34 = arith.subf %33, %32 : vector<256x1xf32>
    %35 = math.exp %34 : vector<256x1xf32>
    %cst_18 = arith.constant 1.000000e+00 : f32
    %36 = vector.broadcast %cst_18 : f32 to vector<256x1xf32>
    %37 = arith.addf %36, %35 : vector<256x1xf32>
    %38 = tpu.reciprocal %37 {approx = true} : vector<256x1xf32> -> vector<256x1xf32>
    %c0_19 = arith.constant 0 : index
    %c0_20 = arith.constant 0 : index
    %39 = vector.load %arg7[%c0_19, %c0_20] : memref<256x1xf32, #tpu.memory_space<vmem>>, vector<256x1xf32>
    tpu.vector_store %arg7[%c0_19, %c0_20], %38 {strides = array<i32>} : memref<256x1xf32, #tpu.memory_space<vmem>>, vector<256x1xf32>,
    return
  }
  func.func @transform_0(%arg0: i32) -> (i32, i32) {
    %c0_i32 = arith.constant 0 : i32
    %c0_i32_0 = arith.constant 0 : i32
    return %arg0, %c0_i32 : i32, i32
  }
  func.func @transform_1(%arg0: i32) -> (i32, i32) {
    %c0_i32 = arith.constant 0 : i32
    %c0_i32_0 = arith.constant 0 : i32
    %c0_i32_1 = arith.constant 0 : i32
    return %c0_i32, %c0_i32_0 : i32, i32
  }
  func.func @transform_2(%arg0: i32) -> (i32, i32) {
    %c0_i32 = arith.constant 0 : i32
    %c0_i32_0 = arith.constant 0 : i32
    %c0_i32_1 = arith.constant 0 : i32
    return %c0_i32, %c0_i32_0 : i32, i32
  }
  func.func @transform_3(%arg0: i32) -> (i32, i32) {
    %c0_i32 = arith.constant 0 : i32
    %c0_i32_0 = arith.constant 0 : i32
    %c0_i32_1 = arith.constant 0 : i32
    return %c0_i32, %c0_i32_0 : i32, i32
  }
  func.func @transform_4(%arg0: i32) -> (i32, i32) {
    %c0_i32 = arith.constant 0 : i32
    %c0_i32_0 = arith.constant 0 : i32
    %c0_i32_1 = arith.constant 0 : i32
    return %c0_i32, %c0_i32_0 : i32, i32
  }
  func.func @transform_5(%arg0: i32) -> (i32, i32) {
    %c0_i32 = arith.constant 0 : i32
    %c0_i32_0 = arith.constant 0 : i32
    %c0_i32_1 = arith.constant 0 : i32
    return %c0_i32, %c0_i32_0 : i32, i32
  }
  func.func @transform_6(%arg0: i32) -> (i32, i32) {
    %c0_i32 = arith.constant 0 : i32
    %c0_i32_0 = arith.constant 0 : i32
    return %arg0, %c0_i32 : i32, i32
  }
}

</mosaic_0001>

<bundles_post_ra>
// kernel: discriminator_forward.3
= control target key start
LH: loop header
LB: loop body
LE: loop exit
PB: predicated region body
PF: predicated region fallthrough
CT: control target
= control target key end

     0   :  { %v100_v5 = vlaneseq  ;;  %s2494_s4 = inlined_call_operand.vmem [shape: bf16[256,1], index: 4, kind: input, shape index: {}]   ;;  %s2495_s1 = inlined_call_operand.vmem [shape: f32[2,256], index: 1, kind: input, shape index: {}]   ;;  %s2496_s0 = inlined_call_operand.vmem [shape: f32[256,256], index: 0, kind: input, shape index: {}]   ;;  %s2497_s2 = inlined_call_operand.vmem [shape: f32[1,256], index: 2, kind: input, shape index: {}]   ;;  %s2498_s3 = inlined_call_operand.vmem [shape: f32[1,256], index: 3, kind: input, shape index: {}]   ;;  %s2499_s5 = inlined_call_operand.<no memory space> [shape: f32[1,1], index: 5, kind: input, shape index: {}]   ;;  %s2500_s6 = inlined_call_operand.vmem [shape: f32[256,1], index: 6, kind: output, shape index: {}]  }
   0x1   :  { %v1264_v0 = vld [vmem:[%s2494_s4 + $0x40] sm:$0xff]   ;;  %v1266_v2 = vld [vmem:[%s2494_s4 + $0x48] sm:$0xff]   ;;  %v1268_v4 = vld [vmem:[%s2494_s4 + $0x50] sm:$0xff]  }
   0x2   :  { %v1265_v1 = vld [vmem:[%s2494_s4] sm:$0xff]   ;;  %1136 = vmatprep.subr.bf16.mxu0 %v1264_v0  ;;  %1248 = vmatprep.subr.bf16.mxu1 %v1264_v0  ;;  %v1267_v3 = vld [vmem:[%s2494_s4 + $0x8] sm:$0xff]   ;;  %v1269_v6 = vld [vmem:[%s2494_s4 + $0x10] sm:$0xff]   ;;  %v101_v8 = vshrl.u32 %v100_v5, 7 }
   0x3   :  { %1137 = vmatpush3.bf16.msra.mxu0 %v1265_v1  ;;  %1256 = vmatpush3.bf16.msra.mxu1 %v1265_v1  ;;  %v1270_v7 = vld [vmem:[%s2494_s4 + $0x58] sm:$0xff]   ;;  %v1272_v10 = vld [vmem:[%s2494_s4 + $0x60] sm:$0xff]   ;;  %v1274_v13 = vld [vmem:[%s2494_s4 + $0x68] sm:$0xff]  }
   0x4   :  { %1138 = vmatprep.subr.bf16.mxu0 %v1266_v2  ;;  %1249 = vmatprep.subr.bf16.mxu1 %v1266_v2  ;;  %v1271_v9 = vld [vmem:[%s2494_s4 + $0x18] sm:$0xff]   ;;  %v1273_v11 = vld [vmem:[%s2494_s4 + $0x20] sm:$0xff]   ;;  %v1475_v12 = vsub.s32 0, %v101_v8  ;;  %v1480_v14 = vsub.s32 1, %v101_v8  ;;  %v1275_v17 = vld [vmem:[%s2494_s4 + $0x28] sm:$0xff]  }
   0x5   :  { %v26_v15 = vld [vmem:[%s2495_s1] ss:$2 sm:$0x3]  ;;  %v1118_v16 = vld [vmem:[%s2495_s1 + $0x1] ss:$2 sm:$0x3] }
   0x6   :  { %v27_v18 = vmul.f32 0.00390625, %v26_v15  ;;  %v30_v19 = vmul.f32 0.00390625, %v1118_v16  ;;  %v1494_v20 = vld [vmem:[%s2496_s0 + $0x8] sm:$0xff]  ;;  %v1499_v21 = vld [vmem:[%s2496_s0 + $0x18] sm:$0xff]  ;;  %v249_v22 = vld [vmem:[%s2497_s2] sm:$0x3] }
   0x7   :  { %1139 = vmatpush3.bf16.msra.mxu0 %v1267_v3  ;;  %1257 = vmatpush3.bf16.msra.mxu1 %v1267_v3  ;;  %v1276_v23 = vld [vmem:[%s2494_s4 + $0x70] sm:$0xff]   ;;  %v325_v24 = vld [vmem:[%s2498_s3] sm:$0x3]  ;;  %v1513_v25 = vld [vmem:[%s2496_s0 + $0x108] sm:$0xff]  ;;  %v1524_v29 = vrot.slane %v249_v22, %v1475_v12  ;;  %v1542_v33 = vrot.slane %v249_v22, %v1480_v14 }
   0x8   :  { %1140 = vmatprep.subr.bf16.mxu0 %v1268_v4  ;;  %1250 = vmatprep.subr.bf16.mxu1 %v1268_v4  ;;  %v1518_v26 = vld [vmem:[%s2496_s0 + $0x118] sm:$0xff]  ;;  %v31_v27 = vmul.f32 %v27_v18, %v27_v18  ;;  %v1521_v28 = vrot.slane %v27_v18, %v1480_v14  ;;  %v1529_v30 = vld [vmem:[%s2496_s0] sm:$0xff]  ;;  %v1534_v31 = vld [vmem:[%s2496_s0 + $0x10] sm:$0xff]  ;;  %v1545_v34 = vrot.slane %v325_v24, %v1475_v12 }
   0x9   :  { %v1539_v32 = vld [vmem:[%s2496_s0 + $0x100] sm:$0xff]  ;;  %v1548_v35 = vrot.slane %v27_v18, %v1475_v12  ;;  %v1553_v36 = vld [vmem:[%s2496_s0 + $0x110] sm:$0xff]  ;;  %v1558_v37 = vld [vmem:[%s2496_s0 + $0x28] sm:$0xff]  ;;  %v1573_v43 = vrot.slane %v325_v24, %v1480_v14 }
   0xa   :  { %v1563_v38 = vld [vmem:[%s2496_s0 + $0x38] sm:$0xff]  ;;  %v1277_v39 = vld [vmem:[%s2494_s4 + $0x30] sm:$0xff]   ;;  %v32_v40 = vsub.f32 %v30_v19, %v31_v27  ;;  %v1578_v44 = vld [vmem:[%s2496_s0 + $0x128] sm:$0xff] }
   0xb   :  { %1141 = vmatpush3.bf16.msra.mxu0 %v1269_v6  ;;  %1258 = vmatpush3.bf16.msra.mxu1 %v1269_v6  ;;  %v1583_v45 = vld [vmem:[%s2496_s0 + $0x138] sm:$0xff]  ;;  %v1588_v46 = vld [vmem:[%s2496_s0 + $0x20] sm:$0xff]  ;;  %v1604_v52 = vld [vmem:[%s2496_s0 + $0x30] sm:$0xff] }
   0xc   :  { %1142 = vmatprep.subr.bf16.mxu0 %v1270_v7  ;;  %1251 = vmatprep.subr.bf16.mxu1 %v1270_v7  ;;  %v1278_v47 = vld [vmem:[%s2494_s4 + $0x78] sm:$0xff]   ;;  %v1609_v53 = vld [vmem:[%s2496_s0 + $0x120] sm:$0xff]  ;;  %v1614_v54 = vld [vmem:[%s2496_s0 + $0x130] sm:$0xff]  ;;  %v33_v55 = vadd.f32 1e-05, %v32_v40 }
   0xd   :  { %v1625_v59 = vld [vmem:[%s2496_s0 + $0x48] sm:$0xff]  ;;  %v1630_v60 = vld [vmem:[%s2496_s0 + $0x58] sm:$0xff]  ;;  %v1651_v2 = vld [vmem:[%s2496_s0 + $0x40] sm:$0xff] }
   0xe   :  { %v1635_v61 = vld [vmem:[%s2496_s0 + $0x148] sm:$0xff]  ;;  %v1646_v1 = vld [vmem:[%s2496_s0 + $0x158] sm:$0xff]  ;;  %v1656_v3 = vld [vmem:[%s2496_s0 + $0x50] sm:$0xff]  ;;  %1280 = vrsqrt.f32 %v33_v55 }
   0xf   :  { %1143 = vmatpush3.bf16.msra.mxu0 %v1271_v9  ;;  %1259 = vmatpush3.bf16.msra.mxu1 %v1271_v9  ;;  %v1279_v4 = vld [vmem:[%s2494_s4 + $0x38] sm:$0xff]   ;;  %v1670_v8 = vld [vmem:[%s2496_s0 + $0x140] sm:$0xff]  ;;  %v1675_v9 = vld [vmem:[%s2496_s0 + $0x150] sm:$0xff] }
  0x10   :  { %1144 = vmatprep.subr.bf16.mxu0 %v1272_v10  ;;  %1252 = vmatprep.subr.bf16.mxu1 %v1272_v10  ;;  %v1680_v10 = vld [vmem:[%s2496_s0 + $0x68] sm:$0xff]  ;;  %v1703_v19 = vld [vmem:[%s2496_s0 + $0x178] sm:$0xff]  ;;  %v1714_v27 = vld [vmem:[%s2496_s0 + $0x60] sm:$0xff] }
  0x11   :  { %v1698_v18 = vld [vmem:[%s2496_s0 + $0x168] sm:$0xff]  ;;  %v1719_v40 = vld [vmem:[%s2496_s0 + $0x70] sm:$0xff]  ;;  %v1786_v5 = vld [vmem:[%s2496_s0 + $0x180] sm:$0xff] }
  0x12   :  { %v1735_v22 = vld [vmem:[%s2496_s0 + $0x170] sm:$0xff]  ;;  %v1740_v16 = vld [vmem:[%s2496_s0 + $0x88] sm:$0xff]  ;;  %v1807_v63 = vld [vmem:[%s2496_s0 + $0xb8] sm:$0xff] }
  0x13   :  { %1145 = vmatpush3.bf16.msra.mxu0 %v1273_v11  ;;  %1260 = vmatpush3.bf16.msra.mxu1 %v1273_v11  ;;  %v1763_v11 = vld [vmem:[%s2496_s0 + $0x198] sm:$0xff]  ;;  %v1781_v6 = vld [vmem:[%s2496_s0 + $0x90] sm:$0xff]  ;;  %v1802_v0 = vld [vmem:[%s2496_s0 + $0xa8] sm:$0xff]  ;;  %2520 = vst [vmem:[#allocation4_spill] sm:$0xff] %v1807_v63 }
  0x14   :  { %1146 = vmatprep.subr.bf16.mxu0 %v1274_v13  ;;  %1253 = vmatprep.subr.bf16.mxu1 %v1274_v13  ;;  %v1758_v13 = vld [vmem:[%s2496_s0 + $0x188] sm:$0xff]  ;;  %v1791_v15 = vld [vmem:[%s2496_s0 + $0x190] sm:$0xff]  ;;  %2519 = vst [vmem:[#allocation3_spill] sm:$0xff] %v1802_v0  ;;  %v1825_v58 = vld [vmem:[%s2496_s0 + $0x1b8] sm:$0xff]  ;;  %v2545_v0 = vsub.f32 %v1558_v37, %v1521_v28 }
  0x15   :  { %2522 = vst [vmem:[#allocation6_spill] sm:$0xff] %v1825_v58  ;;  %v1830_v57 = vld [vmem:[%s2496_s0 + $0xa0] sm:$0xff]  ;;  %v1835_v55 = vld [vmem:[%s2496_s0 + $0xb0] sm:$0xff]  ;;  %v1858_v62 = vld [vmem:[%s2496_s0 + $0xc8] sm:$0xff] }
  0x16   :  { %2523 = vst [vmem:[#allocation7_spill] sm:$0xff] %v1830_v57  ;;  %2524 = vst [vmem:[#allocation8_spill] sm:$0xff] %v1835_v55  ;;  %v1848_v51 = vld [vmem:[%s2496_s0 + $0x1a0] sm:$0xff]  ;;  %v1853_v50 = vld [vmem:[%s2496_s0 + $0x1b0] sm:$0xff] }
  0x17   :  { %1147 = vmatpush3.bf16.msra.mxu0 %v1275_v17  ;;  %1261 = vmatpush3.bf16.msra.mxu1 %v1275_v17  ;;  %v1693_v17 = vld [vmem:[%s2496_s0 + $0x78] sm:$0xff]  ;;  %2525 = vst [vmem:[#allocation9_spill] sm:$0xff] %v1848_v51  ;;  %2526 = vst [vmem:[#allocation10_spill] sm:$0xff] %v1853_v50  ;;  %v1876_v42 = vld [vmem:[%s2496_s0 + $0x1c8] sm:$0xff] }
  0x18   :  { %1148 = vmatprep.subr.bf16.mxu0 %v1276_v23  ;;  %1254 = vmatprep.subr.bf16.mxu1 %v1276_v23  ;;  %v1768_v23 = vld [vmem:[%s2496_s0 + $0x80] sm:$0xff]  ;;  %2527 = vst [vmem:[#allocation11_spill] sm:$0xff] %v1858_v62  ;;  %v1871_v48 = vld [vmem:[%s2496_s0 + $0xd8] sm:$0xff]  ;;  %2529 = vst [vmem:[#allocation13_spill] sm:$0xff] %v1876_v42  ;;  %v1281_v24 = vpop.eup %1280  ;;  %v2538_v62 = vsub.f32 %v1499_v21, %v1521_v28  ;;  %v2542_v21 = vsub.f32 %v1534_v31, %v1548_v35 }
  0x19   :  { %2528 = vst [vmem:[#allocation12_spill] sm:$0xff] %v1871_v48  ;;  %v1881_v56 = vld [vmem:[%s2496_s0 + $0x1d8] sm:$0xff]  ;;  %v1894_v51 = vld [vmem:[%s2496_s0 + $0xc0] sm:$0xff]  ;;  %v1899_v55 = vld [vmem:[%s2496_s0 + $0xd0] sm:$0xff]  ;;  %v1907_v41 = vrot.slane %v1281_v24, %v1480_v14  ;;  %v1910_v50 = vrot.slane %v1281_v24, %v1475_v12  ;;  %v2539_v14 = vsub.f32 %v1513_v25, %v1521_v28  ;;  %v2543_v25 = vsub.f32 %v1539_v32, %v1548_v35 }
  0x1a   :  { %2530 = vst [vmem:[#allocation14_spill] sm:$0xff] %v1881_v56  ;;  %2531 = vst [vmem:[#allocation15_spill] sm:$0xff] %v1894_v51  ;;  %v1904_v49 = vld [vmem:[%s2496_s0 + $0x1c0] sm:$0xff]  ;;  %v1919_v42 = vld [vmem:[%s2496_s0 + $0x1d0] sm:$0xff]  ;;  %v2540_v56 = vsub.f32 %v1518_v26, %v1521_v28  ;;  %v2544_v26 = vsub.f32 %v1553_v36, %v1548_v35 }
  0x1b   :  { %1149 = vmatpush3.bf16.msra.mxu0 %v1277_v39  ;;  %1262 = vmatpush3.bf16.msra.mxu1 %v1277_v39  ;;  %v1724_v39 = vld [vmem:[%s2496_s0 + $0x160] sm:$0xff]  ;;  %2532 = vst [vmem:[#allocation16_spill] sm:$0xff] %v1899_v55  ;;  %2533 = vst [vmem:[#allocation17_spill] sm:$0xff] %v1904_v49  ;;  %v1924_v48 = vld [vmem:[%s2496_s0 + $0xe8] sm:$0xff]  ;;  %v2537_v55 = vsub.f32 %v1494_v20, %v1521_v28  ;;  %v188_v57 = vmul.f32 %v1907_v41, %v2538_v62 }
  0x1c   :  { %1150 = vmatprep.subr.bf16.mxu0 %v1278_v47  ;;  %1255 = vmatprep.subr.bf16.mxu1 %v1278_v47  ;;  %v1745_v47 = vld [vmem:[%s2496_s0 + $0x98] sm:$0xff]  ;;  %2534 = vst [vmem:[#allocation18_spill] sm:$0xff] %v1919_v42  ;;  %2535 = vst [vmem:[#allocation19_spill] sm:$0xff] %v1924_v48  ;;  %v218_v24 = vmul.f32 %v1907_v41, %v2539_v14  ;;  %v220_v7 = vmul.f32 %v1907_v41, %v2540_v56 }
  0x1d   :  { %v1929_v12 = vld [vmem:[%s2496_s0 + $0xf8] sm:$0xff]  ;;  %v186_v51 = vmul.f32 %v1907_v41, %v2537_v55  ;;  %v2541_v20 = vsub.f32 %v1529_v30, %v1548_v35  ;;  %v187_v62 = vmul.f32 %v1910_v50, %v2542_v21  ;;  %v217_v14 = vmul.f32 %v1910_v50, %v2543_v25 }
  0x1e   :  { %2536 = vst [vmem:[#allocation20_spill] sm:$0xff] %v1929_v12  ;;  %v219_v56 = vmul.f32 %v1910_v50, %v2544_v26  ;;  %v264_v30 = vmul.f32 %v1542_v33, %v188_v57  ;;  %v296_v31 = vmul.f32 %v1542_v33, %v220_v7 }
  0x1f   :  { %1151 = vmatpush3.bf16.msra.mxu0 %v1279_v4  ;;  %1263 = vmatpush3.bf16.msra.mxu1 %v1279_v4  ;;  %v1812_v4 = vld [vmem:[%s2496_s0 + $0x1a8] sm:$0xff]  ;;  %v185_v55 = vmul.f32 %v1910_v50, %v2541_v20  ;;  %v262_v12 = vmul.f32 %v1542_v33, %v186_v51  ;;  %v294_v20 = vmul.f32 %v1542_v33, %v218_v24 }
  0x20   :  { %2521 = vst [vmem:[#allocation5_spill] sm:$0xff] %v1812_v4  ;;  %v263_v48 = vmul.f32 %v1524_v29, %v187_v62  ;;  %v293_v32 = vmul.f32 %v1524_v29, %v217_v14  ;;  %v295_v25 = vmul.f32 %v1524_v29, %v219_v56  ;;  %v340_v26 = vadd.f32 %v1573_v43, %v264_v30 }
  0x21   :  { %v261_v21 = vmul.f32 %v1524_v29, %v185_v55  ;;  %v338_v36 = vadd.f32 %v1573_v43, %v262_v12  ;;  %v370_v51 = vadd.f32 %v1573_v43, %v294_v20  ;;  %v372_v57 = vadd.f32 %v1573_v43, %v296_v31 }
  0x22   :  { %v339_v7 = vadd.f32 %v1545_v34, %v263_v48  ;;  %v369_v55 = vadd.f32 %v1545_v34, %v293_v32  ;;  %v371_v62 = vadd.f32 %v1545_v34, %v295_v25  ;;  %vm404_vm1 = vcmp.gt.f32.partialorder %v340_v26, 0.0 }
  0x23   :  { %v337_v24 = vadd.f32 %v1545_v34, %v261_v21  ;;  %vm402_vm0 = vcmp.gt.f32.partialorder %v338_v36, 0.0  ;;  %v466_v14 = vmul.f32 0.2, %v338_v36  ;;  %v468_v56 = vmul.f32 0.2, %v340_v26 }
  0x24   :  { %vm434_vm2 = vcmp.gt.f32.partialorder %v370_v51, 0.0  ;;  %vm436_vm3 = vcmp.gt.f32.partialorder %v372_v57, 0.0  ;;  %v498_v12 = vmul.f32 0.2, %v370_v51  ;;  %v500_v30 = vmul.f32 0.2, %v372_v57 }
  0x25   :  { %v530_v42 = vsel %vm402_vm0, %v338_v36, %v466_v14  ;;  %v532_v20 = vsel %vm404_vm1, %v340_v26, %v468_v56  ;;  %vm401_vm4 = vcmp.gt.f32.partialorder %v337_v24, 0.0  ;;  %vm403_vm5 = vcmp.gt.f32.partialorder %v339_v7, 0.0 }
  0x26   :  { %v594_v31 = vpack.c.bf16 %v532_v20, %v530_v42  ;;  %v562_v21 = vsel %vm434_vm2, %v370_v51, %v498_v12  ;;  %v564_v49 = vsel %vm436_vm3, %v372_v57, %v500_v30  ;;  %v465_v48 = vmul.f32 0.2, %v337_v24 }
  0x27   :  { %v610_v58 = vpack.c.bf16 %v564_v49, %v562_v21  ;;  %v467_v32 = vmul.f32 0.2, %v339_v7  ;;  %vm433_vm6 = vcmp.gt.f32.partialorder %v369_v55, 0.0  ;;  %vm435_vm7 = vcmp.gt.f32.partialorder %v371_v62, 0.0 }
  0x28   :  { %792 = vmatprep.mubr.bf16.mxu0 %v594_v31  ;;  %v529_v25 = vsel %vm401_vm4, %v337_v24, %v465_v48  ;;  %v497_v4 = vmul.f32 0.2, %v369_v55  ;;  %v499_v63 = vmul.f32 0.2, %v371_v62  ;;  %v190_v36 = vmul.f32 %v1907_v41, %v2545_v0 }
  0x29   :  { %856 = vmatprep.mubr.bf16.mxu1 %v610_v58  ;;  %v531_v26 = vsel %vm403_vm5, %v339_v7, %v467_v32  ;;  %v2546_v42 = vsub.f32 %v1563_v38, %v1521_v28  ;;  %v2547_v49 = vsub.f32 %v1578_v44, %v1521_v28  ;;  %v2548_v24 = vsub.f32 %v1583_v45, %v1521_v28 }
  0x2a   :  { %v593_v37 = vpack.c.bf16 %v531_v26, %v529_v25  ;;  %v561_v56 = vsel %vm433_vm6, %v369_v55, %v497_v4  ;;  %v563_v0 = vsel %vm435_vm7, %v371_v62, %v499_v63  ;;  %v266_v58 = vmul.f32 %v1542_v33, %v190_v36 }
  0x2b   :  { %v192_v51 = vmul.f32 %v1907_v41, %v2546_v42  ;;  %v222_v57 = vmul.f32 %v1907_v41, %v2547_v49  ;;  %v224_v14 = vmul.f32 %v1907_v41, %v2548_v24  ;;  %v609_v7 = vpack.c.bf16 %v563_v0, %v561_v56 }
  0x2c   :  { %793 = vmatmul.mubr.bf16.vlgmr.msra.gmra.mrb[0].mxu0 %v593_v37  ;;  %v342_v44 = vadd.f32 %v1573_v43, %v266_v58  ;;  %v2549_v45 = vsub.f32 %v1588_v46, %v1548_v35  ;;  %v2550_v63 = vsub.f32 %v1604_v52, %v1548_v35  ;;  %v2551_v55 = vsub.f32 %v1609_v53, %v1548_v35 }
  0x2d   :  { %v268_v38 = vmul.f32 %v1542_v33, %v192_v51  ;;  %v298_v12 = vmul.f32 %v1542_v33, %v222_v57  ;;  %v300_v30 = vmul.f32 %v1542_v33, %v224_v14  ;;  %857 = vmatmul.mubr.bf16.vlgmr.msra.gmra.mrb[0].mxu1 %v609_v7  ;;  %v2552_v46 = vsub.f32 %v1614_v54, %v1548_v35 }
  0x2e   :  { %v189_v20 = vmul.f32 %v1910_v50, %v2549_v45  ;;  %v191_v4 = vmul.f32 %v1910_v50, %v2550_v63  ;;  %v221_v62 = vmul.f32 %v1910_v50, %v2551_v55  ;;  %vm406_vm8 = vcmp.gt.f32.partialorder %v342_v44, 0.0 }
  0x2f   :  { %v344_v31 = vadd.f32 %v1573_v43, %v268_v38  ;;  %v374_v21 = vadd.f32 %v1573_v43, %v298_v12  ;;  %v376_v48 = vadd.f32 %v1573_v43, %v300_v30  ;;  %v223_v32 = vmul.f32 %v1910_v50, %v2552_v46 }
  0x30   :  { %v470_v52 = vmul.f32 0.2, %v342_v44  ;;  %v265_v25 = vmul.f32 %v1524_v29, %v189_v20  ;;  %v267_v53 = vmul.f32 %v1524_v29, %v191_v4  ;;  %v297_v24 = vmul.f32 %v1524_v29, %v221_v62 }
  0x31   :  { %vm408_vm9 = vcmp.gt.f32.partialorder %v344_v31, 0.0  ;;  %v472_v36 = vmul.f32 0.2, %v344_v31  ;;  %vm438_vm10 = vcmp.gt.f32.partialorder %v374_v21, 0.0  ;;  %vm440_vm11 = vcmp.gt.f32.partialorder %v376_v48, 0.0 }
  0x32   :  { %v534_v26 = vsel %vm406_vm8, %v342_v44, %v470_v52  ;;  %v502_v42 = vmul.f32 0.2, %v374_v21  ;;  %v504_v51 = vmul.f32 0.2, %v376_v48  ;;  %v341_v49 = vadd.f32 %v1545_v34, %v265_v25 }
  0x33   :  { %v536_v57 = vsel %vm408_vm9, %v344_v31, %v472_v36  ;;  %v343_v54 = vadd.f32 %v1545_v34, %v267_v53  ;;  %v299_v14 = vmul.f32 %v1524_v29, %v223_v32  ;;  %v373_v12 = vadd.f32 %v1545_v34, %v297_v24 }
  0x34   :  { %v596_v37 = vpack.c.bf16 %v536_v57, %v534_v26  ;;  %v566_v56 = vsel %vm438_vm10, %v374_v21, %v502_v42  ;;  %v568_v0 = vsel %vm440_vm11, %v376_v48, %v504_v51  ;;  %vm405_vm12 = vcmp.gt.f32.partialorder %v341_v49, 0.0 }
  0x35   :  { %v612_v58 = vpack.c.bf16 %v568_v0, %v566_v56  ;;  %vm407_vm13 = vcmp.gt.f32.partialorder %v343_v54, 0.0  ;;  %v469_v7 = vmul.f32 0.2, %v341_v49  ;;  %v471_v38 = vmul.f32 0.2, %v343_v54 }
  0x36   :  { %800 = vmatprep.mubr.bf16.mxu0 %v596_v37  ;;  %v375_v30 = vadd.f32 %v1545_v34, %v299_v14  ;;  %v2553_v44 = vsub.f32 %v1625_v59, %v1521_v28  ;;  %v2554_v20 = vsub.f32 %v1630_v60, %v1521_v28  ;;  %v2555_v62 = vsub.f32 %v1635_v61, %v1521_v28 }
  0x37   :  { %864 = vmatprep.mubr.bf16.mxu1 %v612_v58  ;;  %v533_v4 = vsel %vm405_vm12, %v341_v49, %v469_v7  ;;  %v535_v55 = vsel %vm407_vm13, %v343_v54, %v471_v38  ;;  %v2556_v21 = vsub.f32 %v1646_v1, %v1521_v28  ;;  %vm437_vm14 = vcmp.gt.f32.partialorder %v373_v12, 0.0 }
  0x38   :  { %v194_v45 = vmul.f32 %v1907_v41, %v2553_v44  ;;  %v196_v63 = vmul.f32 %v1907_v41, %v2554_v20  ;;  %v226_v31 = vmul.f32 %v1907_v41, %v2555_v62  ;;  %v595_v48 = vpack.c.bf16 %v535_v55, %v533_v4 }
  0x39   :  { %v228_v59 = vmul.f32 %v1907_v41, %v2556_v21  ;;  %vm439_vm15 = vcmp.gt.f32.partialorder %v375_v30, 0.0  ;;  %v501_v46 = vmul.f32 0.2, %v373_v12  ;;  %v503_v60 = vmul.f32 0.2, %v375_v30 }
  0x3a   :  { %v270_v32 = vmul.f32 %v1542_v33, %v194_v45  ;;  %v272_v52 = vmul.f32 %v1542_v33, %v196_v63  ;;  %v302_v25 = vmul.f32 %v1542_v33, %v226_v31  ;;  %801 = vmatmul.mubr.bf16.gmra.mrb[4].mxu0 %v595_v48  ;;  %v2557_v1 = vsub.f32 %v1651_v2, %v1548_v35 }
  0x3b   :  { %v565_v61 = vsel %vm437_vm14, %v373_v12, %v501_v46  ;;  %v304_v53 = vmul.f32 %v1542_v33, %v228_v59  ;;  %v2558_v26 = vsub.f32 %v1656_v3, %v1548_v35  ;;  %v567_v51 = vsel %vm439_vm15, %v375_v30, %v503_v60 }
  0x3c   :  { %v193_v36 = vmul.f32 %v1910_v50, %v2557_v1  ;;  %v346_v49 = vadd.f32 %v1573_v43, %v270_v32  ;;  %v348_v57 = vadd.f32 %v1573_v43, %v272_v52  ;;  %v378_v54 = vadd.f32 %v1573_v43, %v302_v25 }
  0x3d   :  { %v195_v42 = vmul.f32 %v1910_v50, %v2558_v26  ;;  %v611_v24 = vpack.c.bf16 %v567_v51, %v565_v61  ;;  %v380_v14 = vadd.f32 %v1573_v43, %v304_v53  ;;  %v2559_v63 = vsub.f32 %v1670_v8, %v1548_v35 }
  0x3e   :  { %v269_v37 = vmul.f32 %v1524_v29, %v193_v36  ;;  %vm410_vm0 = vcmp.gt.f32.partialorder %v346_v49, 0.0  ;;  %vm412_vm1 = vcmp.gt.f32.partialorder %v348_v57, 0.0  ;;  %v474_v56 = vmul.f32 0.2, %v346_v49 }
  0x3f   :  { %v271_v2 = vmul.f32 %v1524_v29, %v195_v42  ;;  %v476_v3 = vmul.f32 0.2, %v348_v57  ;;  %865 = vmatmul.mubr.bf16.gmra.mrb[4].mxu1 %v611_v24  ;;  %vm442_vm2 = vcmp.gt.f32.partialorder %v378_v54, 0.0  ;;  %vm444_vm3 = vcmp.gt.f32.partialorder %v380_v14, 0.0 }
  0x40   :  { %v506_v0 = vmul.f32 0.2, %v378_v54  ;;  %v508_v58 = vmul.f32 0.2, %v380_v14  ;;  %v538_v7 = vsel %vm410_vm0, %v346_v49, %v474_v56  ;;  %v345_v12 = vadd.f32 %v1545_v34, %v269_v37 }
  0x41   :  { %v540_v38 = vsel %vm412_vm1, %v348_v57, %v476_v3  ;;  %v347_v30 = vadd.f32 %v1545_v34, %v271_v2  ;;  %v225_v4 = vmul.f32 %v1910_v50, %v2559_v63  ;;  %v2560_v21 = vsub.f32 %v1675_v9, %v1548_v35 }
  0x42   :  { %v598_v44 = vpack.c.bf16 %v540_v38, %v538_v7  ;;  %v570_v45 = vsel %vm442_vm2, %v378_v54, %v506_v0  ;;  %v572_v20 = vsel %vm444_vm3, %v380_v14, %v508_v58  ;;  %vm409_vm4 = vcmp.gt.f32.partialorder %v345_v12, 0.0 }
  0x43   :  { %v614_v55 = vpack.c.bf16 %v572_v20, %v570_v45  ;;  %vm411_vm5 = vcmp.gt.f32.partialorder %v347_v30, 0.0  ;;  %v473_v62 = vmul.f32 0.2, %v345_v12  ;;  %v475_v31 = vmul.f32 0.2, %v347_v30 }
  0x44   :  { %808 = vmatprep.mubr.bf16.mxu0 %v598_v44  ;;  %v227_v59 = vmul.f32 %v1910_v50, %v2560_v21  ;;  %v301_v48 = vmul.f32 %v1524_v29, %v225_v4  ;;  %v2561_v46 = vsub.f32 %v1680_v10, %v1521_v28  ;;  %v2562_v32 = vsub.f32 %v1693_v17, %v1521_v28 }
  0x45   :  { %872 = vmatprep.mubr.bf16.mxu1 %v614_v55  ;;  %v537_v60 = vsel %vm409_vm4, %v345_v12, %v473_v62  ;;  %v2563_v25 = vsub.f32 %v1698_v18, %v1521_v28  ;;  %v2564_v61 = vsub.f32 %v1703_v19, %v1521_v28  ;;  %v539_v10 = vsel %vm411_vm5, %v347_v30, %v475_v31 }
  0x46   :  { %v198_v8 = vmul.f32 %v1907_v41, %v2561_v46  ;;  %v200_v52 = vmul.f32 %v1907_v41, %v2562_v32  ;;  %v303_v1 = vmul.f32 %v1524_v29, %v227_v59  ;;  %v377_v36 = vadd.f32 %v1545_v34, %v301_v48 }
  0x47   :  { %v230_v9 = vmul.f32 %v1907_v41, %v2563_v25  ;;  %v232_v53 = vmul.f32 %v1907_v41, %v2564_v61  ;;  %v597_v17 = vpack.c.bf16 %v539_v10, %v537_v60  ;;  %v2565_v37 = vsub.f32 %v1714_v27, %v1548_v35 }
  0x48   :  { %v274_v26 = vmul.f32 %v1542_v33, %v198_v8  ;;  %v276_v42 = vmul.f32 %v1542_v33, %v200_v52  ;;  %v379_v49 = vadd.f32 %v1545_v34, %v303_v1  ;;  %vm441_vm6 = vcmp.gt.f32.partialorder %v377_v36, 0.0 }
  0x49   :  { %v306_v51 = vmul.f32 %v1542_v33, %v230_v9  ;;  %v308_v18 = vmul.f32 %v1542_v33, %v232_v53  ;;  %v505_v19 = vmul.f32 0.2, %v377_v36  ;;  %809 = vmatmul.mubr.bf16.gmra.mrb[8].mxu0 %v597_v17  ;;  %v197_v2 = vmul.f32 %v1910_v50, %v2565_v37 }
  0x4a   :  { %v350_v57 = vadd.f32 %v1573_v43, %v274_v26  ;;  %v352_v54 = vadd.f32 %v1573_v43, %v276_v42  ;;  %vm443_vm7 = vcmp.gt.f32.partialorder %v379_v49, 0.0  ;;  %v507_v56 = vmul.f32 0.2, %v379_v49 }
  0x4b   :  { %v382_v24 = vadd.f32 %v1573_v43, %v306_v51  ;;  %v384_v14 = vadd.f32 %v1573_v43, %v308_v18  ;;  %v569_v3 = vsel %vm441_vm6, %v377_v36, %v505_v19  ;;  %v2566_v27 = vsub.f32 %v1719_v40, %v1548_v35 }
  0x4c   :  { %vm414_vm8 = vcmp.gt.f32.partialorder %v350_v57, 0.0  ;;  %vm416_vm9 = vcmp.gt.f32.partialorder %v352_v54, 0.0  ;;  %v478_v0 = vmul.f32 0.2, %v350_v57  ;;  %v480_v58 = vmul.f32 0.2, %v352_v54 }
  0x4d   :  { %vm446_vm10 = vcmp.gt.f32.partialorder %v382_v24, 0.0  ;;  %v571_v7 = vsel %vm443_vm7, %v379_v49, %v507_v56  ;;  %vm448_vm11 = vcmp.gt.f32.partialorder %v384_v14, 0.0  ;;  %v510_v38 = vmul.f32 0.2, %v382_v24 }
  0x4e   :  { %v512_v12 = vmul.f32 0.2, %v384_v14  ;;  %v613_v30 = vpack.c.bf16 %v571_v7, %v569_v3  ;;  %v542_v44 = vsel %vm414_vm8, %v350_v57, %v478_v0  ;;  %v544_v45 = vsel %vm416_vm9, %v352_v54, %v480_v58 }
  0x4f   :  { %v199_v20 = vmul.f32 %v1910_v50, %v2566_v27  ;;  %v600_v63 = vpack.c.bf16 %v544_v45, %v542_v44  ;;  %v574_v4 = vsel %vm446_vm10, %v382_v24, %v510_v38  ;;  %v273_v62 = vmul.f32 %v1524_v29, %v197_v2 }
  0x50   :  { %v576_v55 = vsel %vm448_vm11, %v384_v14, %v512_v12  ;;  %873 = vmatmul.mubr.bf16.gmra.mrb[8].mxu1 %v613_v30  ;;  %v2567_v59 = vsub.f32 %v1724_v39, %v1548_v35  ;;  %v2568_v46 = vsub.f32 %v1735_v22, %v1548_v35  ;;  %v2569_v60 = vsub.f32 %v1740_v16, %v1521_v28 }
  0x51   :  { %v616_v31 = vpack.c.bf16 %v576_v55, %v574_v4  ;;  %v275_v21 = vmul.f32 %v1524_v29, %v199_v20  ;;  %816 = vmatprep.mubr.bf16.mxu0 %v600_v63  ;;  %v349_v8 = vadd.f32 %v1545_v34, %v273_v62  ;;  %v2570_v52 = vsub.f32 %v1745_v47, %v1521_v28 }
  0x52   :  { %v229_v48 = vmul.f32 %v1910_v50, %v2567_v59  ;;  %v231_v40 = vmul.f32 %v1910_v50, %v2568_v46  ;;  %v202_v32 = vmul.f32 %v1907_v41, %v2569_v60  ;;  %v2571_v25 = vsub.f32 %v1758_v13, %v1521_v28 }
  0x53   :  { %v204_v39 = vmul.f32 %v1907_v41, %v2570_v52  ;;  %880 = vmatprep.mubr.bf16.mxu1 %v616_v31  ;;  %v351_v9 = vadd.f32 %v1545_v34, %v275_v21  ;;  %v2572_v16 = vsub.f32 %v1763_v11, %v1521_v28  ;;  %vm413_vm12 = vcmp.gt.f32.partialorder %v349_v8, 0.0 }
  0x54   :  { %v234_v22 = vmul.f32 %v1907_v41, %v2571_v25  ;;  %v305_v61 = vmul.f32 %v1524_v29, %v229_v48  ;;  %v307_v53 = vmul.f32 %v1524_v29, %v231_v40  ;;  %v477_v47 = vmul.f32 0.2, %v349_v8  ;;  %v2577_v48 = vld [vmem:[#allocation3_spill] sm:$0xff] }
  0x55   :  { %v236_v10 = vmul.f32 %v1907_v41, %v2572_v16  ;;  %v278_v1 = vmul.f32 %v1542_v33, %v202_v32  ;;  %v280_v13 = vmul.f32 %v1542_v33, %v204_v39  ;;  %vm415_vm13 = vcmp.gt.f32.partialorder %v351_v9, 0.0  ;;  %v2579_v32 = vld [vmem:[#allocation4_spill] sm:$0xff] }
  0x56   :  { %v479_v36 = vmul.f32 0.2, %v351_v9  ;;  %v381_v26 = vadd.f32 %v1545_v34, %v305_v61  ;;  %v383_v17 = vadd.f32 %v1545_v34, %v307_v53  ;;  %v541_v42 = vsel %vm413_vm12, %v349_v8, %v477_v47 }
  0x57   :  { %v354_v51 = vadd.f32 %v1573_v43, %v278_v1  ;;  %v356_v18 = vadd.f32 %v1573_v43, %v280_v13  ;;  %v310_v11 = vmul.f32 %v1542_v33, %v234_v22  ;;  %v312_v2 = vmul.f32 %v1542_v33, %v236_v10  ;;  %v2581_v1 = vld [vmem:[#allocation5_spill] sm:$0xff] }
  0x58   :  { %v543_v49 = vsel %vm415_vm13, %v351_v9, %v479_v36  ;;  %vm445_vm14 = vcmp.gt.f32.partialorder %v381_v26, 0.0  ;;  %vm447_vm15 = vcmp.gt.f32.partialorder %v383_v17, 0.0  ;;  %v509_v19 = vmul.f32 0.2, %v381_v26 }
  0x59   :  { %v599_v57 = vpack.c.bf16 %v543_v49, %v541_v42  ;;  %v511_v54 = vmul.f32 0.2, %v383_v17  ;;  %vm418_vm0 = vcmp.gt.f32.partialorder %v354_v51, 0.0  ;;  %vm420_vm1 = vcmp.gt.f32.partialorder %v356_v18, 0.0 }
  0x5a   :  { %v573_v24 = vsel %vm445_vm14, %v381_v26, %v509_v19  ;;  %v482_v14 = vmul.f32 0.2, %v354_v51  ;;  %v484_v37 = vmul.f32 0.2, %v356_v18  ;;  %v386_v3 = vadd.f32 %v1573_v43, %v310_v11 }
  0x5b   :  { %817 = vmatmul.mubr.bf16.gmra.mrb[12].mxu0 %v599_v57  ;;  %v575_v56 = vsel %vm447_vm15, %v383_v17, %v511_v54  ;;  %v2573_v0 = vsub.f32 %v1768_v23, %v1548_v35  ;;  %v2574_v7 = vsub.f32 %v1781_v6, %v1548_v35  ;;  %v388_v45 = vadd.f32 %v1573_v43, %v312_v2  ;;  %v2583_v57 = vld [vmem:[#allocation6_spill] sm:$0xff] }
  0x5c   :  { %v615_v12 = vpack.c.bf16 %v575_v56, %v573_v24  ;;  %v546_v30 = vsel %vm418_vm0, %v354_v51, %v482_v14  ;;  %v548_v44 = vsel %vm420_vm1, %v356_v18, %v484_v37  ;;  %vm450_vm2 = vcmp.gt.f32.partialorder %v386_v3, 0.0 }
  0x5d   :  { %v201_v58 = vmul.f32 %v1910_v50, %v2573_v0  ;;  %v203_v38 = vmul.f32 %v1910_v50, %v2574_v7  ;;  %v602_v27 = vpack.c.bf16 %v548_v44, %v546_v30  ;;  %v514_v20 = vmul.f32 0.2, %v386_v3  ;;  %v2587_v44 = vld [vmem:[#allocation8_spill] sm:$0xff] }
  0x5e   :  { %881 = vmatmul.mubr.bf16.gmra.mrb[12].mxu1 %v615_v12  ;;  %vm452_vm3 = vcmp.gt.f32.partialorder %v388_v45, 0.0  ;;  %v516_v23 = vmul.f32 0.2, %v388_v45  ;;  %v2575_v6 = vsub.f32 %v1786_v5, %v1548_v35  ;;  %v2576_v21 = vsub.f32 %v1791_v15, %v1548_v35 }
  0x5f   :  { %v277_v63 = vmul.f32 %v1524_v29, %v201_v58  ;;  %v279_v4 = vmul.f32 %v1524_v29, %v203_v38  ;;  %824 = vmatprep.mubr.bf16.mxu0 %v602_v27  ;;  %v578_v62 = vsel %vm450_vm2, %v386_v3, %v514_v20  ;;  %v2578_v46 = vsub.f32 %v2577_v48, %v1521_v28  ;;  %v2585_v58 = vld [vmem:[#allocation7_spill] sm:$0xff]  ;;  %v2589_v20 = vld [vmem:[#allocation9_spill] sm:$0xff] }
  0x60   :  { %v233_v55 = vmul.f32 %v1910_v50, %v2575_v6  ;;  %v235_v59 = vmul.f32 %v1910_v50, %v2576_v21  ;;  %v580_v8 = vsel %vm452_vm3, %v388_v45, %v516_v23  ;;  %v2580_v52 = vsub.f32 %v2579_v32, %v1521_v28 }
  0x61   :  { %v353_v31 = vadd.f32 %v1545_v34, %v277_v63  ;;  %v206_v40 = vmul.f32 %v1907_v41, %v2578_v46  ;;  %v355_v60 = vadd.f32 %v1545_v34, %v279_v4  ;;  %v618_v25 = vpack.c.bf16 %v580_v8, %v578_v62  ;;  %v2591_v62 = vld [vmem:[#allocation10_spill] sm:$0xff] }
  0x62   :  { %v309_v5 = vmul.f32 %v1524_v29, %v233_v55  ;;  %v208_v39 = vmul.f32 %v1907_v41, %v2580_v52  ;;  %v311_v22 = vmul.f32 %v1524_v29, %v235_v59  ;;  %v2582_v13 = vsub.f32 %v2581_v1, %v1521_v28 }
  0x63   :  { %vm417_vm4 = vcmp.gt.f32.partialorder %v353_v31, 0.0  ;;  %v481_v15 = vmul.f32 0.2, %v353_v31  ;;  %vm419_vm5 = vcmp.gt.f32.partialorder %v355_v60, 0.0  ;;  %v483_v9 = vmul.f32 0.2, %v355_v60  ;;  %888 = vmatprep.mubr.bf16.mxu1 %v618_v25 }
  0x64   :  { %v385_v61 = vadd.f32 %v1545_v34, %v309_v5  ;;  %v282_v53 = vmul.f32 %v1542_v33, %v206_v40  ;;  %v387_v10 = vadd.f32 %v1545_v34, %v311_v22  ;;  %v284_v47 = vmul.f32 %v1542_v33, %v208_v39  ;;  %v2593_v39 = vld [vmem:[#allocation11_spill] sm:$0xff] }
  0x65   :  { %v545_v16 = vsel %vm417_vm4, %v353_v31, %v481_v15  ;;  %v238_v36 = vmul.f32 %v1907_v41, %v2582_v13  ;;  %v547_v26 = vsel %vm419_vm5, %v355_v60, %v483_v9  ;;  %v2584_v54 = vsub.f32 %v2583_v57, %v1521_v28 }
  0x66   :  { %vm449_vm6 = vcmp.gt.f32.partialorder %v385_v61, 0.0  ;;  %v513_v17 = vmul.f32 0.2, %v385_v61  ;;  %v358_v42 = vadd.f32 %v1573_v43, %v282_v53  ;;  %v601_v51 = vpack.c.bf16 %v547_v26, %v545_v16 }
  0x67   :  { %vm451_vm7 = vcmp.gt.f32.partialorder %v387_v10, 0.0  ;;  %v515_v18 = vmul.f32 0.2, %v387_v10  ;;  %v360_v11 = vadd.f32 %v1573_v43, %v284_v47  ;;  %v240_v24 = vmul.f32 %v1907_v41, %v2584_v54  ;;  %v2599_v54 = vld [vmem:[#allocation14_spill] sm:$0xff] }
  0x68   :  { %v577_v49 = vsel %vm449_vm6, %v385_v61, %v513_v17  ;;  %vm422_vm8 = vcmp.gt.f32.partialorder %v358_v42, 0.0  ;;  %v486_v19 = vmul.f32 0.2, %v358_v42  ;;  %825 = vmatmul.mubr.bf16.gmra.mrb[16].mxu0 %v601_v51  ;;  %v314_v2 = vmul.f32 %v1542_v33, %v238_v36  ;;  %v2595_v36 = vld [vmem:[#allocation12_spill] sm:$0xff]  ;;  %v2597_v51 = vld [vmem:[#allocation13_spill] sm:$0xff] }
  0x69   :  { %v579_v14 = vsel %vm451_vm7, %v387_v10, %v515_v18  ;;  %vm424_vm9 = vcmp.gt.f32.partialorder %v360_v11, 0.0  ;;  %v488_v37 = vmul.f32 0.2, %v360_v11  ;;  %v316_v0 = vmul.f32 %v1542_v33, %v240_v24 }
  0x6a   :  { %v617_v56 = vpack.c.bf16 %v579_v14, %v577_v49  ;;  %v550_v3 = vsel %vm422_vm8, %v358_v42, %v486_v19  ;;  %v2586_v7 = vsub.f32 %v2585_v58, %v1548_v35  ;;  %v390_v30 = vadd.f32 %v1573_v43, %v314_v2  ;;  %v2601_v58 = vld [vmem:[#allocation15_spill] sm:$0xff] }
  0x6b   :  { %v552_v12 = vsel %vm424_vm9, %v360_v11, %v488_v37  ;;  %v2588_v45 = vsub.f32 %v2587_v44, %v1548_v35  ;;  %v2590_v63 = vsub.f32 %v2589_v20, %v1548_v35  ;;  %v392_v6 = vadd.f32 %v1573_v43, %v316_v0 }
  0x6c   :  { %v205_v38 = vmul.f32 %v1910_v50, %v2586_v7  ;;  %889 = vmatmul.mubr.bf16.gmra.mrb[16].mxu1 %v617_v56  ;;  %v604_v4 = vpack.c.bf16 %v552_v12, %v550_v3  ;;  %v2592_v31 = vsub.f32 %v2591_v62, %v1548_v35  ;;  %vm454_vm10 = vcmp.gt.f32.partialorder %v390_v30, 0.0  ;;  %v2603_v12 = vld [vmem:[#allocation16_spill] sm:$0xff] }
  0x6d   :  { %v207_v27 = vmul.f32 %v1910_v50, %v2588_v45  ;;  %v237_v23 = vmul.f32 %v1910_v50, %v2590_v63  ;;  %v518_v59 = vmul.f32 0.2, %v390_v30  ;;  %vm456_vm11 = vcmp.gt.f32.partialorder %v392_v6, 0.0  ;;  %v2605_v45 = vld [vmem:[#allocation17_spill] sm:$0xff] }
  0x6e   :  { %v281_v55 = vmul.f32 %v1524_v29, %v205_v38  ;;  %v239_v21 = vmul.f32 %v1910_v50, %v2592_v31  ;;  %832 = vmatprep.mubr.bf16.mxu0 %v604_v4  ;;  %v520_v40 = vmul.f32 0.2, %v392_v6  ;;  %v2594_v25 = vsub.f32 %v2593_v39, %v1521_v28  ;;  %v2607_v31 = vld [vmem:[#allocation18_spill] sm:$0xff] }
  0x6f   :  { %v283_v48 = vmul.f32 %v1524_v29, %v207_v27  ;;  %v313_v46 = vmul.f32 %v1524_v29, %v237_v23  ;;  %v582_v5 = vsel %vm454_vm10, %v390_v30, %v518_v59  ;;  %v2596_v26 = vsub.f32 %v2595_v36, %v1521_v28 }
  0x70   :  { %v357_v8 = vadd.f32 %v1545_v34, %v281_v55  ;;  %v315_v60 = vmul.f32 %v1524_v29, %v239_v21  ;;  %v210_v15 = vmul.f32 %v1907_v41, %v2594_v25  ;;  %v584_v22 = vsel %vm456_vm11, %v392_v6, %v520_v40 }
  0x71   :  { %v359_v32 = vadd.f32 %v1545_v34, %v283_v48  ;;  %v389_v52 = vadd.f32 %v1545_v34, %v313_v46  ;;  %v620_v53 = vpack.c.bf16 %v584_v22, %v582_v5  ;;  %v212_v17 = vmul.f32 %v1907_v41, %v2596_v26 }
  0x72   :  { %vm421_vm12 = vcmp.gt.f32.partialorder %v357_v8, 0.0  ;;  %v485_v9 = vmul.f32 0.2, %v357_v8  ;;  %v391_v61 = vadd.f32 %v1545_v34, %v315_v60  ;;  %v286_v42 = vmul.f32 %v1542_v33, %v210_v15 }
  0x73   :  { %vm423_vm13 = vcmp.gt.f32.partialorder %v359_v32, 0.0  ;;  %v487_v16 = vmul.f32 0.2, %v359_v32  ;;  %vm453_vm14 = vcmp.gt.f32.partialorder %v389_v52, 0.0  ;;  %v517_v47 = vmul.f32 0.2, %v389_v52  ;;  %896 = vmatprep.mubr.bf16.mxu1 %v620_v53 }
  0x74   :  { %v549_v10 = vsel %vm421_vm12, %v357_v8, %v485_v9  ;;  %vm455_vm15 = vcmp.gt.f32.partialorder %v391_v61, 0.0  ;;  %v519_v1 = vmul.f32 0.2, %v391_v61  ;;  %v2598_v18 = vsub.f32 %v2597_v51, %v1521_v28  ;;  %v96_v9 = vld [vmem:[%s2496_s0 + $0x1e8] sm:$0xff] }
  0x75   :  { %v551_v13 = vsel %vm423_vm13, %v359_v32, %v487_v16  ;;  %v581_v19 = vsel %vm453_vm14, %v389_v52, %v517_v47  ;;  %v2600_v24 = vsub.f32 %v2599_v54, %v1521_v28  ;;  %v288_v2 = vmul.f32 %v1542_v33, %v212_v17  ;;  %v2611_v17 = vld [vmem:[#allocation20_spill] sm:$0xff] }
  0x76   :  { %v242_v11 = vmul.f32 %v1907_v41, %v2598_v18  ;;  %v603_v49 = vpack.c.bf16 %v551_v13, %v549_v10  ;;  %v583_v57 = vsel %vm455_vm15, %v391_v61, %v519_v1  ;;  %v362_v56 = vadd.f32 %v1573_v43, %v286_v42  ;;  %v98_v61 = vld [vmem:[%s2496_s0 + $0x1f8] sm:$0xff]  ;;  %v2609_v13 = vld [vmem:[#allocation19_spill] sm:$0xff]  ;;  %v65_v54 = vld [vmem:[%s2496_s0 + $0xf0] sm:$0xff] }
  0x77   :  { %v244_v14 = vmul.f32 %v1907_v41, %v2600_v24  ;;  %v619_v37 = vpack.c.bf16 %v583_v57, %v581_v19  ;;  %v2602_v7 = vsub.f32 %v2601_v58, %v1548_v35  ;;  %v2604_v30 = vsub.f32 %v2603_v12, %v1548_v35  ;;  %v63_v57 = vld [vmem:[%s2496_s0 + $0xe0] sm:$0xff] }
  0x78   :  { %v318_v3 = vmul.f32 %v1542_v33, %v242_v11  ;;  %833 = vmatmul.mubr.bf16.gmra.mrb[20].mxu0 %v603_v49  ;;  %v2606_v27 = vsub.f32 %v2605_v45, %v1548_v35  ;;  %v364_v63 = vadd.f32 %v1573_v43, %v288_v2  ;;  %vm426_vm0 = vcmp.gt.f32.partialorder %v362_v56, 0.0 }
  0x79   :  { %v320_v0 = vmul.f32 %v1542_v33, %v244_v14  ;;  %v209_v38 = vmul.f32 %v1910_v50, %v2602_v7  ;;  %v211_v44 = vmul.f32 %v1910_v50, %v2604_v30  ;;  %897 = vmatmul.mubr.bf16.gmra.mrb[20].mxu1 %v619_v37  ;;  %v490_v23 = vmul.f32 0.2, %v362_v56 }
  0x7a   :  { %v241_v20 = vmul.f32 %v1910_v50, %v2606_v27  ;;  %v394_v4 = vadd.f32 %v1573_v43, %v318_v3  ;;  %v2608_v21 = vsub.f32 %v2607_v31, %v1548_v35  ;;  %vm428_vm1 = vcmp.gt.f32.partialorder %v364_v63, 0.0 }
  0x7b   :  { %v396_v6 = vadd.f32 %v1573_v43, %v320_v0  ;;  %v285_v55 = vmul.f32 %v1524_v29, %v209_v38  ;;  %v287_v62 = vmul.f32 %v1524_v29, %v211_v44  ;;  %v492_v48 = vmul.f32 0.2, %v364_v63 }
  0x7c   :  { %v243_v59 = vmul.f32 %v1910_v50, %v2608_v21  ;;  %v554_v46 = vsel %vm426_vm0, %v362_v56, %v490_v23  ;;  %vm458_vm2 = vcmp.gt.f32.partialorder %v394_v4, 0.0  ;;  %v522_v40 = vmul.f32 0.2, %v394_v4  ;;  %v97_v23 = vld [vmem:[%s2496_s0 + $0x1f0] sm:$0xff] }
  0x7d   :  { %vm460_vm3 = vcmp.gt.f32.partialorder %v396_v6, 0.0  ;;  %v524_v8 = vmul.f32 0.2, %v396_v6  ;;  %v361_v60 = vadd.f32 %v1545_v34, %v285_v55  ;;  %v556_v5 = vsel %vm428_vm1, %v364_v63, %v492_v48 }
  0x7e   :  { %v363_v32 = vadd.f32 %v1545_v34, %v287_v62  ;;  %v317_v52 = vmul.f32 %v1524_v29, %v241_v20  ;;  %v319_v39 = vmul.f32 %v1524_v29, %v243_v59  ;;  %v606_v25 = vpack.c.bf16 %v556_v5, %v554_v46 }
  0x7f   :  { %v586_v15 = vsel %vm458_vm2, %v394_v4, %v522_v40  ;;  %v588_v22 = vsel %vm460_vm3, %v396_v6, %v524_v8  ;;  %vm425_vm4 = vcmp.gt.f32.partialorder %v361_v60, 0.0  ;;  %v489_v16 = vmul.f32 0.2, %v361_v60 }
  0x80   :  { %v622_v53 = vpack.c.bf16 %v588_v22, %v586_v15  ;;  %vm427_vm5 = vcmp.gt.f32.partialorder %v363_v32, 0.0  ;;  %v491_v10 = vmul.f32 0.2, %v363_v32  ;;  %840 = vmatprep.mubr.bf16.mxu0 %v606_v25  ;;  %v393_v47 = vadd.f32 %v1545_v34, %v317_v52 }
  0x81   :  { %v395_v1 = vadd.f32 %v1545_v34, %v319_v39  ;;  %v2610_v36 = vsub.f32 %v2609_v13, %v1521_v28  ;;  %v2612_v42 = vsub.f32 %v2611_v17, %v1521_v28  ;;  %v553_v18 = vsel %vm425_vm4, %v361_v60, %v489_v16 }
  0x82   :  { %904 = vmatprep.mubr.bf16.mxu1 %v622_v53  ;;  %v555_v11 = vsel %vm427_vm5, %v363_v32, %v491_v10  ;;  %v171_v49 = vsub.f32 %v96_v9, %v1521_v28  ;;  %v173_v19 = vsub.f32 %v98_v61, %v1521_v28  ;;  %vm457_vm6 = vcmp.gt.f32.partialorder %v393_v47, 0.0 }
  0x83   :  { %v214_v26 = vmul.f32 %v1907_v41, %v2610_v36  ;;  %v216_v51 = vmul.f32 %v1907_v41, %v2612_v42  ;;  %v605_v24 = vpack.c.bf16 %v555_v11, %v553_v18  ;;  %vm459_vm7 = vcmp.gt.f32.partialorder %v395_v1, 0.0 }
  0x84   :  { %v521_v14 = vmul.f32 0.2, %v393_v47  ;;  %v523_v37 = vmul.f32 0.2, %v395_v1  ;;  %v246_v3 = vmul.f32 %v1907_v41, %v171_v49  ;;  %v248_v0 = vmul.f32 %v1907_v41, %v173_v19  ;;  %v95_v41 = vld [vmem:[%s2496_s0 + $0x1e0] sm:$0xff] }
  0x85   :  { %v290_v2 = vmul.f32 %v1542_v33, %v214_v26  ;;  %v292_v56 = vmul.f32 %v1542_v33, %v216_v51  ;;  %841 = vmatmul.mubr.bf16.gmra.mrb[24].mxu0 %v605_v24  ;;  %v138_v58 = vsub.f32 %v63_v57, %v1548_v35  ;;  %v140_v7 = vsub.f32 %v65_v54, %v1548_v35 }
  0x86   :  { %v585_v28 = vsel %vm457_vm6, %v393_v47, %v521_v14  ;;  %v587_v38 = vsel %vm459_vm7, %v395_v1, %v523_v37  ;;  %v322_v44 = vmul.f32 %v1542_v33, %v246_v3  ;;  %v324_v27 = vmul.f32 %v1542_v33, %v248_v0 }
  0x87   :  { %v366_v12 = vadd.f32 %v1573_v43, %v290_v2  ;;  %v368_v30 = vadd.f32 %v1573_v43, %v292_v56  ;;  %v621_v45 = vpack.c.bf16 %v587_v38, %v585_v28  ;;  %v213_v20 = vmul.f32 %v1910_v50, %v138_v58 }
  0x88   :  { %v215_v63 = vmul.f32 %v1910_v50, %v140_v7  ;;  %v398_v55 = vadd.f32 %v1573_v43, %v322_v44  ;;  %v400_v33 = vadd.f32 %v1573_v43, %v324_v27  ;;  %v170_v48 = vsub.f32 %v95_v41, %v1548_v35 }
  0x89   :  { %vm430_vm8 = vcmp.gt.f32.partialorder %v366_v12, 0.0  ;;  %vm432_vm9 = vcmp.gt.f32.partialorder %v368_v30, 0.0  ;;  %v494_v4 = vmul.f32 0.2, %v366_v12  ;;  %v496_v6 = vmul.f32 0.2, %v368_v30  ;;  %905 = vmatmul.mubr.bf16.gmra.mrb[24].mxu1 %v621_v45 }
  0x8a   :  { %v289_v62 = vmul.f32 %v1524_v29, %v213_v20  ;;  %v291_v31 = vmul.f32 %v1524_v29, %v215_v63  ;;  %v172_v46 = vsub.f32 %v97_v23, %v1548_v35  ;;  %vm462_vm10 = vcmp.gt.f32.partialorder %v398_v55, 0.0 }
  0x8b   :  { %v558_v21 = vsel %vm430_vm8, %v366_v12, %v494_v4  ;;  %v560_v59 = vsel %vm432_vm9, %v368_v30, %v496_v6  ;;  %vm464_vm11 = vcmp.gt.f32.partialorder %v400_v33, 0.0  ;;  %v526_v8 = vmul.f32 0.2, %v398_v55 }
  0x8c   :  { %v608_v40 = vpack.c.bf16 %v560_v59, %v558_v21  ;;  %v528_v60 = vmul.f32 0.2, %v400_v33  ;;  %v365_v5 = vadd.f32 %v1545_v34, %v289_v62  ;;  %v367_v32 = vadd.f32 %v1545_v34, %v291_v31 }
  0x8d   :  { %v245_v43 = vmul.f32 %v1910_v50, %v170_v48  ;;  %v590_v52 = vsel %vm462_vm10, %v398_v55, %v526_v8  ;;  %v247_v39 = vmul.f32 %v1910_v50, %v172_v46  ;;  %v11_v25 = vstv %s2499_s5 }
  0x8e   :  { %848 = vmatprep.mubr.bf16.mxu0 %v608_v40  ;;  %v592_v35 = vsel %vm464_vm11, %v400_v33, %v528_v60  ;;  %vm429_vm12 = vcmp.gt.f32.partialorder %v365_v5, 0.0  ;;  %vm431_vm13 = vcmp.gt.f32.partialorder %v367_v32, 0.0  ;;  %v493_v15 = vmul.f32 0.2, %v365_v5  ;;  %12 = vst [vmem:[#allocation2] sm:$0x1] %v11_v25 }
  0x8f   :  { %v624_v22 = vpack.c.bf16 %v592_v35, %v590_v52  ;;  %v495_v9 = vmul.f32 0.2, %v367_v32  ;;  %v321_v61 = vmul.f32 %v1524_v29, %v245_v43  ;;  %v323_v53 = vmul.f32 %v1524_v29, %v247_v39 }
  0x90   :  { %v557_v16 = vsel %vm429_vm12, %v365_v5, %v493_v15  ;;  %vm1081_vm0 = vcmask 7168  }
  0x91   :  { %912 = vmatprep.mubr.bf16.mxu1 %v624_v22  ;;  %v559_v10 = vsel %vm431_vm13, %v367_v32, %v495_v9  ;;  %v397_v50 = vadd.f32 %v1545_v34, %v321_v61  ;;  %v399_v47 = vadd.f32 %v1545_v34, %v323_v53 }
  0x92   :  { %v607_v1 = vpack.c.bf16 %v559_v10, %v557_v16 }
  0x93   :  { %vm461_vm14 = vcmp.gt.f32.partialorder %v397_v50, 0.0  ;;  %vm463_vm15 = vcmp.gt.f32.partialorder %v399_v47, 0.0  ;;  %v525_v13 = vmul.f32 0.2, %v397_v50  ;;  %v527_v36 = vmul.f32 0.2, %v399_v47 }
  0x94   :  { %849 = vmatmul.mubr.bf16.gmra.mrb[28].mxu0 %v607_v1 }
  0x95   :  { %v589_v26 = vsel %vm461_vm14, %v397_v50, %v525_v13  ;;  %v591_v17 = vsel %vm463_vm15, %v399_v47, %v527_v36  ;;  %v2332_v29 = vld [vmem:[#allocation2] ss:$0 sm:$0xff] }
  0x96   :  { %v623_v42 = vpack.c.bf16 %v591_v17, %v589_v26 }
  0x98   :  { %913 = vmatmul.mubr.bf16.gmra.mrb[28].mxu1 %v623_v42 }
  0xff   :  { %v1152_v51 = vpop.f32.mrb[0].mxu0 }
 0x100   :  { %v1200_v18 = vpop.f32.mrb[0].mxu1  ;;  %v1153_v11 = vpop.f32.mrb[1].mxu0 }
 0x101   :  { %v1154_v49 = vadd.f32 %v1153_v11, %v1152_v51  ;;  %v1201_v19 = vpop.f32.mrb[1].mxu1  ;;  %v1155_v57 = vpop.f32.mrb[2].mxu0 }
 0x102   :  { %v1202_v54 = vadd.f32 %v1201_v19, %v1200_v18  ;;  %v1203_v34 = vpop.f32.mrb[2].mxu1  ;;  %v1156_v24 = vpop.f32.mrb[3].mxu0 }
 0x103   :  { %v795_v14 = vadd.f32 %v1154_v49, %v2332_v29  ;;  %v1157_v37 = vadd.f32 %v1156_v24, %v1155_v57  ;;  %v1204_v2 = vpop.f32.mrb[3].mxu1 }
 0x104   :  { %v859_v56 = vadd.f32 %v1202_v54, %v2332_v29  ;;  %v1205_v3 = vadd.f32 %v1204_v2, %v1203_v34 }
 0x105   :  { %v921_v28 = vsub.f32 0.0, %v795_v14  ;;  %v798_v0 = vadd.f32 %v1157_v37, %v2332_v29 }
 0x106   :  { %v937_v58 = vsub.f32 0.0, %v859_v56  ;;  %v862_v7 = vadd.f32 %v1205_v3, %v2332_v29 }
 0x107   :  { %v953_v38 = vmul.f32 1.442695, %v921_v28  ;;  %v922_v12 = vsub.f32 0.0, %v798_v0 }
 0x108   :  { %v985_v30 = vmul.f32 1.442695, %v937_v58  ;;  %v938_v44 = vsub.f32 0.0, %v862_v7 }
 0x109   :  { %1282 = vpow2.f32 %v953_v38  ;;  %v955_v45 = vmul.f32 1.442695, %v922_v12 }
 0x10a   :  { %1284 = vpow2.f32 %v985_v30  ;;  %v987_v27 = vmul.f32 1.442695, %v938_v44 }
 0x10b   :  { %1286 = vpow2.f32 %v955_v45 }
 0x10c   :  { %1288 = vpow2.f32 %v987_v27 }
 0x10d   :  { %v1158_v20 = vpop.f32.mrb[4].mxu0 }
 0x10e   :  { %v1159_v63 = vpop.f32.mrb[5].mxu0 }
 0x10f   :  { %v1160_v41 = vadd.f32 %v1159_v63, %v1158_v20  ;;  %v1161_v23 = vpop.f32.mrb[6].mxu0 }
 0x110   :  { %v1162_v4 = vpop.f32.mrb[7].mxu0 }
 0x111   :  { %v803_v55 = vadd.f32 %v1160_v41, %v2332_v29  ;;  %v1163_v33 = vadd.f32 %v1162_v4, %v1161_v23 }
 0x112   :  { %v1206_v6 = vpop.f32.mrb[4].mxu1 }
 0x113   :  { %v1207_v62 = vpop.f32.mrb[5].mxu1  ;;  %v923_v31 = vsub.f32 0.0, %v803_v55  ;;  %v806_v48 = vadd.f32 %v1163_v33, %v2332_v29  ;;  %v1283_v40 = vpop.eup %1282 }
 0x114   :  { %v1208_v21 = vadd.f32 %v1207_v62, %v1206_v6  ;;  %v1209_v59 = vpop.f32.mrb[6].mxu1  ;;  %v1285_v43 = vpop.eup %1284  ;;  %v1017_v52 = vadd.f32 1.0, %v1283_v40 }
 0x115   :  { %v1210_v46 = vpop.f32.mrb[7].mxu1  ;;  %v957_v8 = vmul.f32 1.442695, %v923_v31  ;;  %v924_v5 = vsub.f32 0.0, %v806_v48  ;;  %v1287_v39 = vpop.eup %1286  ;;  %v1033_v25 = vadd.f32 1.0, %v1285_v43 }
 0x116   :  { %v867_v60 = vadd.f32 %v1208_v21, %v2332_v29  ;;  %v1211_v32 = vadd.f32 %v1210_v46, %v1209_v59  ;;  %v1289_v15 = vpop.eup %1288  ;;  %v1018_v22 = vadd.f32 1.0, %v1287_v39 }
 0x117   :  { %1290 = vpow2.f32 %v957_v8  ;;  %v1034_v61 = vadd.f32 1.0, %v1289_v15  ;;  %v959_v16 = vmul.f32 1.442695, %v924_v5 }
 0x118   :  { %v939_v35 = vsub.f32 0.0, %v867_v60  ;;  %1292 = vrcp.f32 %v1017_v52  ;;  %v870_v9 = vadd.f32 %v1211_v32, %v2332_v29 }
 0x119   :  { %1294 = vrcp.f32 %v1033_v25 }
 0x11a   :  { %v989_v53 = vmul.f32 1.442695, %v939_v35  ;;  %1296 = vrcp.f32 %v1018_v22  ;;  %v940_v10 = vsub.f32 0.0, %v870_v9 }
 0x11b   :  { %1298 = vrcp.f32 %v1034_v61 }
 0x11c   :  { %v1164_v50 = vpop.f32.mrb[8].mxu0  ;;  %1300 = vpow2.f32 %v989_v53  ;;  %v991_v1 = vmul.f32 1.442695, %v940_v10 }
 0x11d   :  { %v1165_v47 = vpop.f32.mrb[9].mxu0  ;;  %1302 = vpow2.f32 %v959_v16 }
 0x11e   :  { %v1166_v13 = vadd.f32 %v1165_v47, %v1164_v50  ;;  %v1167_v36 = vpop.f32.mrb[10].mxu0  ;;  %1304 = vpow2.f32 %v991_v1 }
 0x11f   :  { %v1168_v26 = vpop.f32.mrb[11].mxu0 }
 0x120   :  { %v811_v17 = vadd.f32 %v1166_v13, %v2332_v29  ;;  %v1169_v42 = vadd.f32 %v1168_v26, %v1167_v36 }
 0x121   :  { %v1291_v49 = vpop.eup %1290 }
 0x122   :  { %v925_v18 = vsub.f32 0.0, %v811_v17  ;;  %v814_v11 = vadd.f32 %v1169_v42, %v2332_v29  ;;  %v1293_v57 = vpop.eup %1292  ;;  %v1019_v54 = vadd.f32 1.0, %v1291_v49 }
 0x123   :  { %v1212_v51 = vpop.f32.mrb[8].mxu1  ;;  %v1295_v2 = vpop.eup %1294  ;;  %1082 = vst.msk [vmem:[%s2500_s6] sm:$0xff] %vm1081_vm0, %v1293_v57 }
 0x124   :  { %v1213_v19 = vpop.f32.mrb[9].mxu1  ;;  %v961_v34 = vmul.f32 1.442695, %v925_v18  ;;  %v926_v37 = vsub.f32 0.0, %v814_v11  ;;  %v1297_v3 = vpop.eup %1296  ;;  %1098 = vst.msk [vmem:[%s2500_s6 + $0x80] sm:$0xff] %vm1081_vm0, %v1295_v2  ;;  %1306 = vrcp.f32 %v1019_v54 }
 0x125   :  { %v1214_v24 = vadd.f32 %v1213_v19, %v1212_v51  ;;  %v1215_v14 = vpop.f32.mrb[10].mxu1  ;;  %v1299_v7 = vpop.eup %1298  ;;  %1083 = vst.msk [vmem:[%s2500_s6 + $0x8] sm:$0xff] %vm1081_vm0, %v1297_v3 }
 0x126   :  { %v1216_v56 = vpop.f32.mrb[11].mxu1  ;;  %v963_v0 = vmul.f32 1.442695, %v926_v37  ;;  %1308 = vpow2.f32 %v961_v34  ;;  %v1301_v38 = vpop.eup %1300  ;;  %1099 = vst.msk [vmem:[%s2500_s6 + $0x88] sm:$0xff] %vm1081_vm0, %v1299_v7 }
 0x127   :  { %v875_v28 = vadd.f32 %v1214_v24, %v2332_v29  ;;  %v1217_v58 = vadd.f32 %v1216_v56, %v1215_v14  ;;  %v1303_v44 = vpop.eup %1302  ;;  %v1035_v45 = vadd.f32 1.0, %v1301_v38 }
 0x128   :  { %1310 = vpow2.f32 %v963_v0  ;;  %v1305_v27 = vpop.eup %1304  ;;  %v1020_v20 = vadd.f32 1.0, %v1303_v44 }
 0x129   :  { %v941_v12 = vsub.f32 0.0, %v875_v28  ;;  %v878_v30 = vadd.f32 %v1217_v58, %v2332_v29  ;;  %1312 = vrcp.f32 %v1035_v45  ;;  %v1036_v23 = vadd.f32 1.0, %v1305_v27 }
 0x12a   :  { %1314 = vrcp.f32 %v1020_v20 }
 0x12b   :  { %v993_v63 = vmul.f32 1.442695, %v941_v12  ;;  %v942_v41 = vsub.f32 0.0, %v878_v30  ;;  %1316 = vrcp.f32 %v1036_v23 }
 0x12d   :  { %v995_v6 = vmul.f32 1.442695, %v942_v41  ;;  %1318 = vpow2.f32 %v993_v63 }
 0x12e   :  { %v1170_v4 = vpop.f32.mrb[12].mxu0  ;;  %v1307_v40 = vpop.eup %1306 }
 0x12f   :  { %v1171_v55 = vpop.f32.mrb[13].mxu0  ;;  %1320 = vpow2.f32 %v995_v6  ;;  %1084 = vst.msk [vmem:[%s2500_s6 + $0x10] sm:$0xff] %vm1081_vm0, %v1307_v40 }
 0x130   :  { %v1172_v33 = vadd.f32 %v1171_v55, %v1170_v4  ;;  %v1173_v62 = vpop.f32.mrb[14].mxu0  ;;  %v1309_v5 = vpop.eup %1308 }
 0x131   :  { %v1218_v31 = vpop.f32.mrb[12].mxu1  ;;  %v1174_v21 = vpop.f32.mrb[15].mxu0  ;;  %v1021_v25 = vadd.f32 1.0, %v1309_v5 }
 0x132   :  { %v819_v59 = vadd.f32 %v1172_v33, %v2332_v29  ;;  %v1219_v48 = vpop.f32.mrb[13].mxu1  ;;  %v1175_v46 = vadd.f32 %v1174_v21, %v1173_v62  ;;  %v1311_v39 = vpop.eup %1310 }
 0x133   :  { %v1220_v8 = vadd.f32 %v1219_v48, %v1218_v31  ;;  %v1221_v60 = vpop.f32.mrb[14].mxu1  ;;  %v1022_v22 = vadd.f32 1.0, %v1311_v39  ;;  %1322 = vrcp.f32 %v1021_v25  ;;  %v1313_v10 = vpop.eup %1312 }
 0x134   :  { %v927_v32 = vsub.f32 0.0, %v819_v59  ;;  %v822_v43 = vadd.f32 %v1175_v46, %v2332_v29  ;;  %v1222_v52 = vpop.f32.mrb[15].mxu1  ;;  %v1315_v47 = vpop.eup %1314  ;;  %1100 = vst.msk [vmem:[%s2500_s6 + $0x90] sm:$0xff] %vm1081_vm0, %v1313_v10 }
 0x135   :  { %v883_v35 = vadd.f32 %v1220_v8, %v2332_v29  ;;  %v1223_v15 = vadd.f32 %v1222_v52, %v1221_v60  ;;  %1324 = vrcp.f32 %v1022_v22  ;;  %v1317_v36 = vpop.eup %1316  ;;  %1085 = vst.msk [vmem:[%s2500_s6 + $0x18] sm:$0xff] %vm1081_vm0, %v1315_v47 }
 0x136   :  { %v965_v9 = vmul.f32 1.442695, %v927_v32  ;;  %v928_v61 = vsub.f32 0.0, %v822_v43  ;;  %1101 = vst.msk [vmem:[%s2500_s6 + $0x98] sm:$0xff] %vm1081_vm0, %v1317_v36 }
 0x137   :  { %v943_v53 = vsub.f32 0.0, %v883_v35  ;;  %v886_v16 = vadd.f32 %v1223_v15, %v2332_v29  ;;  %v1319_v17 = vpop.eup %1318 }
 0x138   :  { %v967_v50 = vmul.f32 1.442695, %v928_v61  ;;  %1326 = vpow2.f32 %v965_v9  ;;  %v1037_v11 = vadd.f32 1.0, %v1319_v17 }
 0x139   :  { %v997_v1 = vmul.f32 1.442695, %v943_v53  ;;  %v944_v13 = vsub.f32 0.0, %v886_v16  ;;  %v1321_v18 = vpop.eup %1320 }
 0x13a   :  { %1328 = vpow2.f32 %v967_v50  ;;  %v1038_v57 = vadd.f32 1.0, %v1321_v18 }
 0x13b   :  { %v1176_v26 = vpop.f32.mrb[16].mxu0  ;;  %1330 = vpow2.f32 %v997_v1  ;;  %v999_v42 = vmul.f32 1.442695, %v944_v13 }
 0x13c   :  { %v1177_v51 = vpop.f32.mrb[17].mxu0 }
 0x13d   :  { %v1178_v49 = vadd.f32 %v1177_v51, %v1176_v26  ;;  %v1179_v19 = vpop.f32.mrb[18].mxu0  ;;  %1332 = vpow2.f32 %v999_v42  ;;  %v1323_v58 = vpop.eup %1322 }
 0x13e   :  { %v1180_v34 = vpop.f32.mrb[19].mxu0  ;;  %1334 = vrcp.f32 %v1037_v11  ;;  %1086 = vst.msk [vmem:[%s2500_s6 + $0x20] sm:$0xff] %vm1081_vm0, %v1323_v58 }
 0x13f   :  { %v1224_v54 = vpop.f32.mrb[16].mxu1  ;;  %v827_v24 = vadd.f32 %v1178_v49, %v2332_v29  ;;  %v1181_v37 = vadd.f32 %v1180_v34, %v1179_v19  ;;  %1336 = vrcp.f32 %v1038_v57  ;;  %v1325_v12 = vpop.eup %1324 }
 0x140   :  { %v1225_v14 = vpop.f32.mrb[17].mxu1  ;;  %1087 = vst.msk [vmem:[%s2500_s6 + $0x28] sm:$0xff] %vm1081_vm0, %v1325_v12 }
 0x141   :  { %v1226_v2 = vadd.f32 %v1225_v14, %v1224_v54  ;;  %v1227_v56 = vpop.f32.mrb[18].mxu1  ;;  %v929_v3 = vsub.f32 0.0, %v827_v24  ;;  %v830_v28 = vadd.f32 %v1181_v37, %v2332_v29 }
 0x142   :  { %v1228_v0 = vpop.f32.mrb[19].mxu1  ;;  %v1327_v44 = vpop.eup %1326 }
 0x143   :  { %v891_v7 = vadd.f32 %v1226_v2, %v2332_v29  ;;  %v1229_v38 = vadd.f32 %v1228_v0, %v1227_v56  ;;  %v969_v30 = vmul.f32 1.442695, %v929_v3  ;;  %v930_v27 = vsub.f32 0.0, %v830_v28 }
 0x144   :  { %v1329_v63 = vpop.eup %1328  ;;  %v1023_v41 = vadd.f32 1.0, %v1327_v44 }
 0x145   :  { %v945_v45 = vsub.f32 0.0, %v891_v7  ;;  %v894_v20 = vadd.f32 %v1229_v38, %v2332_v29  ;;  %1338 = vpow2.f32 %v969_v30  ;;  %v1331_v23 = vpop.eup %1330  ;;  %v1024_v4 = vadd.f32 1.0, %v1329_v63 }
 0x146   :  { %1340 = vrcp.f32 %v1023_v41  ;;  %v1039_v33 = vadd.f32 1.0, %v1331_v23  ;;  %v971_v31 = vmul.f32 1.442695, %v930_v27 }
 0x147   :  { %v1001_v6 = vmul.f32 1.442695, %v945_v45  ;;  %v946_v55 = vsub.f32 0.0, %v894_v20  ;;  %v1333_v62 = vpop.eup %1332  ;;  %1342 = vrcp.f32 %v1024_v4 }
 0x148   :  { %v1335_v59 = vpop.eup %1334  ;;  %1344 = vrcp.f32 %v1039_v33  ;;  %v1040_v48 = vadd.f32 1.0, %v1333_v62 }
 0x149   :  { %v1003_v46 = vmul.f32 1.442695, %v946_v55  ;;  %v1337_v60 = vpop.eup %1336  ;;  %1102 = vst.msk [vmem:[%s2500_s6 + $0xa0] sm:$0xff] %vm1081_vm0, %v1335_v59  ;;  %1346 = vpow2.f32 %v1001_v6 }
 0x14a   :  { %1103 = vst.msk [vmem:[%s2500_s6 + $0xa8] sm:$0xff] %vm1081_vm0, %v1337_v60  ;;  %1348 = vrcp.f32 %v1040_v48 }
 0x14b   :  { %v1182_v21 = vpop.f32.mrb[20].mxu0  ;;  %1350 = vpow2.f32 %v971_v31 }
 0x14c   :  { %v1230_v40 = vpop.f32.mrb[20].mxu1  ;;  %v1183_v8 = vpop.f32.mrb[21].mxu0  ;;  %1352 = vpow2.f32 %v1003_v46 }
 0x14d   :  { %v1184_v5 = vadd.f32 %v1183_v8, %v1182_v21  ;;  %v1231_v32 = vpop.f32.mrb[21].mxu1  ;;  %v1185_v43 = vpop.f32.mrb[22].mxu0 }
 0x14e   :  { %v1232_v52 = vadd.f32 %v1231_v32, %v1230_v40  ;;  %v1233_v39 = vpop.f32.mrb[22].mxu1  ;;  %v1186_v25 = vpop.f32.mrb[23].mxu0 }
 0x14f   :  { %v835_v35 = vadd.f32 %v1184_v5, %v2332_v29  ;;  %v1187_v15 = vadd.f32 %v1186_v25, %v1185_v43  ;;  %v1234_v22 = vpop.f32.mrb[23].mxu1  ;;  %v1339_v10 = vpop.eup %1338 }
 0x150   :  { %v899_v9 = vadd.f32 %v1232_v52, %v2332_v29  ;;  %v1235_v61 = vadd.f32 %v1234_v22, %v1233_v39  ;;  %v1025_v1 = vadd.f32 1.0, %v1339_v10  ;;  %v1341_v26 = vpop.eup %1340 }
 0x151   :  { %v931_v53 = vsub.f32 0.0, %v835_v35  ;;  %v838_v16 = vadd.f32 %v1187_v15, %v2332_v29  ;;  %v1343_v51 = vpop.eup %1342  ;;  %1088 = vst.msk [vmem:[%s2500_s6 + $0x30] sm:$0xff] %vm1081_vm0, %v1341_v26 }
 0x152   :  { %v947_v50 = vsub.f32 0.0, %v899_v9  ;;  %v902_v47 = vadd.f32 %v1235_v61, %v2332_v29  ;;  %1354 = vrcp.f32 %v1025_v1  ;;  %v1345_v11 = vpop.eup %1344  ;;  %1089 = vst.msk [vmem:[%s2500_s6 + $0x38] sm:$0xff] %vm1081_vm0, %v1343_v51 }
 0x153   :  { %v973_v13 = vmul.f32 1.442695, %v931_v53  ;;  %v932_v36 = vsub.f32 0.0, %v838_v16  ;;  %v1347_v19 = vpop.eup %1346  ;;  %1104 = vst.msk [vmem:[%s2500_s6 + $0xb0] sm:$0xff] %vm1081_vm0, %v1345_v11 }
 0x154   :  { %v1005_v17 = vmul.f32 1.442695, %v947_v50  ;;  %v948_v42 = vsub.f32 0.0, %v902_v47  ;;  %v1349_v54 = vpop.eup %1348  ;;  %v1041_v34 = vadd.f32 1.0, %v1347_v19 }
 0x155   :  { %v975_v18 = vmul.f32 1.442695, %v932_v36  ;;  %1356 = vpow2.f32 %v973_v13  ;;  %v1351_v14 = vpop.eup %1350  ;;  %1105 = vst.msk [vmem:[%s2500_s6 + $0xb8] sm:$0xff] %vm1081_vm0, %v1349_v54 }
 0x156   :  { %v1007_v49 = vmul.f32 1.442695, %v948_v42  ;;  %1358 = vpow2.f32 %v1005_v17  ;;  %v1353_v56 = vpop.eup %1352  ;;  %v1026_v3 = vadd.f32 1.0, %v1351_v14 }
 0x157   :  { %1360 = vpow2.f32 %v975_v18  ;;  %v1042_v0 = vadd.f32 1.0, %v1353_v56 }
 0x158   :  { %v1188_v57 = vpop.f32.mrb[24].mxu0  ;;  %1362 = vpow2.f32 %v1007_v49 }
 0x159   :  { %v1189_v24 = vpop.f32.mrb[25].mxu0  ;;  %1364 = vrcp.f32 %v1041_v34 }
 0x15a   :  { %v1190_v37 = vadd.f32 %v1189_v24, %v1188_v57  ;;  %v1191_v2 = vpop.f32.mrb[26].mxu0  ;;  %1366 = vrcp.f32 %v1026_v3 }
 0x15b   :  { %v1192_v28 = vpop.f32.mrb[27].mxu0  ;;  %1368 = vrcp.f32 %v1042_v0 }
 0x15c   :  { %v1236_v58 = vpop.f32.mrb[24].mxu1  ;;  %v843_v7 = vadd.f32 %v1190_v37, %v2332_v29  ;;  %v1193_v38 = vadd.f32 %v1192_v28, %v1191_v2  ;;  %v1355_v63 = vpop.eup %1354 }
 0x15d   :  { %v1237_v12 = vpop.f32.mrb[25].mxu1  ;;  %1090 = vst.msk [vmem:[%s2500_s6 + $0x40] sm:$0xff] %vm1081_vm0, %v1355_v63 }
 0x15e   :  { %v933_v30 = vsub.f32 0.0, %v843_v7  ;;  %v1238_v44 = vadd.f32 %v1237_v12, %v1236_v58  ;;  %v1239_v45 = vpop.f32.mrb[26].mxu1  ;;  %v846_v27 = vadd.f32 %v1193_v38, %v2332_v29 }
 0x15f   :  { %v1240_v20 = vpop.f32.mrb[27].mxu1  ;;  %v1357_v6 = vpop.eup %1356 }
 0x160   :  { %v977_v41 = vmul.f32 1.442695, %v933_v30  ;;  %v907_v23 = vadd.f32 %v1238_v44, %v2332_v29  ;;  %v1241_v4 = vadd.f32 %v1240_v20, %v1239_v45  ;;  %v934_v55 = vsub.f32 0.0, %v846_v27  ;;  %v1359_v33 = vpop.eup %1358 }
 0x161   :  { %v1027_v62 = vadd.f32 1.0, %v1357_v6  ;;  %v1361_v21 = vpop.eup %1360  ;;  %v1043_v59 = vadd.f32 1.0, %v1359_v33 }
 0x162   :  { %1370 = vpow2.f32 %v977_v41  ;;  %v949_v31 = vsub.f32 0.0, %v907_v23  ;;  %v910_v48 = vadd.f32 %v1241_v4, %v2332_v29  ;;  %v1363_v46 = vpop.eup %1362  ;;  %v1028_v40 = vadd.f32 1.0, %v1361_v21 }
 0x163   :  { %1372 = vrcp.f32 %v1027_v62  ;;  %v1365_v60 = vpop.eup %1364  ;;  %v1044_v5 = vadd.f32 1.0, %v1363_v46  ;;  %v979_v32 = vmul.f32 1.442695, %v934_v55 }
 0x164   :  { %v1009_v8 = vmul.f32 1.442695, %v949_v31  ;;  %1374 = vrcp.f32 %v1043_v59  ;;  %v950_v43 = vsub.f32 0.0, %v910_v48  ;;  %1106 = vst.msk [vmem:[%s2500_s6 + $0xc0] sm:$0xff] %vm1081_vm0, %v1365_v60  ;;  %v1367_v52 = vpop.eup %1366 }
 0x165   :  { %1376 = vrcp.f32 %v1028_v40  ;;  %v1369_v35 = vpop.eup %1368  ;;  %1091 = vst.msk [vmem:[%s2500_s6 + $0x48] sm:$0xff] %vm1081_vm0, %v1367_v52 }
 0x166   :  { %1378 = vrcp.f32 %v1044_v5  ;;  %v1011_v39 = vmul.f32 1.442695, %v950_v43  ;;  %1107 = vst.msk [vmem:[%s2500_s6 + $0xc8] sm:$0xff] %vm1081_vm0, %v1369_v35 }
 0x167   :  { %v1194_v25 = vpop.f32.mrb[28].mxu0  ;;  %1380 = vpow2.f32 %v1009_v8 }
 0x168   :  { %v1195_v15 = vpop.f32.mrb[29].mxu0  ;;  %1382 = vpow2.f32 %v979_v32 }
 0x169   :  { %v1196_v22 = vadd.f32 %v1195_v15, %v1194_v25  ;;  %v1197_v9 = vpop.f32.mrb[30].mxu0  ;;  %1384 = vpow2.f32 %v1011_v39 }
 0x16a   :  { %v1198_v61 = vpop.f32.mrb[31].mxu0 }
 0x16b   :  { %v1242_v53 = vpop.f32.mrb[28].mxu1  ;;  %v851_v16 = vadd.f32 %v1196_v22, %v2332_v29  ;;  %v1199_v10 = vadd.f32 %v1198_v61, %v1197_v9 }
 0x16c   :  { %v1371_v50 = vpop.eup %1370  ;;  %v1243_v47 = vpop.f32.mrb[29].mxu1 }
 0x16d   :  { %v1029_v1 = vadd.f32 1.0, %v1371_v50  ;;  %v935_v13 = vsub.f32 0.0, %v851_v16  ;;  %v1244_v36 = vadd.f32 %v1243_v47, %v1242_v53  ;;  %v1245_v26 = vpop.f32.mrb[30].mxu1  ;;  %v854_v17 = vadd.f32 %v1199_v10, %v2332_v29  ;;  %v1373_v42 = vpop.eup %1372 }
 0x16e   :  { %v1246_v51 = vpop.f32.mrb[31].mxu1  ;;  %v1375_v18 = vpop.eup %1374  ;;  %1092 = vst.msk [vmem:[%s2500_s6 + $0x50] sm:$0xff] %vm1081_vm0, %v1373_v42 }
 0x16f   :  { %1386 = vrcp.f32 %v1029_v1  ;;  %v981_v11 = vmul.f32 1.442695, %v935_v13  ;;  %v915_v49 = vadd.f32 %v1244_v36, %v2332_v29  ;;  %v936_v19 = vsub.f32 0.0, %v854_v17  ;;  %v1377_v57 = vpop.eup %1376  ;;  %1108 = vst.msk [vmem:[%s2500_s6 + $0xd0] sm:$0xff] %vm1081_vm0, %v1375_v18 }
 0x170   :  { %v1247_v54 = vadd.f32 %v1246_v51, %v1245_v26  ;;  %v1379_v34 = vpop.eup %1378  ;;  %1093 = vst.msk [vmem:[%s2500_s6 + $0x58] sm:$0xff] %vm1081_vm0, %v1377_v57 }
 0x171   :  { %1388 = vpow2.f32 %v981_v11  ;;  %v951_v24 = vsub.f32 0.0, %v915_v49  ;;  %v983_v14 = vmul.f32 1.442695, %v936_v19  ;;  %v1381_v37 = vpop.eup %1380  ;;  %1109 = vst.msk [vmem:[%s2500_s6 + $0xd8] sm:$0xff] %vm1081_vm0, %v1379_v34 }
 0x172   :  { %v918_v2 = vadd.f32 %v1247_v54, %v2332_v29  ;;  %v1383_v56 = vpop.eup %1382  ;;  %v1045_v3 = vadd.f32 1.0, %v1381_v37 }
 0x173   :  { %1390 = vpow2.f32 %v983_v14  ;;  %v1385_v28 = vpop.eup %1384  ;;  %v1030_v0 = vadd.f32 1.0, %v1383_v56  ;;  %v1013_v58 = vmul.f32 1.442695, %v951_v24 }
 0x174   :  { %v952_v7 = vsub.f32 0.0, %v918_v2  ;;  %1392 = vrcp.f32 %v1045_v3  ;;  %v1046_v38 = vadd.f32 1.0, %v1385_v28 }
 0x175   :  { %1394 = vrcp.f32 %v1030_v0 }
 0x176   :  { %v1015_v12 = vmul.f32 1.442695, %v952_v7  ;;  %1396 = vrcp.f32 %v1046_v38 }
 0x177   :  { %1398 = vpow2.f32 %v1013_v58 }
 0x178   :  { %1400 = vpow2.f32 %v1015_v12 }
 0x179   :  { %v1387_v30 = vpop.eup %1386 }
 0x17a   :  { %1094 = vst.msk [vmem:[%s2500_s6 + $0x60] sm:$0xff] %vm1081_vm0, %v1387_v30 }
 0x17b   :  { %v1389_v29 = vpop.eup %1388 }
 0x17c   :  { %v1031_v44 = vadd.f32 1.0, %v1389_v29 }
 0x17d   :  { %v1391_v45 = vpop.eup %1390 }
 0x17e   :  { %1402 = vrcp.f32 %v1031_v44  ;;  %v1032_v27 = vadd.f32 1.0, %v1391_v45  ;;  %v1393_v20 = vpop.eup %1392 }
 0x17f   :  { %v1395_v63 = vpop.eup %1394  ;;  %1110 = vst.msk [vmem:[%s2500_s6 + $0xe0] sm:$0xff] %vm1081_vm0, %v1393_v20 }
 0x180   :  { %1404 = vrcp.f32 %v1032_v27  ;;  %v1397_v41 = vpop.eup %1396  ;;  %1095 = vst.msk [vmem:[%s2500_s6 + $0x68] sm:$0xff] %vm1081_vm0, %v1395_v63 }
 0x181   :  { %v1399_v23 = vpop.eup %1398  ;;  %1111 = vst.msk [vmem:[%s2500_s6 + $0xe8] sm:$0xff] %vm1081_vm0, %v1397_v41 }
 0x182   :  { %v1401_v4 = vpop.eup %1400  ;;  %v1047_v6 = vadd.f32 1.0, %v1399_v23 }
 0x183   :  { %v1048_v55 = vadd.f32 1.0, %v1401_v4 }
 0x184   :  { %1406 = vrcp.f32 %v1047_v6 }
 0x185   :  { %1408 = vrcp.f32 %v1048_v55 }
 0x188   :  { %v1403_v33 = vpop.eup %1402 }
 0x189   :  { %1096 = vst.msk [vmem:[%s2500_s6 + $0x70] sm:$0xff] %vm1081_vm0, %v1403_v33 }
 0x18a   :  { %v1405_v62 = vpop.eup %1404 }
 0x18b   :  { %1097 = vst.msk [vmem:[%s2500_s6 + $0x78] sm:$0xff] %vm1081_vm0, %v1405_v62 }
 0x18e   :  { %v1407_v31 = vpop.eup %1406 }
 0x18f   :  { %v1409_v21 = vpop.eup %1408  ;;  %1112 = vst.msk [vmem:[%s2500_s6 + $0xf0] sm:$0xff] %vm1081_vm0, %v1407_v31 }
 0x190   :  { %1113 = vst.msk [vmem:[%s2500_s6 + $0xf8] sm:$0xff] %vm1081_vm0, %v1409_v21 }

// kernel: discriminator_forward.2
= control target key start
LH: loop header
LB: loop body
LE: loop exit
PB: predicated region body
PF: predicated region fallthrough
CT: control target
= control target key end

     0   :  { %s9521_s1 = inlined_call_operand.vmem [shape: bf16[1024,512], index: 1, kind: input, shape index: {}]   ;;  %s9522_s0 = inlined_call_operand.vmem [shape: bf16[256,1024], index: 0, kind: input, shape index: {}]   ;;  %s9523_s3 = inlined_call_operand.vmem [shape: bf16[512,256], index: 3, kind: input, shape index: {}]   ;;  %s9524_s2 = inlined_call_operand.vmem [shape: f32[1,512], index: 2, kind: input, shape index: {}]   ;;  %s9525_s4 = inlined_call_operand.vmem [shape: f32[1,256], index: 4, kind: input, shape index: {}]   ;;  %s9526_s5 = inlined_call_operand.vmem [shape: f32[256,256], index: 5, kind: output, shape index: {0}]   ;;  %s9527_s6 = inlined_call_operand.vmem [shape: f32[2,256], index: 6, kind: output, shape index: {1}]  }
   0x1   :  { %v6518_v0 = vld [vmem:[%s9521_s1 + $0x4] ss:$16 sps:$4 sm:$0xff]   ;;  %v6522_v2 = vld [vmem:[%s9521_s1] ss:$16 sps:$4 sm:$0xff]   ;;  %v28_v49 = vld [vmem:[%s9522_s0 + $0x8] sm:$0xff] }
   0x2   :  { %v6520_v1 = vld [vmem:[%s9521_s1 + $0x204] ss:$16 sps:$4 sm:$0xff]   ;;  %2353 = vmatprep.subr.bf16.mxu1 %v6518_v0  ;;  %v6523_v3 = vld [vmem:[%s9521_s1 + $0x200] ss:$16 sps:$4 sm:$0xff]   ;;  %v32_v50 = vld [vmem:[%s9522_s0 + $0x28] sm:$0xff] }
   0x3   :  { %2546 = vmatprep.subr.bf16.mxu0 %v6520_v1  ;;  %v6524_v4 = vld [vmem:[%s9521_s1 + $0x24] ss:$16 sps:$4 sm:$0xff]   ;;  %2354 = vmatpush1.bf16.msra.mxu1 %v6522_v2  ;;  %v6528_v6 = vld [vmem:[%s9521_s1 + $0x20] ss:$16 sps:$4 sm:$0xff]   ;;  %v7200_v55 = vcombine.high %v28_v49, %v32_v50 }
   0x4   :  { %2547 = vmatpush1.bf16.msra.mxu0 %v6523_v3  ;;  %v6526_v5 = vld [vmem:[%s9521_s1 + $0x224] ss:$16 sps:$4 sm:$0xff]   ;;  %2355 = vmatprep.subr.bf16.mxu1 %v6524_v4  ;;  %v6529_v7 = vld [vmem:[%s9521_s1 + $0x220] ss:$16 sps:$4 sm:$0xff]  }
   0x5   :  { %2548 = vmatprep.subr.bf16.mxu0 %v6526_v5  ;;  %v6530_v8 = vld [vmem:[%s9521_s1 + $0x44] ss:$16 sps:$4 sm:$0xff]   ;;  %v6534_v10 = vld [vmem:[%s9521_s1 + $0x40] ss:$16 sps:$4 sm:$0xff]   ;;  %2578 = vmatprep.mubr.bf16.mxu0 %v7200_v55 }
   0x6   :  { %v6532_v9 = vld [vmem:[%s9521_s1 + $0x244] ss:$16 sps:$4 sm:$0xff]   ;;  %v6535_v11 = vld [vmem:[%s9521_s1 + $0x240] ss:$16 sps:$4 sm:$0xff]  }
   0x7   :  { %2356 = vmatpush1.bf16.msra.mxu1 %v6528_v6  ;;  %v6536_v12 = vld [vmem:[%s9521_s1 + $0x64] ss:$16 sps:$4 sm:$0xff]   ;;  %v6540_v14 = vld [vmem:[%s9521_s1 + $0x60] ss:$16 sps:$4 sm:$0xff]   ;;  %v6616_v6 = vld [vmem:[%s9521_s1 + $0xc] ss:$16 sps:$4 sm:$0xff]  }
   0x8   :  { %2549 = vmatpush1.bf16.msra.mxu0 %v6529_v7  ;;  %2357 = vmatprep.subr.bf16.mxu1 %v6530_v8  ;;  %v6538_v13 = vld [vmem:[%s9521_s1 + $0x264] ss:$16 sps:$4 sm:$0xff]   ;;  %v6541_v15 = vld [vmem:[%s9521_s1 + $0x260] ss:$16 sps:$4 sm:$0xff]  }
   0x9   :  { %2550 = vmatprep.subr.bf16.mxu0 %v6532_v9  ;;  %v6542_v16 = vld [vmem:[%s9521_s1 + $0x84] ss:$16 sps:$4 sm:$0xff]   ;;  %v6546_v18 = vld [vmem:[%s9521_s1 + $0x80] ss:$16 sps:$4 sm:$0xff]   ;;  %v36_v9 = vld [vmem:[%s9522_s0 + $0x48] sm:$0xff] }
   0xa   :  { %v6544_v17 = vld [vmem:[%s9521_s1 + $0x284] ss:$16 sps:$4 sm:$0xff]   ;;  %v6547_v19 = vld [vmem:[%s9521_s1 + $0x280] ss:$16 sps:$4 sm:$0xff]  }
   0xb   :  { %2358 = vmatpush1.bf16.msra.mxu1 %v6534_v10  ;;  %v6548_v20 = vld [vmem:[%s9521_s1 + $0xa4] ss:$16 sps:$4 sm:$0xff]   ;;  %v6552_v22 = vld [vmem:[%s9521_s1 + $0xa0] ss:$16 sps:$4 sm:$0xff]   ;;  %v40_v10 = vld [vmem:[%s9522_s0 + $0x68] sm:$0xff] }
   0xc   :  { %2551 = vmatpush1.bf16.msra.mxu0 %v6535_v11  ;;  %2359 = vmatprep.subr.bf16.mxu1 %v6536_v12  ;;  %v6550_v21 = vld [vmem:[%s9521_s1 + $0x2a4] ss:$16 sps:$4 sm:$0xff]   ;;  %v6553_v23 = vld [vmem:[%s9521_s1 + $0x2a0] ss:$16 sps:$4 sm:$0xff]   ;;  %v7263_v12 = vcombine.low %v28_v49, %v32_v50 }
   0xd   :  { %2552 = vmatprep.subr.bf16.mxu0 %v6538_v13  ;;  %v6554_v24 = vld [vmem:[%s9521_s1 + $0xc4] ss:$16 sps:$4 sm:$0xff]   ;;  %v6558_v26 = vld [vmem:[%s9521_s1 + $0xc0] ss:$16 sps:$4 sm:$0xff]   ;;  %v6614_v13 = vld [vmem:[%s9521_s1 + $0x8] ss:$16 sps:$4 sm:$0xff]  }
   0xe   :  { %v6556_v25 = vld [vmem:[%s9521_s1 + $0x2c4] ss:$16 sps:$4 sm:$0xff]   ;;  %v6559_v27 = vld [vmem:[%s9521_s1 + $0x2c0] ss:$16 sps:$4 sm:$0xff]  }
   0xf   :  { %2360 = vmatpush1.bf16.msra.mxu1 %v6540_v14  ;;  %v6560_v28 = vld [vmem:[%s9521_s1 + $0xe4] ss:$16 sps:$4 sm:$0xff]   ;;  %v6564_v30 = vld [vmem:[%s9521_s1 + $0xe0] ss:$16 sps:$4 sm:$0xff]  }
  0x10   :  { %2553 = vmatpush1.bf16.msra.mxu0 %v6541_v15  ;;  %2361 = vmatprep.subr.bf16.mxu1 %v6542_v16  ;;  %v6562_v29 = vld [vmem:[%s9521_s1 + $0x2e4] ss:$16 sps:$4 sm:$0xff]   ;;  %v6565_v31 = vld [vmem:[%s9521_s1 + $0x2e0] ss:$16 sps:$4 sm:$0xff]   ;;  %v7270_v15 = vcombine.high %v36_v9, %v40_v10  ;;  %v6619_v16 = vld [vmem:[%s9521_s1 + $0x2c] ss:$16 sps:$4 sm:$0xff]  }
  0x11   :  { %2554 = vmatprep.subr.bf16.mxu0 %v6544_v17  ;;  %v6566_v32 = vld [vmem:[%s9521_s1 + $0x104] ss:$16 sps:$4 sm:$0xff]   ;;  %v6570_v34 = vld [vmem:[%s9521_s1 + $0x100] ss:$16 sps:$4 sm:$0xff]   ;;  %v6617_v17 = vld [vmem:[%s9521_s1 + $0x28] ss:$16 sps:$4 sm:$0xff]  }
  0x12   :  { %v6568_v33 = vld [vmem:[%s9521_s1 + $0x304] ss:$16 sps:$4 sm:$0xff]   ;;  %v6571_v35 = vld [vmem:[%s9521_s1 + $0x300] ss:$16 sps:$4 sm:$0xff]  }
  0x13   :  { %2362 = vmatpush1.bf16.msra.mxu1 %v6546_v18  ;;  %v6572_v36 = vld [vmem:[%s9521_s1 + $0x124] ss:$16 sps:$4 sm:$0xff]   ;;  %v6576_v38 = vld [vmem:[%s9521_s1 + $0x120] ss:$16 sps:$4 sm:$0xff]  }
  0x14   :  { %2555 = vmatpush1.bf16.msra.mxu0 %v6547_v19  ;;  %2363 = vmatprep.subr.bf16.mxu1 %v6548_v20  ;;  %v6574_v37 = vld [vmem:[%s9521_s1 + $0x324] ss:$16 sps:$4 sm:$0xff]   ;;  %v6577_v39 = vld [vmem:[%s9521_s1 + $0x320] ss:$16 sps:$4 sm:$0xff]  }
  0x15   :  { %2556 = vmatprep.subr.bf16.mxu0 %v6550_v21  ;;  %v6578_v40 = vld [vmem:[%s9521_s1 + $0x144] ss:$16 sps:$4 sm:$0xff]   ;;  %v6582_v42 = vld [vmem:[%s9521_s1 + $0x140] ss:$16 sps:$4 sm:$0xff]  }
  0x16   :  { %v6580_v41 = vld [vmem:[%s9521_s1 + $0x344] ss:$16 sps:$4 sm:$0xff]   ;;  %v6583_v43 = vld [vmem:[%s9521_s1 + $0x340] ss:$16 sps:$4 sm:$0xff]  }
  0x17   :  { %2364 = vmatpush1.bf16.msra.mxu1 %v6552_v22  ;;  %v6584_v44 = vld [vmem:[%s9521_s1 + $0x164] ss:$16 sps:$4 sm:$0xff]   ;;  %v6588_v46 = vld [vmem:[%s9521_s1 + $0x160] ss:$16 sps:$4 sm:$0xff]   ;;  %v44_v22 = vld [vmem:[%s9522_s0 + $0x88] sm:$0xff] }
  0x18   :  { %2557 = vmatpush1.bf16.msra.mxu0 %v6553_v23  ;;  %2365 = vmatprep.subr.bf16.mxu1 %v6554_v24  ;;  %v6586_v45 = vld [vmem:[%s9521_s1 + $0x364] ss:$16 sps:$4 sm:$0xff]   ;;  %v6589_v51 = vld [vmem:[%s9521_s1 + $0x360] ss:$16 sps:$4 sm:$0xff]   ;;  %v48_v23 = vld [vmem:[%s9522_s0 + $0xa8] sm:$0xff] }
  0x19   :  { %2558 = vmatprep.subr.bf16.mxu0 %v6556_v25  ;;  %v27_v47 = vld [vmem:[%s9522_s0] sm:$0xff]  ;;  %v6622_v24 = vld [vmem:[%s9521_s1 + $0x4c] ss:$16 sps:$4 sm:$0xff]  }
  0x1a   :  { %v31_v48 = vld [vmem:[%s9522_s0 + $0x20] sm:$0xff] }
  0x1b   :  { %2366 = vmatpush1.bf16.msra.mxu1 %v6558_v26  ;;  %v7192_v52 = vcombine.high %v27_v47, %v31_v48  ;;  %v6590_v53 = vld [vmem:[%s9521_s1 + $0x184] ss:$16 sps:$4 sm:$0xff]   ;;  %v6594_v56 = vld [vmem:[%s9521_s1 + $0x180] ss:$16 sps:$4 sm:$0xff]   ;;  %v7261_v11 = vcombine.low %v27_v47, %v31_v48  ;;  %v6631_v48 = vld [vmem:[%s9521_s1 + $0xac] ss:$16 sps:$4 sm:$0xff]  }
  0x1c   :  { %2559 = vmatpush1.bf16.msra.mxu0 %v6559_v27  ;;  %2367 = vmatprep.subr.bf16.mxu1 %v6560_v28  ;;  %v6592_v54 = vld [vmem:[%s9521_s1 + $0x384] ss:$16 sps:$4 sm:$0xff]   ;;  %v6595_v57 = vld [vmem:[%s9521_s1 + $0x380] ss:$16 sps:$4 sm:$0xff]   ;;  %v7308_v27 = vcombine.low %v36_v9, %v40_v10  ;;  %v6643_v10 = vld [vmem:[%s9521_s1 + $0x10c] ss:$16 sps:$4 sm:$0xff]  }
  0x1d   :  { %2560 = vmatprep.subr.bf16.mxu0 %v6562_v29  ;;  %2385 = vmatprep.mubr.bf16.mxu1 %v7192_v52  ;;  %v6596_v58 = vld [vmem:[%s9521_s1 + $0x1a4] ss:$16 sps:$4 sm:$0xff]   ;;  %v6600_v60 = vld [vmem:[%s9521_s1 + $0x1a0] ss:$16 sps:$4 sm:$0xff]   ;;  %v7312_v29 = vcombine.high %v44_v22, %v48_v23 }
  0x1e   :  { %v6598_v59 = vld [vmem:[%s9521_s1 + $0x3a4] ss:$16 sps:$4 sm:$0xff]   ;;  %v6601_v61 = vld [vmem:[%s9521_s1 + $0x3a0] ss:$16 sps:$4 sm:$0xff]  }
  0x1f   :  { %2368 = vmatpush1.bf16.msra.mxu1 %v6564_v30  ;;  %v6602_v62 = vld [vmem:[%s9521_s1 + $0x1c4] ss:$16 sps:$4 sm:$0xff]   ;;  %v6606_v0 = vld [vmem:[%s9521_s1 + $0x1c0] ss:$16 sps:$4 sm:$0xff]   ;;  %v6620_v30 = vld [vmem:[%s9521_s1 + $0x48] ss:$16 sps:$4 sm:$0xff]  }
  0x20   :  { %2561 = vmatpush1.bf16.msra.mxu0 %v6565_v31  ;;  %2369 = vmatprep.subr.bf16.mxu1 %v6566_v32  ;;  %v6604_v63 = vld [vmem:[%s9521_s1 + $0x3c4] ss:$16 sps:$4 sm:$0xff]   ;;  %v6607_v1 = vld [vmem:[%s9521_s1 + $0x3c0] ss:$16 sps:$4 sm:$0xff]   ;;  %v6625_v32 = vld [vmem:[%s9521_s1 + $0x6c] ss:$16 sps:$4 sm:$0xff]  }
  0x21   :  { %2562 = vmatprep.subr.bf16.mxu0 %v6568_v33  ;;  %v6608_v2 = vld [vmem:[%s9521_s1 + $0x1e4] ss:$16 sps:$4 sm:$0xff]   ;;  %v6612_v4 = vld [vmem:[%s9521_s1 + $0x1e0] ss:$16 sps:$4 sm:$0xff]  }
  0x22   :  { %v6610_v3 = vld [vmem:[%s9521_s1 + $0x3e4] ss:$16 sps:$4 sm:$0xff]   ;;  %v6613_v5 = vld [vmem:[%s9521_s1 + $0x3e0] ss:$16 sps:$4 sm:$0xff]  }
  0x23   :  { %2370 = vmatpush1.bf16.msra.mxu1 %v6570_v34  ;;  %v35_v7 = vld [vmem:[%s9522_s0 + $0x40] sm:$0xff] }
  0x24   :  { %2563 = vmatpush1.bf16.msra.mxu0 %v6571_v35  ;;  %2371 = vmatprep.subr.bf16.mxu1 %v6572_v36  ;;  %v39_v8 = vld [vmem:[%s9522_s0 + $0x60] sm:$0xff]  ;;  %v52_v36 = vld [vmem:[%s9522_s0 + $0xc8] sm:$0xff] }
  0x25   :  { %2564 = vmatprep.subr.bf16.mxu0 %v6574_v37  ;;  %v7268_v14 = vcombine.high %v35_v7, %v39_v8  ;;  %v6640_v18 = vld [vmem:[%s9521_s1 + $0x404] ss:$16 sps:$4 sm:$0xff]   ;;  %v6638_v21 = vld [vmem:[%s9521_s1 + $0x400] ss:$16 sps:$4 sm:$0xff]   ;;  %v7306_v26 = vcombine.low %v35_v7, %v39_v8  ;;  %v56_v37 = vld [vmem:[%s9522_s0 + $0xe8] sm:$0xff] }
  0x26   :  { %v43_v19 = vld [vmem:[%s9522_s0 + $0x80] sm:$0xff]  ;;  %v72_v7 = vld [vmem:[%s9522_s0 + $0x168] sm:$0xff] }
  0x27   :  { %2372 = vmatpush1.bf16.msra.mxu1 %v6576_v38  ;;  %v47_v20 = vld [vmem:[%s9522_s0 + $0xa0] sm:$0xff]  ;;  %v6623_v38 = vld [vmem:[%s9521_s1 + $0x68] ss:$16 sps:$4 sm:$0xff]  }
  0x28   :  { %2565 = vmatpush1.bf16.msra.mxu0 %v6577_v39  ;;  %2373 = vmatprep.subr.bf16.mxu1 %v6578_v40  ;;  %v6646_v25 = vld [vmem:[%s9521_s1 + $0x424] ss:$16 sps:$4 sm:$0xff]   ;;  %v7310_v28 = vcombine.high %v43_v19, %v47_v20  ;;  %v6644_v31 = vld [vmem:[%s9521_s1 + $0x420] ss:$16 sps:$4 sm:$0xff]   ;;  %v6628_v40 = vld [vmem:[%s9521_s1 + $0x8c] ss:$16 sps:$4 sm:$0xff]  }
  0x29   :  { %2566 = vmatprep.subr.bf16.mxu0 %v6580_v41  ;;  %v6649_v33 = vld [vmem:[%s9521_s1 + $0x444] ss:$16 sps:$4 sm:$0xff]   ;;  %v6647_v39 = vld [vmem:[%s9521_s1 + $0x440] ss:$16 sps:$4 sm:$0xff]   ;;  %v6635_v8 = vld [vmem:[%s9521_s1 + $0xe8] ss:$16 sps:$4 sm:$0xff]  }
  0x2a   :  { %v51_v34 = vld [vmem:[%s9522_s0 + $0xc0] sm:$0xff] }
  0x2b   :  { %2374 = vmatpush1.bf16.msra.mxu1 %v6582_v42  ;;  %v55_v35 = vld [vmem:[%s9522_s0 + $0xe0] sm:$0xff]  ;;  %v7354_v42 = vcombine.low %v43_v19, %v47_v20  ;;  %v6641_v20 = vld [vmem:[%s9521_s1 + $0x108] ss:$16 sps:$4 sm:$0xff]  }
  0x2c   :  { %2567 = vmatpush1.bf16.msra.mxu0 %v6583_v43  ;;  %2375 = vmatprep.subr.bf16.mxu1 %v6584_v44  ;;  %v6655_v41 = vld [vmem:[%s9521_s1 + $0x464] ss:$16 sps:$4 sm:$0xff]   ;;  %v7356_v43 = vcombine.low %v44_v22, %v48_v23  ;;  %v7358_v44 = vcombine.high %v51_v34, %v55_v35  ;;  %v6653_v47 = vld [vmem:[%s9521_s1 + $0x460] ss:$16 sps:$4 sm:$0xff]   ;;  %v6652_v22 = vld [vmem:[%s9521_s1 + $0x12c] ss:$16 sps:$4 sm:$0xff]  }
  0x2d   :  { %2568 = vmatprep.subr.bf16.mxu0 %v6586_v45  ;;  %v7360_v45 = vcombine.high %v52_v36, %v56_v37  ;;  %v6658_v49 = vld [vmem:[%s9521_s1 + $0x484] ss:$16 sps:$4 sm:$0xff]   ;;  %v6665_v9 = vld [vmem:[%s9521_s1 + $0x4c0] ss:$16 sps:$4 sm:$0xff]  }
  0x2e   :  { %v59_v50 = vld [vmem:[%s9522_s0 + $0x100] sm:$0xff] }
  0x2f   :  { %2376 = vmatpush1.bf16.msra.mxu1 %v6588_v46  ;;  %v6626_v46 = vld [vmem:[%s9521_s1 + $0x88] ss:$16 sps:$4 sm:$0xff]   ;;  %v6676_v23 = vld [vmem:[%s9521_s1 + $0x504] ss:$16 sps:$4 sm:$0xff]  }
  0x30   :  { %2569 = vmatpush1.bf16.msra.mxu0 %v6589_v51  ;;  %2377 = vmatprep.subr.bf16.mxu1 %v6590_v53  ;;  %v63_v51 = vld [vmem:[%s9522_s0 + $0x120] sm:$0xff]  ;;  %v60_v53 = vld [vmem:[%s9522_s0 + $0x108] sm:$0xff] }
  0x31   :  { %2570 = vmatprep.subr.bf16.mxu0 %v6592_v54  ;;  %v64_v54 = vld [vmem:[%s9522_s0 + $0x128] sm:$0xff] }
  0x33   :  { %2378 = vmatpush1.bf16.msra.mxu1 %v6594_v56  ;;  %v6629_v56 = vld [vmem:[%s9521_s1 + $0xa8] ss:$16 sps:$4 sm:$0xff]  }
  0x34   :  { %2571 = vmatpush1.bf16.msra.mxu0 %v6595_v57  ;;  %2379 = vmatprep.subr.bf16.mxu1 %v6596_v58  ;;  %v6656_v57 = vld [vmem:[%s9521_s1 + $0x480] ss:$16 sps:$4 sm:$0xff]   ;;  %v6634_v58 = vld [vmem:[%s9521_s1 + $0xcc] ss:$16 sps:$4 sm:$0xff]  }
  0x35   :  { %2572 = vmatprep.subr.bf16.mxu0 %v6598_v59  ;;  %v6664_v59 = vld [vmem:[%s9521_s1 + $0x4a4] ss:$16 sps:$4 sm:$0xff]  }
  0x37   :  { %2380 = vmatpush1.bf16.msra.mxu1 %v6600_v60  ;;  %v7402_v60 = vcombine.low %v51_v34, %v55_v35  ;;  %v6661_v34 = vld [vmem:[%s9521_s1 + $0x14c] ss:$16 sps:$4 sm:$0xff]   ;;  %v6682_v35 = vld [vmem:[%s9521_s1 + $0x524] ss:$16 sps:$4 sm:$0xff]  }
  0x38   :  { %2573 = vmatpush1.bf16.msra.mxu0 %v6601_v61  ;;  %2381 = vmatprep.subr.bf16.mxu1 %v6602_v62  ;;  %v7404_v61 = vcombine.low %v52_v36, %v56_v37  ;;  %v7406_v62 = vcombine.high %v59_v50, %v63_v51 }
  0x39   :  { %2574 = vmatprep.subr.bf16.mxu0 %v6604_v63  ;;  %v7408_v63 = vcombine.high %v60_v53, %v64_v54 }
  0x3b   :  { %2382 = vmatpush1.bf16.msra.mxu1 %v6606_v0  ;;  %v6632_v0 = vld [vmem:[%s9521_s1 + $0xc8] ss:$16 sps:$4 sm:$0xff]  }
  0x3c   :  { %2575 = vmatpush1.bf16.msra.mxu0 %v6607_v1  ;;  %2383 = vmatprep.subr.bf16.mxu1 %v6608_v2  ;;  %v6662_v1 = vld [vmem:[%s9521_s1 + $0x4a0] ss:$16 sps:$4 sm:$0xff]   ;;  %v6637_v2 = vld [vmem:[%s9521_s1 + $0xec] ss:$16 sps:$4 sm:$0xff]  }
  0x3d   :  { %2576 = vmatprep.subr.bf16.mxu0 %v6610_v3  ;;  %v6667_v3 = vld [vmem:[%s9521_s1 + $0x4c4] ss:$16 sps:$4 sm:$0xff]  }
  0x3f   :  { %2384 = vmatpush1.bf16.msra.mxu1 %v6612_v4  ;;  %v67_v4 = vld [vmem:[%s9522_s0 + $0x140] sm:$0xff] }
  0x40   :  { %2577 = vmatpush1.bf16.msra.mxu0 %v6613_v5  ;;  %3125 = vmatprep.subr.bf16.mxu1 %v6616_v6  ;;  %v71_v5 = vld [vmem:[%s9522_s0 + $0x160] sm:$0xff]  ;;  %v68_v6 = vld [vmem:[%s9522_s0 + $0x148] sm:$0xff] }
  0x41   :  { %2739 = vmatprep.subr.bf16.mxu0 %v6640_v18  ;;  %v7454_v18 = vcombine.high %v67_v4, %v71_v5  ;;  %v7456_v19 = vcombine.high %v68_v6, %v72_v7  ;;  %v7498_v36 = vcombine.low %v67_v4, %v71_v5  ;;  %v7500_v37 = vcombine.low %v68_v6, %v72_v7  ;;  %v6688_v4 = vld [vmem:[%s9521_s1 + $0x1ac] ss:$16 sps:$4 sm:$0xff]   ;;  %v6694_v5 = vld [vmem:[%s9521_s1 + $0x584] ss:$16 sps:$4 sm:$0xff]  }
  0x42   :  { %2386 = vmatmul.mubr.bf16.vlgmr.msra.gmra.mrb[0].mxu1 %v7261_v11  ;;  %v91_v6 = vld [vmem:[%s9522_s0 + $0x200] sm:$0xff] }
  0x43   :  { %2579 = vmatmul.mubr.bf16.vlgmr.msra.gmra.mrb[0].mxu0 %v7263_v12  ;;  %3126 = vmatpush1.bf16.msra.mxu1 %v6614_v13  ;;  %v6673_v13 = vld [vmem:[%s9521_s1 + $0x4e4] ss:$16 sps:$4 sm:$0xff]  }
  0x44   :  { %2395 = vmatprep.mubr.bf16.mxu1 %v7268_v14  ;;  %2588 = vmatprep.mubr.bf16.mxu0 %v7270_v15  ;;  %v95_v7 = vld [vmem:[%s9522_s0 + $0x220] sm:$0xff] }
  0x45   :  { %3127 = vmatprep.subr.bf16.mxu1 %v6619_v16  ;;  %2740 = vmatpush1.bf16.msra.mxu0 %v6638_v21  ;;  %v7450_v16 = vcombine.low %v59_v50, %v63_v51  ;;  %v6671_v21 = vld [vmem:[%s9521_s1 + $0x4e0] ss:$16 sps:$4 sm:$0xff]   ;;  %v84_v50 = vld [vmem:[%s9522_s0 + $0x1c8] sm:$0xff] }
  0x46   :  { %2741 = vmatprep.subr.bf16.mxu0 %v6646_v25  ;;  %v79_v25 = vld [vmem:[%s9522_s0 + $0x1a0] sm:$0xff]  ;;  %v88_v51 = vld [vmem:[%s9522_s0 + $0x1e8] sm:$0xff] }
  0x47   :  { %3128 = vmatpush1.bf16.msra.mxu1 %v6617_v17  ;;  %v7452_v17 = vcombine.low %v60_v53, %v64_v54  ;;  %v6668_v53 = vld [vmem:[%s9521_s1 + $0x168] ss:$16 sps:$4 sm:$0xff]   ;;  %v6683_v54 = vld [vmem:[%s9521_s1 + $0x540] ss:$16 sps:$4 sm:$0xff]  }
  0x48   :  { %3129 = vmatprep.subr.bf16.mxu1 %v6622_v24  ;;  %v75_v24 = vld [vmem:[%s9522_s0 + $0x180] sm:$0xff] }
  0x49   :  { %2742 = vmatpush1.bf16.msra.mxu0 %v6644_v31  ;;  %v80_v31 = vld [vmem:[%s9522_s0 + $0x1a8] sm:$0xff] }
  0x4a   :  { %2396 = vmatmul.mubr.bf16.gmra.mrb[4].mxu1 %v7306_v26  ;;  %2743 = vmatprep.subr.bf16.mxu0 %v6649_v33  ;;  %v6674_v33 = vld [vmem:[%s9521_s1 + $0x500] ss:$16 sps:$4 sm:$0xff]  }
  0x4b   :  { %2589 = vmatmul.mubr.bf16.gmra.mrb[4].mxu0 %v7308_v27  ;;  %2405 = vmatprep.mubr.bf16.mxu1 %v7310_v28 }
  0x4c   :  { %2598 = vmatprep.mubr.bf16.mxu0 %v7312_v29  ;;  %3130 = vmatpush1.bf16.msra.mxu1 %v6620_v30  ;;  %v76_v30 = vld [vmem:[%s9522_s0 + $0x188] sm:$0xff] }
  0x4d   :  { %3131 = vmatprep.subr.bf16.mxu1 %v6625_v32  ;;  %2744 = vmatpush1.bf16.msra.mxu0 %v6647_v39  ;;  %v6650_v32 = vld [vmem:[%s9521_s1 + $0x128] ss:$16 sps:$4 sm:$0xff]   ;;  %v7504_v39 = vcombine.high %v76_v30, %v80_v31 }
  0x4e   :  { %2745 = vmatprep.subr.bf16.mxu0 %v6655_v41  ;;  %v6680_v41 = vld [vmem:[%s9521_s1 + $0x520] ss:$16 sps:$4 sm:$0xff]  }
  0x50   :  { %3132 = vmatpush1.bf16.msra.mxu1 %v6623_v38  ;;  %v7502_v38 = vcombine.high %v75_v24, %v79_v25 }
  0x51   :  { %3133 = vmatprep.subr.bf16.mxu1 %v6628_v40  ;;  %2746 = vmatpush1.bf16.msra.mxu0 %v6653_v47  ;;  %v6659_v40 = vld [vmem:[%s9521_s1 + $0x148] ss:$16 sps:$4 sm:$0xff]   ;;  %v6685_v47 = vld [vmem:[%s9521_s1 + $0x544] ss:$16 sps:$4 sm:$0xff]  }
  0x52   :  { %2406 = vmatmul.mubr.bf16.gmra.mrb[8].mxu1 %v7354_v42  ;;  %2747 = vmatprep.subr.bf16.mxu0 %v6658_v49  ;;  %v87_v49 = vld [vmem:[%s9522_s0 + $0x1e0] sm:$0xff] }
  0x53   :  { %2599 = vmatmul.mubr.bf16.gmra.mrb[8].mxu0 %v7356_v43  ;;  %2415 = vmatprep.mubr.bf16.mxu1 %v7358_v44 }
  0x54   :  { %2608 = vmatprep.mubr.bf16.mxu0 %v7360_v45  ;;  %3134 = vmatpush1.bf16.msra.mxu1 %v6626_v46  ;;  %v6670_v46 = vld [vmem:[%s9521_s1 + $0x16c] ss:$16 sps:$4 sm:$0xff]  }
  0x55   :  { %3135 = vmatprep.subr.bf16.mxu1 %v6631_v48  ;;  %2748 = vmatpush1.bf16.msra.mxu0 %v6656_v57  ;;  %v83_v48 = vld [vmem:[%s9522_s0 + $0x1c0] sm:$0xff] }
  0x56   :  { %2749 = vmatprep.subr.bf16.mxu0 %v6664_v59  ;;  %v6691_v57 = vld [vmem:[%s9521_s1 + $0x564] ss:$16 sps:$4 sm:$0xff]   ;;  %v7548_v59 = vcombine.low %v76_v30, %v80_v31  ;;  %v6695_v30 = vld [vmem:[%s9521_s1 + $0x1c8] ss:$16 sps:$4 sm:$0xff]   ;;  %v6698_v31 = vld [vmem:[%s9521_s1 + $0x5a0] ss:$16 sps:$4 sm:$0xff]  }
  0x58   :  { %3136 = vmatpush1.bf16.msra.mxu1 %v6629_v56  ;;  %v6679_v56 = vld [vmem:[%s9521_s1 + $0x18c] ss:$16 sps:$4 sm:$0xff]  }
  0x59   :  { %3137 = vmatprep.subr.bf16.mxu1 %v6634_v58  ;;  %2750 = vmatpush1.bf16.msra.mxu0 %v6662_v1  ;;  %v7546_v58 = vcombine.low %v75_v24, %v79_v25  ;;  %v7552_v1 = vcombine.high %v84_v50, %v88_v51  ;;  %v7598_v24 = vcombine.high %v91_v6, %v95_v7 }
  0x5a   :  { %2416 = vmatmul.mubr.bf16.gmra.mrb[12].mxu1 %v7402_v60  ;;  %2751 = vmatprep.subr.bf16.mxu0 %v6667_v3  ;;  %v6689_v3 = vld [vmem:[%s9521_s1 + $0x560] ss:$16 sps:$4 sm:$0xff]  }
  0x5b   :  { %2609 = vmatmul.mubr.bf16.gmra.mrb[12].mxu0 %v7404_v61  ;;  %2425 = vmatprep.mubr.bf16.mxu1 %v7406_v62 }
  0x5c   :  { %2618 = vmatprep.mubr.bf16.mxu0 %v7408_v63  ;;  %3138 = vmatpush1.bf16.msra.mxu1 %v6632_v0  ;;  %v7550_v0 = vcombine.high %v83_v48, %v87_v49 }
  0x5d   :  { %3139 = vmatprep.subr.bf16.mxu1 %v6637_v2  ;;  %2752 = vmatpush1.bf16.msra.mxu0 %v6665_v9  ;;  %v6677_v2 = vld [vmem:[%s9521_s1 + $0x188] ss:$16 sps:$4 sm:$0xff]  }
  0x5e   :  { %2753 = vmatprep.subr.bf16.mxu0 %v6673_v13  ;;  %v96_v9 = vld [vmem:[%s9522_s0 + $0x228] sm:$0xff]  ;;  %v6692_v13 = vld [vmem:[%s9521_s1 + $0x580] ss:$16 sps:$4 sm:$0xff]  }
  0x60   :  { %3140 = vmatpush1.bf16.msra.mxu1 %v6635_v8  ;;  %v92_v8 = vld [vmem:[%s9522_s0 + $0x208] sm:$0xff] }
  0x61   :  { %3141 = vmatprep.subr.bf16.mxu1 %v6643_v10  ;;  %2754 = vmatpush1.bf16.msra.mxu0 %v6671_v21  ;;  %v6686_v10 = vld [vmem:[%s9521_s1 + $0x1a8] ss:$16 sps:$4 sm:$0xff]   ;;  %v6700_v21 = vld [vmem:[%s9521_s1 + $0x5a4] ss:$16 sps:$4 sm:$0xff]   ;;  %v7600_v25 = vcombine.high %v92_v8, %v96_v9 }
  0x62   :  { %2426 = vmatmul.mubr.bf16.gmra.mrb[16].mxu1 %v7450_v16  ;;  %2755 = vmatprep.subr.bf16.mxu0 %v6676_v23  ;;  %v7596_v23 = vcombine.low %v84_v50, %v88_v51  ;;  %v7642_v50 = vcombine.low %v91_v6, %v95_v7  ;;  %v7644_v51 = vcombine.low %v92_v8, %v96_v9 }
  0x63   :  { %2619 = vmatmul.mubr.bf16.gmra.mrb[16].mxu0 %v7452_v17  ;;  %2435 = vmatprep.mubr.bf16.mxu1 %v7454_v18 }
  0x64   :  { %2628 = vmatprep.mubr.bf16.mxu0 %v7456_v19  ;;  %3142 = vmatpush1.bf16.msra.mxu1 %v6641_v20  ;;  %v6697_v20 = vld [vmem:[%s9521_s1 + $0x1cc] ss:$16 sps:$4 sm:$0xff]  }
  0x65   :  { %3143 = vmatprep.subr.bf16.mxu1 %v6652_v22  ;;  %2756 = vmatpush1.bf16.msra.mxu0 %v6674_v33  ;;  %v7594_v22 = vcombine.low %v83_v48, %v87_v49  ;;  %v6706_v33 = vld [vmem:[%s9521_s1 + $0x1ec] ss:$16 sps:$4 sm:$0xff]   ;;  %v6709_v48 = vld [vmem:[%s9521_s1 + $0x5e4] ss:$16 sps:$4 sm:$0xff]  }
  0x66   :  { %2757 = vmatprep.subr.bf16.mxu0 %v6682_v35  ;;  %v103_v35 = vld [vmem:[%s9522_s0 + $0x260] sm:$0xff]  ;;  %v6712_v49 = vld [vmem:[%s9521_s1 + $0x20c] ss:$16 sps:$4 sm:$0xff]  }
  0x68   :  { %3144 = vmatpush1.bf16.msra.mxu1 %v6650_v32  ;;  %v6703_v32 = vld [vmem:[%s9521_s1 + $0x5c4] ss:$16 sps:$4 sm:$0xff]  }
  0x69   :  { %3145 = vmatprep.subr.bf16.mxu1 %v6661_v34  ;;  %2758 = vmatpush1.bf16.msra.mxu0 %v6680_v41  ;;  %v99_v34 = vld [vmem:[%s9522_s0 + $0x240] sm:$0xff]  ;;  %v104_v41 = vld [vmem:[%s9522_s0 + $0x268] sm:$0xff] }
  0x6a   :  { %2436 = vmatmul.mubr.bf16.gmra.mrb[20].mxu1 %v7498_v36  ;;  %2759 = vmatprep.subr.bf16.mxu0 %v6685_v47  ;;  %v6704_v47 = vld [vmem:[%s9521_s1 + $0x1e8] ss:$16 sps:$4 sm:$0xff]   ;;  %v7672_v6 = vcombine.low %v99_v34, %v103_v35 }
  0x6b   :  { %2629 = vmatmul.mubr.bf16.gmra.mrb[20].mxu0 %v7500_v37  ;;  %2445 = vmatprep.mubr.bf16.mxu1 %v7502_v38 }
  0x6c   :  { %2638 = vmatprep.mubr.bf16.mxu0 %v7504_v39  ;;  %3146 = vmatpush1.bf16.msra.mxu1 %v6659_v40  ;;  %v100_v40 = vld [vmem:[%s9522_s0 + $0x248] sm:$0xff] }
  0x6d   :  { %3147 = vmatprep.subr.bf16.mxu1 %v6670_v46  ;;  %2760 = vmatpush1.bf16.msra.mxu0 %v6683_v54  ;;  %v6701_v46 = vld [vmem:[%s9521_s1 + $0x5c0] ss:$16 sps:$4 sm:$0xff]   ;;  %v7648_v54 = vcombine.high %v100_v40, %v104_v41  ;;  %v7674_v7 = vcombine.low %v100_v40, %v104_v41  ;;  %v124_v40 = vld [vmem:[%s9522_s0 + $0x308] sm:$0xff] }
  0x6e   :  { %2761 = vmatprep.subr.bf16.mxu0 %v6691_v57  ;;  %v6736_v57 = vld [vmem:[%s9521_s1 + $0x604] ss:$16 sps:$4 sm:$0xff]   ;;  %v128_v41 = vld [vmem:[%s9522_s0 + $0x328] sm:$0xff] }
  0x70   :  { %3148 = vmatpush1.bf16.msra.mxu1 %v6668_v53  ;;  %v7646_v53 = vcombine.high %v99_v34, %v103_v35  ;;  %v123_v34 = vld [vmem:[%s9522_s0 + $0x300] sm:$0xff] }
  0x71   :  { %3149 = vmatprep.subr.bf16.mxu1 %v6679_v56  ;;  %2762 = vmatpush1.bf16.msra.mxu0 %v6689_v3  ;;  %v6707_v56 = vld [vmem:[%s9521_s1 + $0x5e0] ss:$16 sps:$4 sm:$0xff]  }
  0x72   :  { %2446 = vmatmul.mubr.bf16.gmra.mrb[24].mxu1 %v7546_v58  ;;  %2763 = vmatprep.subr.bf16.mxu0 %v6694_v5  ;;  %v111_v3 = vld [vmem:[%s9522_s0 + $0x2a0] sm:$0xff]  ;;  %v112_v5 = vld [vmem:[%s9522_s0 + $0x2a8] sm:$0xff] }
  0x73   :  { %2639 = vmatmul.mubr.bf16.gmra.mrb[24].mxu0 %v7548_v59  ;;  %2455 = vmatprep.mubr.bf16.mxu1 %v7550_v0  ;;  %v127_v35 = vld [vmem:[%s9522_s0 + $0x320] sm:$0xff] }
  0x74   :  { %2648 = vmatprep.mubr.bf16.mxu0 %v7552_v1  ;;  %3150 = vmatpush1.bf16.msra.mxu1 %v6677_v2  ;;  %v107_v2 = vld [vmem:[%s9522_s0 + $0x280] sm:$0xff] }
  0x75   :  { %3151 = vmatprep.subr.bf16.mxu1 %v6688_v4  ;;  %2764 = vmatpush1.bf16.msra.mxu0 %v6692_v13  ;;  %v108_v4 = vld [vmem:[%s9522_s0 + $0x288] sm:$0xff]  ;;  %v7676_v8 = vcombine.high %v107_v2, %v111_v3  ;;  %v119_v13 = vld [vmem:[%s9522_s0 + $0x2e0] sm:$0xff] }
  0x76   :  { %2765 = vmatprep.subr.bf16.mxu0 %v6700_v21  ;;  %v7678_v9 = vcombine.high %v108_v4, %v112_v5  ;;  %v120_v21 = vld [vmem:[%s9522_s0 + $0x2e8] sm:$0xff] }
  0x78   :  { %3152 = vmatpush1.bf16.msra.mxu1 %v6686_v10  ;;  %v115_v10 = vld [vmem:[%s9522_s0 + $0x2c0] sm:$0xff] }
  0x79   :  { %3153 = vmatprep.subr.bf16.mxu1 %v6697_v20  ;;  %2766 = vmatpush1.bf16.msra.mxu0 %v6698_v31  ;;  %v116_v20 = vld [vmem:[%s9522_s0 + $0x2c8] sm:$0xff]  ;;  %v7698_v31 = vcombine.low %v108_v4, %v112_v5  ;;  %v7744_v4 = vcombine.low %v123_v34, %v127_v35  ;;  %v7746_v5 = vcombine.low %v124_v40, %v128_v41 }
  0x7a   :  { %2456 = vmatmul.mubr.bf16.gmra.mrb[28].mxu1 %v7594_v22  ;;  %2767 = vmatprep.subr.bf16.mxu0 %v6703_v32  ;;  %v7700_v32 = vcombine.high %v115_v10, %v119_v13 }
  0x7b   :  { %2649 = vmatmul.mubr.bf16.gmra.mrb[28].mxu0 %v7596_v23  ;;  %2465 = vmatprep.mubr.bf16.mxu1 %v7598_v24  ;;  %9581 = vst [vmem:[#allocation5_spill] sm:$0xff] %v7746_v5 }
  0x7c   :  { %2658 = vmatprep.mubr.bf16.mxu0 %v7600_v25  ;;  %3154 = vmatpush1.bf16.msra.mxu1 %v6695_v30  ;;  %v7696_v30 = vcombine.low %v107_v2, %v111_v3  ;;  %v132_v2 = vld [vmem:[%s9522_s0 + $0x348] sm:$0xff] }
  0x7d   :  { %3155 = vmatprep.subr.bf16.mxu1 %v6706_v33  ;;  %2768 = vmatpush1.bf16.msra.mxu0 %v6701_v46  ;;  %v7702_v33 = vcombine.high %v116_v20, %v120_v21  ;;  %v7720_v46 = vcombine.low %v115_v10, %v119_v13  ;;  %v136_v3 = vld [vmem:[%s9522_s0 + $0x368] sm:$0xff] }
  0x7e   :  { %2769 = vmatprep.subr.bf16.mxu0 %v6709_v48  ;;  %v7724_v48 = vcombine.high %v123_v34, %v127_v35  ;;  %v7750_v13 = vcombine.high %v132_v2, %v136_v3  ;;  %v140_v34 = vld [vmem:[%s9522_s0 + $0x388] sm:$0xff] }
  0x7f   :  { %9578 = vst [vmem:[#allocation2_spill] sm:$0xff] %v7702_v33  ;;  %v144_v35 = vld [vmem:[%s9522_s0 + $0x3a8] sm:$0xff] }
  0x80   :  { %3156 = vmatpush1.bf16.msra.mxu1 %v6704_v47  ;;  %v7722_v47 = vcombine.low %v116_v20, %v120_v21  ;;  %9582 = vst [vmem:[#allocation6_spill] sm:$0xff] %v7750_v13  ;;  %v139_v20 = vld [vmem:[%s9522_s0 + $0x380] sm:$0xff] }
  0x81   :  { %3318 = vmatprep.subr.bf16.mxu1 %v6712_v49  ;;  %2770 = vmatpush1.bf16.msra.mxu0 %v6707_v56  ;;  %v7726_v49 = vcombine.high %v124_v40, %v128_v41  ;;  %v131_v56 = vld [vmem:[%s9522_s0 + $0x340] sm:$0xff]  ;;  %v7770_v41 = vcombine.low %v132_v2, %v136_v3  ;;  %v7794_v3 = vcombine.low %v140_v34, %v144_v35 }
  0x82   :  { %2466 = vmatmul.mubr.bf16.gmra.mrb[32].mxu1 %v7642_v50  ;;  %2932 = vmatprep.subr.bf16.mxu0 %v6736_v57  ;;  %9579 = vst [vmem:[#allocation3_spill] sm:$0xff] %v7722_v47  ;;  %v135_v57 = vld [vmem:[%s9522_s0 + $0x360] sm:$0xff] }
  0x83   :  { %2659 = vmatmul.mubr.bf16.gmra.mrb[32].mxu0 %v7644_v51  ;;  %2475 = vmatprep.mubr.bf16.mxu1 %v7646_v53  ;;  %9580 = vst [vmem:[#allocation4_spill] sm:$0xff] %v7726_v49  ;;  %v7748_v10 = vcombine.high %v131_v56, %v135_v57  ;;  %v143_v21 = vld [vmem:[%s9522_s0 + $0x3a0] sm:$0xff]  ;;  %v7768_v40 = vcombine.low %v131_v56, %v135_v57  ;;  %9583 = vst [vmem:[#allocation7_spill] sm:$0xff] %v7770_v41  ;;  %v148_v56 = vld [vmem:[%s9522_s0 + $0x3c8] sm:$0xff] }
  0x84   :  { %2668 = vmatprep.mubr.bf16.mxu0 %v7648_v54  ;;  %v152_v57 = vld [vmem:[%s9522_s0 + $0x3e8] sm:$0xff]  ;;  %v7792_v2 = vcombine.low %v139_v20, %v143_v21  ;;  %9585 = vst [vmem:[#allocation9_spill] sm:$0xff] %v7794_v3 }
  0x8a   :  { %2476 = vmatmul.mubr.bf16.gmra.mrb[36].mxu1 %v7672_v6 }
  0x8b   :  { %2669 = vmatmul.mubr.bf16.gmra.mrb[36].mxu0 %v7674_v7  ;;  %2485 = vmatprep.mubr.bf16.mxu1 %v7676_v8 }
  0x8c   :  { %2678 = vmatprep.mubr.bf16.mxu0 %v7678_v9 }
  0x92   :  { %2486 = vmatmul.mubr.bf16.gmra.mrb[40].mxu1 %v7696_v30 }
  0x93   :  { %2679 = vmatmul.mubr.bf16.gmra.mrb[40].mxu0 %v7698_v31  ;;  %2495 = vmatprep.mubr.bf16.mxu1 %v7700_v32 }
  0x94   :  { %2688 = vmatprep.mubr.bf16.mxu0 %v7702_v33  ;;  %v7798_v33 = vcombine.high %v148_v56, %v152_v57 }
  0x96   :  { %9586 = vst [vmem:[#allocation10_spill] sm:$0xff] %v7798_v33 }
  0x9a   :  { %2496 = vmatmul.mubr.bf16.gmra.mrb[44].mxu1 %v7720_v46 }
  0x9b   :  { %2689 = vmatmul.mubr.bf16.gmra.mrb[44].mxu0 %v7722_v47  ;;  %2505 = vmatprep.mubr.bf16.mxu1 %v7724_v48  ;;  %v151_v47 = vld [vmem:[%s9522_s0 + $0x3e0] sm:$0xff] }
  0x9c   :  { %2698 = vmatprep.mubr.bf16.mxu0 %v7726_v49  ;;  %v7774_v49 = vcombine.high %v140_v34, %v144_v35  ;;  %v7812_v34 = vcombine.low %v148_v56, %v152_v57  ;;  %v6710_v56 = vld [vmem:[%s9521_s1 + $0x208] ss:$16 sps:$4 sm:$0xff]  }
  0x9e   :  { %9584 = vst [vmem:[#allocation8_spill] sm:$0xff] %v7774_v49  ;;  %9587 = vst [vmem:[#allocation11_spill] sm:$0xff] %v7812_v34 }
  0xa2   :  { %2506 = vmatmul.mubr.bf16.gmra.mrb[48].mxu1 %v7744_v4 }
  0xa3   :  { %2699 = vmatmul.mubr.bf16.gmra.mrb[48].mxu0 %v7746_v5  ;;  %2515 = vmatprep.mubr.bf16.mxu1 %v7748_v10  ;;  %v7772_v5 = vcombine.high %v139_v20, %v143_v21  ;;  %v33_v20 = vld [vmem:[%s9522_s0 + $0x30] sm:$0xff] }
  0xa4   :  { %2708 = vmatprep.mubr.bf16.mxu0 %v7750_v13  ;;  %v147_v13 = vld [vmem:[%s9522_s0 + $0x3c0] sm:$0xff] }
  0xa5   :  { %v7810_v21 = vcombine.low %v147_v13, %v151_v47 }
  0xaa   :  { %2516 = vmatmul.mubr.bf16.gmra.mrb[52].mxu1 %v7768_v40 }
  0xab   :  { %2709 = vmatmul.mubr.bf16.gmra.mrb[52].mxu0 %v7770_v41  ;;  %2525 = vmatprep.mubr.bf16.mxu1 %v7772_v5  ;;  %v7796_v41 = vcombine.high %v147_v13, %v151_v47  ;;  %v41_v47 = vld [vmem:[%s9522_s0 + $0x70] sm:$0xff] }
  0xac   :  { %2718 = vmatprep.mubr.bf16.mxu0 %v7774_v49  ;;  %v29_v49 = vld [vmem:[%s9522_s0 + $0x10] sm:$0xff] }
  0xad   :  { %v7814_v35 = vcombine.high %v29_v49, %v33_v20  ;;  %v7826_v13 = vcombine.low %v29_v49, %v33_v20  ;;  %v6742_v49 = vld [vmem:[%s9521_s1 + $0x624] ss:$16 sps:$4 sm:$0xff]   ;;  %v6713_v20 = vld [vmem:[%s9521_s1 + $0x228] ss:$16 sps:$4 sm:$0xff]  }
  0xaf   :  { %9588 = vst [vmem:[#allocation12_spill] sm:$0xff] %v7814_v35  ;;  %9589 = vst [vmem:[#allocation13_spill] sm:$0xff] %v7826_v13 }
  0xb2   :  { %2526 = vmatmul.mubr.bf16.gmra.mrb[56].mxu1 %v7792_v2 }
  0xb3   :  { %2719 = vmatmul.mubr.bf16.gmra.mrb[56].mxu0 %v7794_v3  ;;  %2535 = vmatprep.mubr.bf16.mxu1 %v7796_v41  ;;  %v6745_v3 = vld [vmem:[%s9521_s1 + $0x644] ss:$16 sps:$4 sm:$0xff]  }
  0xb4   :  { %2728 = vmatprep.mubr.bf16.mxu0 %v7798_v33  ;;  %v37_v33 = vld [vmem:[%s9522_s0 + $0x50] sm:$0xff] }
  0xb5   :  { %v7831_v57 = vcombine.high %v37_v33, %v41_v47 }
  0xb7   :  { %9590 = vst [vmem:[#allocation14_spill] sm:$0xff] %v7831_v57 }
  0xba   :  { %2536 = vmatmul.mubr.bf16.gmra.mrb[60].mxu1 %v7810_v21 }
  0xbb   :  { %2729 = vmatmul.mubr.bf16.gmra.mrb[60].mxu0 %v7812_v34  ;;  %3157 = vmatprep.mubr.bf16.mxu1 %v7192_v52  ;;  %v6715_v52 = vld [vmem:[%s9521_s1 + $0x22c] ss:$16 sps:$4 sm:$0xff]   ;;  %v7861_v34 = vcombine.low %v37_v33, %v41_v47  ;;  %v6743_v33 = vld [vmem:[%s9521_s1 + $0x640] ss:$16 sps:$4 sm:$0xff]   ;;  %v6751_v47 = vld [vmem:[%s9521_s1 + $0x664] ss:$16 sps:$4 sm:$0xff]  }
  0xbc   :  { %2771 = vmatprep.mubr.bf16.mxu0 %v7814_v35  ;;  %v6734_v35 = vld [vmem:[%s9521_s1 + $0x600] ss:$16 sps:$4 sm:$0xff]  }
  0xc2   :  { %3158 = vmatmul.mubr.bf16.vlgmr.msra.gmra.mrb[64].mxu1 %v7261_v11  ;;  %v49_v11 = vld [vmem:[%s9522_s0 + $0xb0] sm:$0xff] }
  0xc3   :  { %2772 = vmatmul.mubr.bf16.vlgmr.msra.gmra.mrb[0].mxu0 %v7826_v13  ;;  %3319 = vmatpush1.bf16.msra.mxu1 %v6710_v56  ;;  %v45_v13 = vld [vmem:[%s9522_s0 + $0x90] sm:$0xff]  ;;  %v6718_v56 = vld [vmem:[%s9521_s1 + $0x24c] ss:$16 sps:$4 sm:$0xff]  }
  0xc4   :  { %2781 = vmatprep.mubr.bf16.mxu0 %v7831_v57  ;;  %3167 = vmatprep.mubr.bf16.mxu1 %v7268_v14  ;;  %v6740_v57 = vld [vmem:[%s9521_s1 + $0x620] ss:$16 sps:$4 sm:$0xff]   ;;  %v7863_v14 = vcombine.high %v45_v13, %v49_v11 }
  0xc5   :  { %3320 = vmatprep.subr.bf16.mxu1 %v6715_v52  ;;  %2933 = vmatpush1.bf16.msra.mxu0 %v6734_v35  ;;  %v6716_v52 = vld [vmem:[%s9521_s1 + $0x248] ss:$16 sps:$4 sm:$0xff]   ;;  %v6721_v35 = vld [vmem:[%s9521_s1 + $0x26c] ss:$16 sps:$4 sm:$0xff]  }
  0xc6   :  { %2934 = vmatprep.subr.bf16.mxu0 %v6742_v49  ;;  %v57_v49 = vld [vmem:[%s9522_s0 + $0xf0] sm:$0xff] }
  0xc7   :  { %3321 = vmatpush1.bf16.msra.mxu1 %v6713_v20  ;;  %v6724_v20 = vld [vmem:[%s9521_s1 + $0x28c] ss:$16 sps:$4 sm:$0xff]  }
  0xc8   :  { %3322 = vmatprep.subr.bf16.mxu1 %v6718_v56  ;;  %v7899_v56 = vcombine.low %v45_v13, %v49_v11  ;;  %v6752_v13 = vld [vmem:[%s9521_s1 + $0x680] ss:$16 sps:$4 sm:$0xff]   ;;  %v6760_v11 = vld [vmem:[%s9521_s1 + $0x6a4] ss:$16 sps:$4 sm:$0xff]  }
  0xc9   :  { %2935 = vmatpush1.bf16.msra.mxu0 %v6740_v57  ;;  %v53_v57 = vld [vmem:[%s9522_s0 + $0xd0] sm:$0xff] }
  0xca   :  { %3168 = vmatmul.mubr.bf16.gmra.mrb[68].mxu1 %v7306_v26  ;;  %v6719_v26 = vld [vmem:[%s9521_s1 + $0x268] ss:$16 sps:$4 sm:$0xff]   ;;  %2936 = vmatprep.subr.bf16.mxu0 %v6745_v3 }
  0xcb   :  { %2782 = vmatmul.mubr.bf16.gmra.mrb[4].mxu0 %v7861_v34  ;;  %3177 = vmatprep.mubr.bf16.mxu1 %v7310_v28  ;;  %v6749_v28 = vld [vmem:[%s9521_s1 + $0x660] ss:$16 sps:$4 sm:$0xff]   ;;  %v6722_v3 = vld [vmem:[%s9521_s1 + $0x288] ss:$16 sps:$4 sm:$0xff]  }
  0xcc   :  { %2791 = vmatprep.mubr.bf16.mxu0 %v7863_v14  ;;  %3323 = vmatpush1.bf16.msra.mxu1 %v6716_v52  ;;  %v7901_v52 = vcombine.high %v53_v57, %v57_v49 }
  0xcd   :  { %3324 = vmatprep.subr.bf16.mxu1 %v6721_v35  ;;  %2937 = vmatpush1.bf16.msra.mxu0 %v6743_v33  ;;  %v6754_v35 = vld [vmem:[%s9521_s1 + $0x684] ss:$16 sps:$4 sm:$0xff]   ;;  %v6727_v33 = vld [vmem:[%s9521_s1 + $0x2ac] ss:$16 sps:$4 sm:$0xff]  }
  0xce   :  { %2938 = vmatprep.subr.bf16.mxu0 %v6751_v47  ;;  %9591 = vst [vmem:[#allocation15_spill] sm:$0xff] %v7901_v52  ;;  %v61_v47 = vld [vmem:[%s9522_s0 + $0x110] sm:$0xff] }
  0xd0   :  { %3325 = vmatpush1.bf16.msra.mxu1 %v6719_v26  ;;  %v65_v26 = vld [vmem:[%s9522_s0 + $0x130] sm:$0xff] }
  0xd1   :  { %3326 = vmatprep.subr.bf16.mxu1 %v6724_v20  ;;  %2939 = vmatpush1.bf16.msra.mxu0 %v6749_v28  ;;  %v6730_v20 = vld [vmem:[%s9521_s1 + $0x2cc] ss:$16 sps:$4 sm:$0xff]   ;;  %v7937_v28 = vcombine.low %v53_v57, %v57_v49  ;;  %v6761_v57 = vld [vmem:[%s9521_s1 + $0x6c0] ss:$16 sps:$4 sm:$0xff]   ;;  %v6769_v49 = vld [vmem:[%s9521_s1 + $0x6e4] ss:$16 sps:$4 sm:$0xff]  }
  0xd2   :  { %3178 = vmatmul.mubr.bf16.gmra.mrb[72].mxu1 %v7354_v42  ;;  %v6725_v42 = vld [vmem:[%s9521_s1 + $0x2a8] ss:$16 sps:$4 sm:$0xff]   ;;  %2940 = vmatprep.subr.bf16.mxu0 %v6754_v35  ;;  %v6763_v35 = vld [vmem:[%s9521_s1 + $0x6c4] ss:$16 sps:$4 sm:$0xff]  }
  0xd3   :  { %2792 = vmatmul.mubr.bf16.gmra.mrb[8].mxu0 %v7899_v56  ;;  %3187 = vmatprep.mubr.bf16.mxu1 %v7358_v44  ;;  %v6758_v44 = vld [vmem:[%s9521_s1 + $0x6a0] ss:$16 sps:$4 sm:$0xff]  }
  0xd4   :  { %2801 = vmatprep.mubr.bf16.mxu0 %v7901_v52  ;;  %3327 = vmatpush1.bf16.msra.mxu1 %v6722_v3  ;;  %v7939_v52 = vcombine.high %v61_v47, %v65_v26  ;;  %v6728_v3 = vld [vmem:[%s9521_s1 + $0x2c8] ss:$16 sps:$4 sm:$0xff]  }
  0xd5   :  { %3328 = vmatprep.subr.bf16.mxu1 %v6727_v33  ;;  %2941 = vmatpush1.bf16.msra.mxu0 %v6752_v13  ;;  %v6733_v33 = vld [vmem:[%s9521_s1 + $0x2ec] ss:$16 sps:$4 sm:$0xff]   ;;  %v69_v13 = vld [vmem:[%s9522_s0 + $0x150] sm:$0xff] }
  0xd6   :  { %2942 = vmatprep.subr.bf16.mxu0 %v6760_v11  ;;  %v73_v11 = vld [vmem:[%s9522_s0 + $0x170] sm:$0xff] }
  0xd8   :  { %3329 = vmatpush1.bf16.msra.mxu1 %v6725_v42  ;;  %v6739_v42 = vld [vmem:[%s9521_s1 + $0x30c] ss:$16 sps:$4 sm:$0xff]  }
  0xd9   :  { %3330 = vmatprep.subr.bf16.mxu1 %v6730_v20  ;;  %2943 = vmatpush1.bf16.msra.mxu0 %v6758_v44  ;;  %v7975_v20 = vcombine.low %v61_v47, %v65_v26  ;;  %v7977_v44 = vcombine.high %v69_v13, %v73_v11  ;;  %v6770_v47 = vld [vmem:[%s9521_s1 + $0x700] ss:$16 sps:$4 sm:$0xff]   ;;  %v6778_v26 = vld [vmem:[%s9521_s1 + $0x724] ss:$16 sps:$4 sm:$0xff]  }
  0xda   :  { %3188 = vmatmul.mubr.bf16.gmra.mrb[76].mxu1 %v7402_v60  ;;  %v6731_v60 = vld [vmem:[%s9521_s1 + $0x2e8] ss:$16 sps:$4 sm:$0xff]   ;;  %2944 = vmatprep.subr.bf16.mxu0 %v6763_v35  ;;  %v6772_v35 = vld [vmem:[%s9521_s1 + $0x704] ss:$16 sps:$4 sm:$0xff]  }
  0xdb   :  { %2802 = vmatmul.mubr.bf16.gmra.mrb[12].mxu0 %v7937_v28  ;;  %3197 = vmatprep.mubr.bf16.mxu1 %v7406_v62  ;;  %v6767_v62 = vld [vmem:[%s9521_s1 + $0x6e0] ss:$16 sps:$4 sm:$0xff]  }
  0xdc   :  { %2811 = vmatprep.mubr.bf16.mxu0 %v7939_v52  ;;  %3331 = vmatpush1.bf16.msra.mxu1 %v6728_v3  ;;  %v6737_v3 = vld [vmem:[%s9521_s1 + $0x308] ss:$16 sps:$4 sm:$0xff]  }
  0xdd   :  { %3332 = vmatprep.subr.bf16.mxu1 %v6733_v33  ;;  %2945 = vmatpush1.bf16.msra.mxu0 %v6761_v57  ;;  %v6748_v33 = vld [vmem:[%s9521_s1 + $0x32c] ss:$16 sps:$4 sm:$0xff]   ;;  %v77_v57 = vld [vmem:[%s9522_s0 + $0x190] sm:$0xff] }
  0xde   :  { %2946 = vmatprep.subr.bf16.mxu0 %v6769_v49  ;;  %v81_v49 = vld [vmem:[%s9522_s0 + $0x1b0] sm:$0xff] }
  0xe0   :  { %3333 = vmatpush1.bf16.msra.mxu1 %v6731_v60  ;;  %v6757_v60 = vld [vmem:[%s9521_s1 + $0x34c] ss:$16 sps:$4 sm:$0xff]  }
  0xe1   :  { %3334 = vmatprep.subr.bf16.mxu1 %v6739_v42  ;;  %2947 = vmatpush1.bf16.msra.mxu0 %v6767_v62  ;;  %v8013_v42 = vcombine.low %v69_v13, %v73_v11  ;;  %v8015_v62 = vcombine.high %v77_v57, %v81_v49  ;;  %v6779_v13 = vld [vmem:[%s9521_s1 + $0x740] ss:$16 sps:$4 sm:$0xff]   ;;  %v6787_v11 = vld [vmem:[%s9521_s1 + $0x764] ss:$16 sps:$4 sm:$0xff]  }
  0xe2   :  { %3198 = vmatmul.mubr.bf16.gmra.mrb[80].mxu1 %v7450_v16  ;;  %v6746_v16 = vld [vmem:[%s9521_s1 + $0x328] ss:$16 sps:$4 sm:$0xff]   ;;  %2948 = vmatprep.subr.bf16.mxu0 %v6772_v35  ;;  %v6781_v35 = vld [vmem:[%s9521_s1 + $0x744] ss:$16 sps:$4 sm:$0xff]  }
  0xe3   :  { %2812 = vmatmul.mubr.bf16.gmra.mrb[16].mxu0 %v7975_v20  ;;  %3207 = vmatprep.mubr.bf16.mxu1 %v7454_v18  ;;  %v6776_v18 = vld [vmem:[%s9521_s1 + $0x720] ss:$16 sps:$4 sm:$0xff]  }
  0xe4   :  { %2821 = vmatprep.mubr.bf16.mxu0 %v7977_v44  ;;  %3335 = vmatpush1.bf16.msra.mxu1 %v6737_v3  ;;  %v6755_v3 = vld [vmem:[%s9521_s1 + $0x348] ss:$16 sps:$4 sm:$0xff]  }
  0xe5   :  { %3336 = vmatprep.subr.bf16.mxu1 %v6748_v33  ;;  %2949 = vmatpush1.bf16.msra.mxu0 %v6770_v47  ;;  %v6766_v33 = vld [vmem:[%s9521_s1 + $0x36c] ss:$16 sps:$4 sm:$0xff]   ;;  %v85_v47 = vld [vmem:[%s9522_s0 + $0x1d0] sm:$0xff] }
  0xe6   :  { %2950 = vmatprep.subr.bf16.mxu0 %v6778_v26  ;;  %v89_v26 = vld [vmem:[%s9522_s0 + $0x1f0] sm:$0xff] }
  0xe8   :  { %3337 = vmatpush1.bf16.msra.mxu1 %v6746_v16  ;;  %v6775_v16 = vld [vmem:[%s9521_s1 + $0x38c] ss:$16 sps:$4 sm:$0xff]  }
  0xe9   :  { %3338 = vmatprep.subr.bf16.mxu1 %v6757_v60  ;;  %2951 = vmatpush1.bf16.msra.mxu0 %v6776_v18  ;;  %v8051_v60 = vcombine.low %v77_v57, %v81_v49  ;;  %v8053_v18 = vcombine.high %v85_v47, %v89_v26  ;;  %v6788_v57 = vld [vmem:[%s9521_s1 + $0x780] ss:$16 sps:$4 sm:$0xff]   ;;  %v6796_v49 = vld [vmem:[%s9521_s1 + $0x7a4] ss:$16 sps:$4 sm:$0xff]  }
  0xea   :  { %3208 = vmatmul.mubr.bf16.gmra.mrb[84].mxu1 %v7498_v36  ;;  %v6764_v36 = vld [vmem:[%s9521_s1 + $0x368] ss:$16 sps:$4 sm:$0xff]   ;;  %2952 = vmatprep.subr.bf16.mxu0 %v6781_v35  ;;  %v6790_v35 = vld [vmem:[%s9521_s1 + $0x784] ss:$16 sps:$4 sm:$0xff]  }
  0xeb   :  { %2822 = vmatmul.mubr.bf16.gmra.mrb[20].mxu0 %v8013_v42  ;;  %3217 = vmatprep.mubr.bf16.mxu1 %v7502_v38  ;;  %v6785_v38 = vld [vmem:[%s9521_s1 + $0x760] ss:$16 sps:$4 sm:$0xff]  }
  0xec   :  { %2831 = vmatprep.mubr.bf16.mxu0 %v8015_v62  ;;  %3339 = vmatpush1.bf16.msra.mxu1 %v6755_v3  ;;  %v6773_v3 = vld [vmem:[%s9521_s1 + $0x388] ss:$16 sps:$4 sm:$0xff]  }
  0xed   :  { %3340 = vmatprep.subr.bf16.mxu1 %v6766_v33  ;;  %2953 = vmatpush1.bf16.msra.mxu0 %v6779_v13  ;;  %v6784_v33 = vld [vmem:[%s9521_s1 + $0x3ac] ss:$16 sps:$4 sm:$0xff]   ;;  %v93_v13 = vld [vmem:[%s9522_s0 + $0x210] sm:$0xff] }
  0xee   :  { %2954 = vmatprep.subr.bf16.mxu0 %v6787_v11  ;;  %v97_v11 = vld [vmem:[%s9522_s0 + $0x230] sm:$0xff] }
  0xf0   :  { %3341 = vmatpush1.bf16.msra.mxu1 %v6764_v36  ;;  %v6793_v36 = vld [vmem:[%s9521_s1 + $0x3cc] ss:$16 sps:$4 sm:$0xff]  }
  0xf1   :  { %3342 = vmatprep.subr.bf16.mxu1 %v6775_v16  ;;  %2955 = vmatpush1.bf16.msra.mxu0 %v6785_v38  ;;  %v8089_v16 = vcombine.low %v85_v47, %v89_v26  ;;  %v8091_v38 = vcombine.high %v93_v13, %v97_v11  ;;  %v6802_v47 = vld [vmem:[%s9521_s1 + $0x3ec] ss:$16 sps:$4 sm:$0xff]   ;;  %v6805_v26 = vld [vmem:[%s9521_s1 + $0x7e4] ss:$16 sps:$4 sm:$0xff]  }
  0xf2   :  { %3218 = vmatmul.mubr.bf16.gmra.mrb[88].mxu1 %v7546_v58  ;;  %v6782_v58 = vld [vmem:[%s9521_s1 + $0x3a8] ss:$16 sps:$4 sm:$0xff]   ;;  %2956 = vmatprep.subr.bf16.mxu0 %v6790_v35  ;;  %v6799_v35 = vld [vmem:[%s9521_s1 + $0x7c4] ss:$16 sps:$4 sm:$0xff]  }
  0xf3   :  { %2832 = vmatmul.mubr.bf16.gmra.mrb[24].mxu0 %v8051_v60  ;;  %3227 = vmatprep.mubr.bf16.mxu1 %v7550_v0  ;;  %v6794_v0 = vld [vmem:[%s9521_s1 + $0x7a0] ss:$16 sps:$4 sm:$0xff]  }
  0xf4   :  { %2841 = vmatprep.mubr.bf16.mxu0 %v8053_v18  ;;  %3343 = vmatpush1.bf16.msra.mxu1 %v6773_v3  ;;  %v6791_v3 = vld [vmem:[%s9521_s1 + $0x3c8] ss:$16 sps:$4 sm:$0xff]  }
  0xf5   :  { %3344 = vmatprep.subr.bf16.mxu1 %v6784_v33  ;;  %2957 = vmatpush1.bf16.msra.mxu0 %v6788_v57  ;;  %v6797_v33 = vld [vmem:[%s9521_s1 + $0x7c0] ss:$16 sps:$4 sm:$0xff]  }
  0xf6   :  { %2958 = vmatprep.subr.bf16.mxu0 %v6796_v49  ;;  %v101_v57 = vld [vmem:[%s9522_s0 + $0x250] sm:$0xff] }
  0xf7   :  { %v105_v49 = vld [vmem:[%s9522_s0 + $0x270] sm:$0xff] }
  0xf8   :  { %3345 = vmatpush1.bf16.msra.mxu1 %v6782_v58  ;;  %v6808_v58 = vld [vmem:[%s9521_s1 + $0x40c] ss:$16 sps:$4 sm:$0xff]  }
  0xf9   :  { %3346 = vmatprep.subr.bf16.mxu1 %v6793_v36  ;;  %2959 = vmatpush1.bf16.msra.mxu0 %v6794_v0  ;;  %v8127_v36 = vcombine.low %v93_v13, %v97_v11  ;;  %v8129_v0 = vcombine.high %v101_v57, %v105_v49  ;;  %v113_v13 = vld [vmem:[%s9522_s0 + $0x2b0] sm:$0xff]  ;;  %v8141_v11 = vcombine.low %v101_v57, %v105_v49 }
  0xfa   :  { %3228 = vmatmul.mubr.bf16.gmra.mrb[92].mxu1 %v7594_v22  ;;  %2960 = vmatprep.subr.bf16.mxu0 %v6799_v35  ;;  %v6800_v22 = vld [vmem:[%s9521_s1 + $0x3e8] ss:$16 sps:$4 sm:$0xff]  }
  0xfb   :  { %2842 = vmatmul.mubr.bf16.gmra.mrb[28].mxu0 %v8089_v16  ;;  %3237 = vmatprep.mubr.bf16.mxu1 %v7598_v24  ;;  %v6803_v24 = vld [vmem:[%s9521_s1 + $0x7e0] ss:$16 sps:$4 sm:$0xff]  }
  0xfc   :  { %2851 = vmatprep.mubr.bf16.mxu0 %v8091_v38  ;;  %3347 = vmatpush1.bf16.msra.mxu1 %v6791_v3  ;;  %v109_v3 = vld [vmem:[%s9522_s0 + $0x290] sm:$0xff] }
  0xfd   :  { %3348 = vmatprep.subr.bf16.mxu1 %v6802_v47  ;;  %2961 = vmatpush1.bf16.msra.mxu0 %v6797_v33  ;;  %v8143_v35 = vcombine.high %v109_v3, %v113_v13  ;;  %v8155_v33 = vcombine.low %v109_v3, %v113_v13 }
  0xfe   :  { %2962 = vmatprep.subr.bf16.mxu0 %v6805_v26 }
 0x100   :  { %3349 = vmatpush1.bf16.msra.mxu1 %v6800_v22 }
 0x101   :  { %2963 = vmatpush1.bf16.msra.mxu0 %v6803_v24  ;;  %3511 = vmatprep.subr.bf16.mxu1 %v6808_v58  ;;  %v137_v58 = vld [vmem:[%s9522_s0 + $0x370] sm:$0xff] }
 0x102   :  { %3238 = vmatmul.mubr.bf16.gmra.mrb[96].mxu1 %v7642_v50  ;;  %v117_v50 = vld [vmem:[%s9522_s0 + $0x2d0] sm:$0xff] }
 0x103   :  { %2852 = vmatmul.mubr.bf16.gmra.mrb[32].mxu0 %v8127_v36  ;;  %3247 = vmatprep.mubr.bf16.mxu1 %v7646_v53  ;;  %v121_v53 = vld [vmem:[%s9522_s0 + $0x2f0] sm:$0xff] }
 0x104   :  { %2861 = vmatprep.mubr.bf16.mxu0 %v8129_v0  ;;  %v8157_v47 = vcombine.high %v117_v50, %v121_v53  ;;  %v8173_v49 = vcombine.low %v117_v50, %v121_v53 }
 0x10a   :  { %3248 = vmatmul.mubr.bf16.gmra.mrb[100].mxu1 %v7672_v6  ;;  %v125_v6 = vld [vmem:[%s9522_s0 + $0x310] sm:$0xff] }
 0x10b   :  { %2862 = vmatmul.mubr.bf16.gmra.mrb[36].mxu0 %v8141_v11  ;;  %3257 = vmatprep.mubr.bf16.mxu1 %v7676_v8  ;;  %v129_v8 = vld [vmem:[%s9522_s0 + $0x330] sm:$0xff] }
 0x10c   :  { %2871 = vmatprep.mubr.bf16.mxu0 %v8143_v35  ;;  %v8195_v50 = vcombine.low %v125_v6, %v129_v8 }
 0x10e   :  { %9593 = vst [vmem:[#allocation17_spill] sm:$0xff] %v8195_v50 }
 0x112   :  { %3258 = vmatmul.mubr.bf16.gmra.mrb[104].mxu1 %v7696_v30  ;;  %v8177_v30 = vcombine.high %v125_v6, %v129_v8  ;;  %v145_v6 = vld [vmem:[%s9522_s0 + $0x3b0] sm:$0xff] }
 0x113   :  { %2872 = vmatmul.mubr.bf16.gmra.mrb[40].mxu0 %v8155_v33  ;;  %3267 = vmatprep.mubr.bf16.mxu1 %v7700_v32  ;;  %v133_v32 = vld [vmem:[%s9522_s0 + $0x350] sm:$0xff] }
 0x114   :  { %2881 = vmatprep.mubr.bf16.mxu0 %v8157_v47  ;;  %9592 = vst [vmem:[#allocation16_spill] sm:$0xff] %v8177_v30 }
 0x115   :  { %v8169_v26 = vpop.f32.mrb[0].mxu1 }
 0x116   :  { %v8171_v57 = vpop.f32.mrb[1].mxu1 }
 0x117   :  { %v8175_v22 = vpop.f32.mrb[2].mxu1 }
 0x118   :  { %v8179_v24 = vpop.f32.mrb[3].mxu1 }
 0x11a   :  { %3268 = vmatmul.mubr.bf16.gmra.mrb[108].mxu1 %v7720_v46  ;;  %v8199_v46 = vcombine.high %v133_v32, %v137_v58 }
 0x11b   :  { %2882 = vmatmul.mubr.bf16.gmra.mrb[44].mxu0 %v8173_v49  ;;  %3277 = vmatprep.mubr.bf16.mxu1 %v7724_v48  ;;  %v141_v48 = vld [vmem:[%s9522_s0 + $0x390] sm:$0xff] }
 0x11c   :  { %2891 = vmatprep.mubr.bf16.mxu0 %v8177_v30  ;;  %9595 = vst [vmem:[#allocation19_spill] sm:$0xff] %v8199_v46 }
 0x11d   :  { %v8191_v3 = vpop.f32.mrb[4].mxu1 }
 0x11e   :  { %v8193_v13 = vpop.f32.mrb[5].mxu1 }
 0x11f   :  { %v8197_v53 = vpop.f32.mrb[6].mxu1 }
 0x120   :  { %9594 = vst [vmem:[#allocation18_spill] sm:$0xff] %v8197_v53  ;;  %v8201_v30 = vpop.f32.mrb[7].mxu1 }
 0x121   :  { %9596 = vst [vmem:[#allocation20_spill] sm:$0xff] %v8201_v30  ;;  %v8217_v30 = vcombine.low %v133_v32, %v137_v58  ;;  %v153_v32 = vld [vmem:[%s9522_s0 + $0x3f0] sm:$0xff] }
 0x122   :  { %3278 = vmatmul.mubr.bf16.gmra.mrb[112].mxu1 %v7744_v4  ;;  %v8221_v4 = vcombine.high %v141_v48, %v145_v6 }
 0x123   :  { %2892 = vmatmul.mubr.bf16.gmra.mrb[48].mxu0 %v8195_v50  ;;  %3287 = vmatprep.mubr.bf16.mxu1 %v7748_v10  ;;  %9597 = vst [vmem:[#allocation21_spill] sm:$0xff] %v8217_v30  ;;  %v149_v10 = vld [vmem:[%s9522_s0 + $0x3d0] sm:$0xff] }
 0x124   :  { %2901 = vmatprep.mubr.bf16.mxu0 %v8199_v46  ;;  %9599 = vst [vmem:[#allocation23_spill] sm:$0xff] %v8221_v4 }
 0x125   :  { %v8213_v8 = vpop.f32.mrb[8].mxu1 }
 0x126   :  { %v8215_v53 = vpop.f32.mrb[9].mxu1 }
 0x127   :  { %v8219_v50 = vpop.f32.mrb[10].mxu1 }
 0x128   :  { %9598 = vst [vmem:[#allocation22_spill] sm:$0xff] %v8219_v50  ;;  %v8223_v46 = vpop.f32.mrb[11].mxu1 }
 0x129   :  { %9600 = vst [vmem:[#allocation24_spill] sm:$0xff] %v8223_v46  ;;  %v8239_v46 = vcombine.low %v141_v48, %v145_v6  ;;  %v34_v48 = vld [vmem:[%s9522_s0 + $0x38] sm:$0xff] }
 0x12a   :  { %3288 = vmatmul.mubr.bf16.gmra.mrb[116].mxu1 %v7768_v40  ;;  %v8243_v40 = vcombine.high %v149_v10, %v153_v32 }
 0x12b   :  { %2902 = vmatmul.mubr.bf16.gmra.mrb[52].mxu0 %v8217_v30  ;;  %3297 = vmatprep.mubr.bf16.mxu1 %v7772_v5  ;;  %9601 = vst [vmem:[#allocation25_spill] sm:$0xff] %v8239_v46  ;;  %v30_v5 = vld [vmem:[%s9522_s0 + $0x18] sm:$0xff] }
 0x12c   :  { %2911 = vmatprep.mubr.bf16.mxu0 %v8221_v4  ;;  %9603 = vst [vmem:[#allocation27_spill] sm:$0xff] %v8243_v40 }
 0x12d   :  { %v8235_v58 = vpop.f32.mrb[12].mxu1 }
 0x12e   :  { %v8237_v50 = vpop.f32.mrb[13].mxu1 }
 0x12f   :  { %v8241_v30 = vpop.f32.mrb[14].mxu1 }
 0x130   :  { %9602 = vst [vmem:[#allocation26_spill] sm:$0xff] %v8241_v30  ;;  %v8245_v4 = vpop.f32.mrb[15].mxu1 }
 0x131   :  { %9604 = vst [vmem:[#allocation28_spill] sm:$0xff] %v8245_v4  ;;  %v8261_v4 = vcombine.low %v149_v10, %v153_v32  ;;  %v42_v10 = vld [vmem:[%s9522_s0 + $0x78] sm:$0xff] }
 0x132   :  { %3298 = vmatmul.mubr.bf16.gmra.mrb[120].mxu1 %v7792_v2  ;;  %v8265_v2 = vcombine.high %v30_v5, %v34_v48 }
 0x133   :  { %2912 = vmatmul.mubr.bf16.gmra.mrb[56].mxu0 %v8239_v46  ;;  %3307 = vmatprep.mubr.bf16.mxu1 %v7796_v41  ;;  %9606 = vst [vmem:[#allocation30_spill] sm:$0xff] %v8261_v4  ;;  %v38_v41 = vld [vmem:[%s9522_s0 + $0x58] sm:$0xff] }
 0x134   :  { %2921 = vmatprep.mubr.bf16.mxu0 %v8243_v40  ;;  %9608 = vst [vmem:[#allocation32_spill] sm:$0xff] %v8265_v2 }
 0x135   :  { %v8257_v6 = vpop.f32.mrb[16].mxu1 }
 0x136   :  { %v8259_v30 = vpop.f32.mrb[17].mxu1 }
 0x137   :  { %9605 = vst [vmem:[#allocation29_spill] sm:$0xff] %v8259_v30  ;;  %v8263_v46 = vpop.f32.mrb[18].mxu1  ;;  %v6811_v30 = vld [vmem:[%s9521_s1 + $0x42c] ss:$16 sps:$4 sm:$0xff]  }
 0x138   :  { %9607 = vst [vmem:[#allocation31_spill] sm:$0xff] %v8263_v46  ;;  %v8267_v40 = vpop.f32.mrb[19].mxu1 }
 0x139   :  { %9609 = vst [vmem:[#allocation33_spill] sm:$0xff] %v8267_v40  ;;  %v8283_v40 = vcombine.low %v30_v5, %v34_v48  ;;  %v6809_v5 = vld [vmem:[%s9521_s1 + $0x428] ss:$16 sps:$4 sm:$0xff]  }
 0x13a   :  { %3308 = vmatmul.mubr.bf16.gmra.mrb[124].mxu1 %v7810_v21  ;;  %v8290_v21 = vcombine.high %v38_v41, %v42_v10  ;;  %v46_v48 = vld [vmem:[%s9522_s0 + $0x98] sm:$0xff] }
 0x13b   :  { %2922 = vmatmul.mubr.bf16.gmra.mrb[60].mxu0 %v8261_v4  ;;  %3350 = vmatprep.mubr.bf16.mxu1 %v7200_v55  ;;  %9611 = vst [vmem:[#allocation35_spill] sm:$0xff] %v8283_v40  ;;  %v6806_v55 = vld [vmem:[%s9521_s1 + $0x408] ss:$16 sps:$4 sm:$0xff]  }
 0x13c   :  { %2964 = vmatprep.mubr.bf16.mxu0 %v8265_v2  ;;  %9613 = vst [vmem:[#allocation37_spill] sm:$0xff] %v8290_v21 }
 0x13d   :  { %v8279_v32 = vpop.f32.mrb[20].mxu1 }
 0x13e   :  { %v8281_v46 = vpop.f32.mrb[21].mxu1 }
 0x13f   :  { %9610 = vst [vmem:[#allocation34_spill] sm:$0xff] %v8281_v46  ;;  %v8285_v4 = vpop.f32.mrb[22].mxu1  ;;  %v6812_v46 = vld [vmem:[%s9521_s1 + $0x448] ss:$16 sps:$4 sm:$0xff]  }
 0x140   :  { %9612 = vst [vmem:[#allocation36_spill] sm:$0xff] %v8285_v4  ;;  %v8292_v2 = vpop.f32.mrb[23].mxu1 }
 0x141   :  { %9614 = vst [vmem:[#allocation38_spill] sm:$0xff] %v8292_v2  ;;  %v8317_v2 = vcombine.low %v38_v41, %v42_v10  ;;  %v54_v41 = vld [vmem:[%s9522_s0 + $0xd8] sm:$0xff] }
 0x142   :  { %3351 = vmatmul.mubr.bf16.vlgmr.msra.gmra.mrb[64].mxu1 %v7263_v12  ;;  %v6814_v12 = vld [vmem:[%s9521_s1 + $0x44c] ss:$16 sps:$4 sm:$0xff]  }
 0x143   :  { %2965 = vmatmul.mubr.bf16.vlgmr.msra.gmra.mrb[0].mxu0 %v8283_v40  ;;  %3512 = vmatpush1.bf16.msra.mxu1 %v6806_v55  ;;  %v50_v40 = vld [vmem:[%s9522_s0 + $0xb8] sm:$0xff]  ;;  %9616 = vst [vmem:[#allocation40_spill] sm:$0xff] %v8317_v2 }
 0x144   :  { %2974 = vmatprep.mubr.bf16.mxu0 %v8290_v21  ;;  %3360 = vmatprep.mubr.bf16.mxu1 %v7270_v15  ;;  %v58_v10 = vld [vmem:[%s9522_s0 + $0xf8] sm:$0xff] }
 0x145   :  { %3513 = vmatprep.subr.bf16.mxu1 %v6811_v30  ;;  %v8313_v55 = vpop.f32.mrb[24].mxu1  ;;  %v8321_v30 = vcombine.high %v46_v48, %v50_v40 }
 0x146   :  { %9615 = vst [vmem:[#allocation39_spill] sm:$0xff] %v8313_v55  ;;  %v8315_v21 = vpop.f32.mrb[25].mxu1  ;;  %v6817_v55 = vld [vmem:[%s9521_s1 + $0x46c] ss:$16 sps:$4 sm:$0xff]  }
 0x147   :  { %v8319_v15 = vpop.f32.mrb[26].mxu1  ;;  %3514 = vmatpush1.bf16.msra.mxu1 %v6809_v5  ;;  %9617 = vst [vmem:[#allocation41_spill] sm:$0xff] %v8321_v30  ;;  %v6815_v5 = vld [vmem:[%s9521_s1 + $0x468] ss:$16 sps:$4 sm:$0xff]  }
 0x148   :  { %v8323_v4 = vpop.f32.mrb[27].mxu1  ;;  %3515 = vmatprep.subr.bf16.mxu1 %v6814_v12 }
 0x149   :  { %9618 = vst [vmem:[#allocation42_spill] sm:$0xff] %v8323_v4 }
 0x14a   :  { %3361 = vmatmul.mubr.bf16.gmra.mrb[68].mxu1 %v7308_v27  ;;  %v6820_v27 = vld [vmem:[%s9521_s1 + $0x48c] ss:$16 sps:$4 sm:$0xff]  }
 0x14b   :  { %2975 = vmatmul.mubr.bf16.gmra.mrb[4].mxu0 %v8317_v2  ;;  %3370 = vmatprep.mubr.bf16.mxu1 %v7312_v29  ;;  %v8355_v2 = vcombine.high %v54_v41, %v58_v10 }
 0x14c   :  { %2984 = vmatprep.mubr.bf16.mxu0 %v8321_v30  ;;  %3516 = vmatpush1.bf16.msra.mxu1 %v6812_v46  ;;  %v8351_v46 = vcombine.low %v46_v48, %v50_v40  ;;  %v62_v40 = vld [vmem:[%s9522_s0 + $0x118] sm:$0xff] }
 0x14d   :  { %v8344_v12 = vpop.f32.mrb[28].mxu1  ;;  %3517 = vmatprep.subr.bf16.mxu1 %v6817_v55  ;;  %9621 = vst [vmem:[#allocation45_spill] sm:$0xff] %v8355_v2  ;;  %v6823_v55 = vld [vmem:[%s9521_s1 + $0x4ac] ss:$16 sps:$4 sm:$0xff]  }
 0x14e   :  { %9619 = vst [vmem:[#allocation43_spill] sm:$0xff] %v8344_v12  ;;  %v8349_v29 = vpop.f32.mrb[29].mxu1  ;;  %9620 = vst [vmem:[#allocation44_spill] sm:$0xff] %v8351_v46  ;;  %v6818_v12 = vld [vmem:[%s9521_s1 + $0x488] ss:$16 sps:$4 sm:$0xff]  }
 0x14f   :  { %v8353_v30 = vpop.f32.mrb[30].mxu1  ;;  %v66_v48 = vld [vmem:[%s9522_s0 + $0x138] sm:$0xff] }
 0x150   :  { %v8357_v4 = vpop.f32.mrb[31].mxu1  ;;  %3518 = vmatpush1.bf16.msra.mxu1 %v6815_v5  ;;  %v6821_v5 = vld [vmem:[%s9521_s1 + $0x4a8] ss:$16 sps:$4 sm:$0xff]  }
 0x151   :  { %9622 = vst [vmem:[#allocation46_spill] sm:$0xff] %v8357_v4  ;;  %3519 = vmatprep.subr.bf16.mxu1 %v6820_v27  ;;  %v8389_v4 = vcombine.high %v62_v40, %v66_v48 }
 0x152   :  { %3371 = vmatmul.mubr.bf16.gmra.mrb[72].mxu1 %v7356_v43  ;;  %v6826_v43 = vld [vmem:[%s9521_s1 + $0x4cc] ss:$16 sps:$4 sm:$0xff]  }
 0x153   :  { %2985 = vmatmul.mubr.bf16.gmra.mrb[8].mxu0 %v8351_v46  ;;  %3380 = vmatprep.mubr.bf16.mxu1 %v7360_v45  ;;  %9627 = vst [vmem:[#allocation51_spill] sm:$0xff] %v8389_v4 }
 0x154   :  { %2994 = vmatprep.mubr.bf16.mxu0 %v8355_v2  ;;  %3520 = vmatpush1.bf16.msra.mxu1 %v6818_v12  ;;  %v8385_v2 = vcombine.low %v54_v41, %v58_v10  ;;  %v70_v41 = vld [vmem:[%s9522_s0 + $0x158] sm:$0xff] }
 0x155   :  { %v8378_v27 = vpop.f32.mrb[32].mxu1  ;;  %3521 = vmatprep.subr.bf16.mxu1 %v6823_v55  ;;  %v6829_v55 = vld [vmem:[%s9521_s1 + $0x4ec] ss:$16 sps:$4 sm:$0xff]  }
 0x156   :  { %9623 = vst [vmem:[#allocation47_spill] sm:$0xff] %v8378_v27  ;;  %v8383_v45 = vpop.f32.mrb[33].mxu1  ;;  %9625 = vst [vmem:[#allocation49_spill] sm:$0xff] %v8385_v2  ;;  %v6824_v27 = vld [vmem:[%s9521_s1 + $0x4c8] ss:$16 sps:$4 sm:$0xff]  }
 0x157   :  { %9624 = vst [vmem:[#allocation48_spill] sm:$0xff] %v8383_v45  ;;  %v8387_v46 = vpop.f32.mrb[34].mxu1  ;;  %v74_v10 = vld [vmem:[%s9522_s0 + $0x178] sm:$0xff] }
 0x158   :  { %9626 = vst [vmem:[#allocation50_spill] sm:$0xff] %v8387_v46  ;;  %v8391_v12 = vpop.f32.mrb[35].mxu1  ;;  %3522 = vmatpush1.bf16.msra.mxu1 %v6821_v5  ;;  %v6827_v5 = vld [vmem:[%s9521_s1 + $0x4e8] ss:$16 sps:$4 sm:$0xff]   ;;  %v8432_v45 = vcombine.high %v70_v41, %v74_v10 }
 0x159   :  { %9628 = vst [vmem:[#allocation52_spill] sm:$0xff] %v8391_v12  ;;  %3523 = vmatprep.subr.bf16.mxu1 %v6826_v43  ;;  %v6866_v43 = vld [vmem:[%s9523_s3] ss:$8 sps:$4 sm:$0xff]   ;;  %v8425_v12 = vcombine.low %v62_v40, %v66_v48  ;;  %v78_v40 = vld [vmem:[%s9522_s0 + $0x198] sm:$0xff] }
 0x15a   :  { %3381 = vmatmul.mubr.bf16.gmra.mrb[76].mxu1 %v7404_v61  ;;  %v6832_v61 = vld [vmem:[%s9521_s1 + $0x50c] ss:$16 sps:$4 sm:$0xff]   ;;  %v6830_v46 = vld [vmem:[%s9521_s1 + $0x508] ss:$16 sps:$4 sm:$0xff]   ;;  %9633 = vst [vmem:[#allocation57_spill] sm:$0xff] %v8432_v45 }
 0x15b   :  { %2995 = vmatmul.mubr.bf16.gmra.mrb[12].mxu0 %v8385_v2  ;;  %3390 = vmatprep.mubr.bf16.mxu1 %v7408_v63  ;;  %v6868_v63 = vld [vmem:[%s9523_s3 + $0x4] ss:$8 sps:$4 sm:$0xff]   ;;  %9631 = vst [vmem:[#allocation55_spill] sm:$0xff] %v8425_v12  ;;  %v82_v48 = vld [vmem:[%s9522_s0 + $0x1b8] sm:$0xff] }
 0x15c   :  { %3004 = vmatprep.mubr.bf16.mxu0 %v8389_v4  ;;  %3524 = vmatpush1.bf16.msra.mxu1 %v6824_v27 }
 0x15d   :  { %v8418_v4 = vpop.f32.mrb[36].mxu1  ;;  %3525 = vmatprep.subr.bf16.mxu1 %v6829_v55  ;;  %v6835_v55 = vld [vmem:[%s9521_s1 + $0x52c] ss:$16 sps:$4 sm:$0xff]   ;;  %4741 = vmatprep.subr.bf16.mxu0 %v6868_v63  ;;  %v6833_v63 = vld [vmem:[%s9521_s1 + $0x528] ss:$16 sps:$4 sm:$0xff]  }
 0x15e   :  { %9629 = vst [vmem:[#allocation53_spill] sm:$0xff] %v8418_v4  ;;  %v8423_v2 = vpop.f32.mrb[37].mxu1  ;;  %4742 = vmatpush1.bf16.msra.mxu0 %v6866_v43  ;;  %v6877_v43 = vld [vmem:[%s9523_s3 + $0x24] ss:$8 sps:$4 sm:$0xff]  }
 0x15f   :  { %9630 = vst [vmem:[#allocation54_spill] sm:$0xff] %v8423_v2  ;;  %v8430_v27 = vpop.f32.mrb[38].mxu1 }
 0x160   :  { %9632 = vst [vmem:[#allocation56_spill] sm:$0xff] %v8430_v27  ;;  %v8437_v4 = vpop.f32.mrb[39].mxu1  ;;  %3526 = vmatpush1.bf16.msra.mxu1 %v6827_v5  ;;  %v6872_v5 = vld [vmem:[%s9523_s3 + $0x10] ss:$8 sps:$4 sm:$0xff]   ;;  %v6875_v27 = vld [vmem:[%s9523_s3 + $0x20] ss:$8 sps:$4 sm:$0xff]  }
 0x161   :  { %9634 = vst [vmem:[#allocation58_spill] sm:$0xff] %v8437_v4  ;;  %3527 = vmatprep.subr.bf16.mxu1 %v6832_v61  ;;  %v6874_v61 = vld [vmem:[%s9523_s3 + $0x14] ss:$8 sps:$4 sm:$0xff]   ;;  %v6836_v4 = vld [vmem:[%s9521_s1 + $0x548] ss:$16 sps:$4 sm:$0xff]  }
 0x162   :  { %3391 = vmatmul.mubr.bf16.gmra.mrb[80].mxu1 %v7452_v17  ;;  %v6838_v17 = vld [vmem:[%s9521_s1 + $0x54c] ss:$16 sps:$4 sm:$0xff]   ;;  %4743 = vmatprep.subr.bf16.mxu0 %v6874_v61  ;;  %v6839_v61 = vld [vmem:[%s9521_s1 + $0x568] ss:$16 sps:$4 sm:$0xff]  }
 0x163   :  { %3005 = vmatmul.mubr.bf16.gmra.mrb[16].mxu0 %v8425_v12  ;;  %3400 = vmatprep.mubr.bf16.mxu1 %v7456_v19  ;;  %v8468_v19 = vcombine.low %v70_v41, %v74_v10  ;;  %v86_v10 = vld [vmem:[%s9522_s0 + $0x1d8] sm:$0xff] }
 0x164   :  { %3014 = vmatprep.mubr.bf16.mxu0 %v8432_v45  ;;  %3528 = vmatpush1.bf16.msra.mxu1 %v6830_v46  ;;  %v8478_v46 = vcombine.high %v78_v40, %v82_v48 }
 0x165   :  { %v8464_v12 = vpop.f32.mrb[40].mxu1  ;;  %3529 = vmatprep.subr.bf16.mxu1 %v6835_v55  ;;  %9636 = vst [vmem:[#allocation60_spill] sm:$0xff] %v8468_v19  ;;  %4744 = vmatpush1.bf16.msra.mxu0 %v6872_v5  ;;  %v6841_v55 = vld [vmem:[%s9521_s1 + $0x56c] ss:$16 sps:$4 sm:$0xff]  }
 0x166   :  { %v8466_v45 = vpop.f32.mrb[41].mxu1  ;;  %9638 = vst [vmem:[#allocation62_spill] sm:$0xff] %v8478_v46  ;;  %4745 = vmatprep.subr.bf16.mxu0 %v6877_v43  ;;  %v90_v5 = vld [vmem:[%s9522_s0 + $0x1f8] sm:$0xff]  ;;  %v6886_v43 = vld [vmem:[%s9523_s3 + $0x44] ss:$8 sps:$4 sm:$0xff]  }
 0x167   :  { %9635 = vst [vmem:[#allocation59_spill] sm:$0xff] %v8466_v45  ;;  %v8476_v2 = vpop.f32.mrb[42].mxu1 }
 0x168   :  { %9637 = vst [vmem:[#allocation61_spill] sm:$0xff] %v8476_v2  ;;  %v8483_v41 = vpop.f32.mrb[43].mxu1  ;;  %3530 = vmatpush1.bf16.msra.mxu1 %v6833_v63  ;;  %v6881_v63 = vld [vmem:[%s9523_s3 + $0x30] ss:$8 sps:$4 sm:$0xff]   ;;  %v6884_v2 = vld [vmem:[%s9523_s3 + $0x40] ss:$8 sps:$4 sm:$0xff]  }
 0x169   :  { %9639 = vst [vmem:[#allocation63_spill] sm:$0xff] %v8483_v41  ;;  %3531 = vmatprep.subr.bf16.mxu1 %v6838_v17  ;;  %v6883_v17 = vld [vmem:[%s9523_s3 + $0x34] ss:$8 sps:$4 sm:$0xff]   ;;  %4746 = vmatpush1.bf16.msra.mxu0 %v6875_v27  ;;  %v6842_v41 = vld [vmem:[%s9521_s1 + $0x588] ss:$16 sps:$4 sm:$0xff]  }
 0x16a   :  { %3401 = vmatmul.mubr.bf16.gmra.mrb[84].mxu1 %v7500_v37  ;;  %v6844_v37 = vld [vmem:[%s9521_s1 + $0x58c] ss:$16 sps:$4 sm:$0xff]   ;;  %4747 = vmatprep.subr.bf16.mxu0 %v6883_v17  ;;  %v6845_v17 = vld [vmem:[%s9521_s1 + $0x5a8] ss:$16 sps:$4 sm:$0xff]  }
 0x16b   :  { %3015 = vmatmul.mubr.bf16.gmra.mrb[20].mxu0 %v8468_v19  ;;  %3410 = vmatprep.mubr.bf16.mxu1 %v7504_v39  ;;  %v8514_v19 = vcombine.low %v78_v40, %v82_v48  ;;  %v6847_v27 = vld [vmem:[%s9521_s1 + $0x5ac] ss:$16 sps:$4 sm:$0xff]  }
 0x16c   :  { %3024 = vmatprep.mubr.bf16.mxu0 %v8478_v46  ;;  %3532 = vmatpush1.bf16.msra.mxu1 %v6836_v4  ;;  %v8524_v4 = vcombine.high %v86_v10, %v90_v5  ;;  %v94_v40 = vld [vmem:[%s9522_s0 + $0x218] sm:$0xff] }
 0x16d   :  { %v8510_v46 = vpop.f32.mrb[44].mxu1  ;;  %3533 = vmatprep.subr.bf16.mxu1 %v6841_v55  ;;  %9640 = vst [vmem:[#allocation64_spill] sm:$0xff] %v8514_v19  ;;  %4748 = vmatpush1.bf16.msra.mxu0 %v6881_v63  ;;  %v98_v48 = vld [vmem:[%s9522_s0 + $0x238] sm:$0xff]  ;;  %v6895_v63 = vld [vmem:[%s9523_s3 + $0x64] ss:$8 sps:$4 sm:$0xff]  }
 0x16e   :  { %v8512_v39 = vpop.f32.mrb[45].mxu1  ;;  %9642 = vst [vmem:[#allocation66_spill] sm:$0xff] %v8524_v4  ;;  %4749 = vmatprep.subr.bf16.mxu0 %v6886_v43 }
 0x16f   :  { %v8522_v45 = vpop.f32.mrb[46].mxu1 }
 0x170   :  { %9641 = vst [vmem:[#allocation65_spill] sm:$0xff] %v8522_v45  ;;  %v8529_v55 = vpop.f32.mrb[47].mxu1  ;;  %3534 = vmatpush1.bf16.msra.mxu1 %v6839_v61  ;;  %v6890_v61 = vld [vmem:[%s9523_s3 + $0x50] ss:$8 sps:$4 sm:$0xff]  }
 0x171   :  { %9643 = vst [vmem:[#allocation67_spill] sm:$0xff] %v8529_v55  ;;  %3535 = vmatprep.subr.bf16.mxu1 %v6844_v37  ;;  %v6892_v37 = vld [vmem:[%s9523_s3 + $0x54] ss:$8 sps:$4 sm:$0xff]   ;;  %4750 = vmatpush1.bf16.msra.mxu0 %v6884_v2  ;;  %v8564_v55 = vcombine.high %v94_v40, %v98_v48  ;;  %v6893_v2 = vld [vmem:[%s9523_s3 + $0x60] ss:$8 sps:$4 sm:$0xff]  }
 0x172   :  { %3411 = vmatmul.mubr.bf16.gmra.mrb[88].mxu1 %v7548_v59  ;;  %v6850_v59 = vld [vmem:[%s9521_s1 + $0x5cc] ss:$16 sps:$4 sm:$0xff]   ;;  %4751 = vmatprep.subr.bf16.mxu0 %v6892_v37 }
 0x173   :  { %3025 = vmatmul.mubr.bf16.gmra.mrb[24].mxu0 %v8514_v19  ;;  %3420 = vmatprep.mubr.bf16.mxu1 %v7552_v1  ;;  %9645 = vst [vmem:[#allocation69_spill] sm:$0xff] %v8564_v55  ;;  %v6904_v37 = vld [vmem:[%s9523_s3 + $0x84] ss:$8 sps:$4 sm:$0xff]  }
 0x174   :  { %3034 = vmatprep.mubr.bf16.mxu0 %v8524_v4  ;;  %3536 = vmatpush1.bf16.msra.mxu1 %v6842_v41  ;;  %v8560_v4 = vcombine.low %v86_v10, %v90_v5  ;;  %v6848_v41 = vld [vmem:[%s9521_s1 + $0x5c8] ss:$16 sps:$4 sm:$0xff]   ;;  %v6853_v10 = vld [vmem:[%s9521_s1 + $0x5ec] ss:$16 sps:$4 sm:$0xff]  }
 0x175   :  { %v8556_v43 = vpop.f32.mrb[48].mxu1  ;;  %3537 = vmatprep.subr.bf16.mxu1 %v6847_v27  ;;  %4752 = vmatpush1.bf16.msra.mxu0 %v6890_v61  ;;  %v102_v5 = vld [vmem:[%s9522_s0 + $0x258] sm:$0xff] }
 0x176   :  { %v8558_v1 = vpop.f32.mrb[49].mxu1  ;;  %9644 = vst [vmem:[#allocation68_spill] sm:$0xff] %v8560_v4  ;;  %4753 = vmatprep.subr.bf16.mxu0 %v6895_v63  ;;  %v6901_v27 = vld [vmem:[%s9523_s3 + $0x74] ss:$8 sps:$4 sm:$0xff]  }
 0x177   :  { %v8562_v19 = vpop.f32.mrb[50].mxu1  ;;  %v6856_v61 = vld [vmem:[%s9521_s1 + $0x60c] ss:$16 sps:$4 sm:$0xff]  }
 0x178   :  { %v8566_v45 = vpop.f32.mrb[51].mxu1  ;;  %3538 = vmatpush1.bf16.msra.mxu1 %v6845_v17  ;;  %v106_v17 = vld [vmem:[%s9522_s0 + $0x278] sm:$0xff] }
 0x179   :  { %3539 = vmatprep.subr.bf16.mxu1 %v6850_v59  ;;  %4754 = vmatpush1.bf16.msra.mxu0 %v6893_v2 }
 0x17a   :  { %3421 = vmatmul.mubr.bf16.gmra.mrb[92].mxu1 %v7596_v23  ;;  %v6851_v23 = vld [vmem:[%s9521_s1 + $0x5e8] ss:$16 sps:$4 sm:$0xff]   ;;  %4755 = vmatprep.subr.bf16.mxu0 %v6901_v27 }
 0x17b   :  { %3035 = vmatmul.mubr.bf16.gmra.mrb[28].mxu0 %v8560_v4  ;;  %3430 = vmatprep.mubr.bf16.mxu1 %v7600_v25  ;;  %v6899_v25 = vld [vmem:[%s9523_s3 + $0x70] ss:$8 sps:$4 sm:$0xff]  }
 0x17c   :  { %3044 = vmatprep.mubr.bf16.mxu0 %v8564_v55  ;;  %3540 = vmatpush1.bf16.msra.mxu1 %v6848_v41  ;;  %v8606_v41 = vcombine.low %v94_v40, %v98_v48  ;;  %v8610_v55 = vcombine.high %v102_v5, %v106_v17  ;;  %v6910_v40 = vld [vmem:[%s9523_s3 + $0x94] ss:$8 sps:$4 sm:$0xff]  }
 0x17d   :  { %v8596_v59 = vpop.f32.mrb[52].mxu1  ;;  %3541 = vmatprep.subr.bf16.mxu1 %v6853_v10  ;;  %4756 = vmatpush1.bf16.msra.mxu0 %v6899_v25  ;;  %v6902_v10 = vld [vmem:[%s9523_s3 + $0x80] ss:$8 sps:$4 sm:$0xff]   ;;  %v110_v48 = vld [vmem:[%s9522_s0 + $0x298] sm:$0xff] }
 0x17e   :  { %v8604_v63 = vpop.f32.mrb[53].mxu1  ;;  %9646 = vst [vmem:[#allocation70_spill] sm:$0xff] %v8610_v55  ;;  %4757 = vmatprep.subr.bf16.mxu0 %v6904_v37  ;;  %v114_v27 = vld [vmem:[%s9522_s0 + $0x2b8] sm:$0xff] }
 0x17f   :  { %v8608_v2 = vpop.f32.mrb[54].mxu1 }
 0x180   :  { %v8612_v4 = vpop.f32.mrb[55].mxu1  ;;  %3542 = vmatpush1.bf16.msra.mxu1 %v6851_v23 }
 0x181   :  { %3704 = vmatprep.subr.bf16.mxu1 %v6856_v61  ;;  %4758 = vmatpush1.bf16.msra.mxu0 %v6902_v10  ;;  %v8640_v61 = vcombine.low %v102_v5, %v106_v17  ;;  %v6919_v5 = vld [vmem:[%s9523_s3 + $0xb4] ss:$8 sps:$4 sm:$0xff]  }
 0x182   :  { %3431 = vmatmul.mubr.bf16.gmra.mrb[96].mxu1 %v7644_v51  ;;  %v6908_v51 = vld [vmem:[%s9523_s3 + $0x90] ss:$8 sps:$4 sm:$0xff]   ;;  %4759 = vmatprep.subr.bf16.mxu0 %v6910_v40 }
 0x183   :  { %3045 = vmatmul.mubr.bf16.gmra.mrb[32].mxu0 %v8606_v41  ;;  %3440 = vmatprep.mubr.bf16.mxu1 %v7648_v54  ;;  %v6913_v54 = vld [vmem:[%s9523_s3 + $0xa4] ss:$8 sps:$4 sm:$0xff]   ;;  %9648 = vst [vmem:[#allocation72_spill] sm:$0xff] %v8640_v61  ;;  %v118_v17 = vld [vmem:[%s9522_s0 + $0x2d8] sm:$0xff] }
 0x184   :  { %3054 = vmatprep.mubr.bf16.mxu0 %v8610_v55  ;;  %v8644_v55 = vcombine.high %v110_v48, %v114_v27  ;;  %v122_v40 = vld [vmem:[%s9522_s0 + $0x2f8] sm:$0xff] }
 0x185   :  { %v8633_v23 = vpop.f32.mrb[56].mxu1  ;;  %4760 = vmatpush1.bf16.msra.mxu0 %v6908_v51 }
 0x186   :  { %9647 = vst [vmem:[#allocation71_spill] sm:$0xff] %v8633_v23  ;;  %v8638_v25 = vpop.f32.mrb[57].mxu1  ;;  %9649 = vst [vmem:[#allocation73_spill] sm:$0xff] %v8644_v55  ;;  %v6911_v23 = vld [vmem:[%s9523_s3 + $0xa0] ss:$8 sps:$4 sm:$0xff]   ;;  %4761 = vmatprep.subr.bf16.mxu0 %v6913_v54 }
 0x187   :  { %v8642_v37 = vpop.f32.mrb[58].mxu1 }
 0x188   :  { %v8646_v10 = vpop.f32.mrb[59].mxu1 }
 0x189   :  { %9650 = vst [vmem:[#allocation74_spill] sm:$0xff] %v8646_v10  ;;  %4762 = vmatpush1.bf16.msra.mxu0 %v6911_v23  ;;  %v8678_v10 = vcombine.high %v118_v17, %v122_v40 }
 0x18a   :  { %3441 = vmatmul.mubr.bf16.gmra.mrb[100].mxu1 %v7674_v7  ;;  %v6917_v7 = vld [vmem:[%s9523_s3 + $0xb0] ss:$8 sps:$4 sm:$0xff]   ;;  %4763 = vmatprep.subr.bf16.mxu0 %v6919_v5 }
 0x18b   :  { %3055 = vmatmul.mubr.bf16.gmra.mrb[36].mxu0 %v8640_v61  ;;  %3450 = vmatprep.mubr.bf16.mxu1 %v7678_v9  ;;  %v6922_v9 = vld [vmem:[%s9523_s3 + $0xc4] ss:$8 sps:$4 sm:$0xff]   ;;  %9653 = vst [vmem:[#allocation77_spill] sm:$0xff] %v8678_v10  ;;  %v126_v5 = vld [vmem:[%s9522_s0 + $0x318] sm:$0xff] }
 0x18c   :  { %3064 = vmatprep.mubr.bf16.mxu0 %v8644_v55  ;;  %v8674_v55 = vcombine.low %v110_v48, %v114_v27  ;;  %v9654_v48 = vld [vmem:[#allocation2_spill] sm:$0xff]  ;;  %v6928_v27 = vld [vmem:[%s9523_s3 + $0xd4] ss:$8 sps:$4 sm:$0xff]  }
 0x18d   :  { %v8667_v51 = vpop.f32.mrb[60].mxu1  ;;  %4764 = vmatpush1.bf16.msra.mxu0 %v6917_v7  ;;  %v130_v7 = vld [vmem:[%s9522_s0 + $0x338] sm:$0xff] }
 0x18e   :  { %9651 = vst [vmem:[#allocation75_spill] sm:$0xff] %v8667_v51  ;;  %v8672_v54 = vpop.f32.mrb[61].mxu1  ;;  %9652 = vst [vmem:[#allocation76_spill] sm:$0xff] %v8674_v55  ;;  %v6920_v51 = vld [vmem:[%s9523_s3 + $0xc0] ss:$8 sps:$4 sm:$0xff]   ;;  %4765 = vmatprep.subr.bf16.mxu0 %v6922_v9  ;;  %v8701_v9 = vcombine.low %v118_v17, %v122_v40  ;;  %v9658_v17 = vld [vmem:[#allocation4_spill] sm:$0xff] }
 0x18f   :  { %v8676_v61 = vpop.f32.mrb[62].mxu1  ;;  %v6937_v40 = vld [vmem:[%s9523_s3 + $0xf4] ss:$8 sps:$4 sm:$0xff]  }
 0x190   :  { %v8680_v23 = vpop.f32.mrb[63].mxu1  ;;  %9655 = vst [vmem:[#allocation2_spill] sm:$0xff] %v8701_v9 }
 0x191   :  { %4766 = vmatpush1.bf16.msra.mxu0 %v6920_v51  ;;  %v9657_v51 = vld [vmem:[#allocation3_spill] sm:$0xff] }
 0x192   :  { %3451 = vmatmul.mubr.bf16.gmra.mrb[104].mxu1 %v7698_v31  ;;  %v6926_v31 = vld [vmem:[%s9523_s3 + $0xd0] ss:$8 sps:$4 sm:$0xff]   ;;  %4767 = vmatprep.subr.bf16.mxu0 %v6928_v27 }
 0x193   :  { %3065 = vmatmul.mubr.bf16.gmra.mrb[40].mxu0 %v8674_v55  ;;  %3460 = vmatprep.mubr.bf16.mxu1 %v9654_v48  ;;  %v8703_v48 = vcombine.high %v126_v5, %v130_v7  ;;  %v6929_v55 = vld [vmem:[%s9523_s3 + $0xe0] ss:$8 sps:$4 sm:$0xff]   ;;  %v134_v27 = vld [vmem:[%s9522_s0 + $0x358] sm:$0xff] }
 0x194   :  { %3074 = vmatprep.mubr.bf16.mxu0 %v8678_v10  ;;  %v6931_v10 = vld [vmem:[%s9523_s3 + $0xe4] ss:$8 sps:$4 sm:$0xff]  }
 0x195   :  { %9656 = vst [vmem:[#allocation78_spill] sm:$0xff] %v8703_v48  ;;  %4768 = vmatpush1.bf16.msra.mxu0 %v6926_v31  ;;  %v6935_v31 = vld [vmem:[%s9523_s3 + $0xf0] ss:$8 sps:$4 sm:$0xff]  }
 0x196   :  { %4769 = vmatprep.subr.bf16.mxu0 %v6931_v10  ;;  %v138_v10 = vld [vmem:[%s9522_s0 + $0x378] sm:$0xff] }
 0x199   :  { %4770 = vmatpush1.bf16.msra.mxu0 %v6929_v55  ;;  %v142_v55 = vld [vmem:[%s9522_s0 + $0x398] sm:$0xff] }
 0x19a   :  { %3461 = vmatmul.mubr.bf16.gmra.mrb[108].mxu1 %v9657_v51  ;;  %4771 = vmatprep.subr.bf16.mxu0 %v6937_v40  ;;  %v8727_v51 = vcombine.low %v126_v5, %v130_v7  ;;  %v146_v5 = vld [vmem:[%s9522_s0 + $0x3b8] sm:$0xff]  ;;  %v8741_v7 = vcombine.low %v134_v27, %v138_v10 }
 0x19b   :  { %3075 = vmatmul.mubr.bf16.gmra.mrb[44].mxu0 %v8701_v9  ;;  %3470 = vmatprep.mubr.bf16.mxu1 %v9658_v17  ;;  %v8729_v17 = vcombine.high %v134_v27, %v138_v10  ;;  %v9662_v9 = vld [vmem:[#allocation6_spill] sm:$0xff]  ;;  %v8743_v40 = vcombine.high %v142_v55, %v146_v5  ;;  %v8755_v27 = vcombine.low %v142_v55, %v146_v5  ;;  %v6854_v55 = vld [vmem:[%s9521_s1 + $0x608] ss:$16 sps:$4 sm:$0xff]   ;;  %v6859_v5 = vld [vmem:[%s9521_s1 + $0x62c] ss:$16 sps:$4 sm:$0xff]  }
 0x19c   :  { %3084 = vmatprep.mubr.bf16.mxu0 %v8703_v48  ;;  %9659 = vst [vmem:[#allocation3_spill] sm:$0xff] %v8727_v51  ;;  %v9661_v48 = vld [vmem:[#allocation5_spill] sm:$0xff] }
 0x19d   :  { %9660 = vst [vmem:[#allocation4_spill] sm:$0xff] %v8729_v17  ;;  %4772 = vmatpush1.bf16.msra.mxu0 %v6935_v31  ;;  %9663 = vst [vmem:[#allocation5_spill] sm:$0xff] %v8741_v7  ;;  %v9665_v31 = vld [vmem:[#allocation7_spill] sm:$0xff] }
 0x19e   :  { %9664 = vst [vmem:[#allocation6_spill] sm:$0xff] %v8743_v40 }
 0x1a2   :  { %3471 = vmatmul.mubr.bf16.gmra.mrb[112].mxu1 %v9661_v48  ;;  %v9666_v48 = vld [vmem:[#allocation8_spill] sm:$0xff] }
 0x1a3   :  { %3085 = vmatmul.mubr.bf16.gmra.mrb[48].mxu0 %v8727_v51  ;;  %3480 = vmatprep.mubr.bf16.mxu1 %v9662_v9  ;;  %v150_v9 = vld [vmem:[%s9522_s0 + $0x3d8] sm:$0xff]  ;;  %v9670_v51 = vld [vmem:[#allocation12_spill] sm:$0xff] }
 0x1a4   :  { %3094 = vmatprep.mubr.bf16.mxu0 %v8729_v17  ;;  %v154_v17 = vld [vmem:[%s9522_s0 + $0x3f8] sm:$0xff] }
 0x1a5   :  { %v8757_v10 = vcombine.high %v150_v9, %v154_v17 }
 0x1aa   :  { %3481 = vmatmul.mubr.bf16.gmra.mrb[116].mxu1 %v9665_v31  ;;  %v9668_v31 = vld [vmem:[#allocation10_spill] sm:$0xff] }
 0x1ab   :  { %3095 = vmatmul.mubr.bf16.gmra.mrb[52].mxu0 %v8741_v7  ;;  %3490 = vmatprep.mubr.bf16.mxu1 %v9666_v48  ;;  %v9667_v7 = vld [vmem:[#allocation9_spill] sm:$0xff]  ;;  %v8763_v48 = vcombine.low %v150_v9, %v154_v17 }
 0x1ac   :  { %3104 = vmatprep.mubr.bf16.mxu0 %v8743_v40  ;;  %v9669_v40 = vld [vmem:[#allocation11_spill] sm:$0xff] }
 0x1ad   :  { %v6857_v17 = vld [vmem:[%s9521_s1 + $0x628] ss:$16 sps:$4 sm:$0xff]   ;;  %v6865_v9 = vld [vmem:[%s9521_s1 + $0x66c] ss:$16 sps:$4 sm:$0xff]  }
 0x1b2   :  { %3491 = vmatmul.mubr.bf16.gmra.mrb[120].mxu1 %v9667_v7  ;;  %v9671_v7 = vld [vmem:[#allocation13_spill] sm:$0xff] }
 0x1b3   :  { %3105 = vmatmul.mubr.bf16.gmra.mrb[56].mxu0 %v8755_v27  ;;  %3500 = vmatprep.mubr.bf16.mxu1 %v9668_v31  ;;  %v9672_v31 = vld [vmem:[#allocation14_spill] sm:$0xff] }
 0x1b4   :  { %3114 = vmatprep.mubr.bf16.mxu0 %v8757_v10 }
 0x1ba   :  { %3501 = vmatmul.mubr.bf16.gmra.mrb[124].mxu1 %v9669_v40  ;;  %v6860_v40 = vld [vmem:[%s9521_s1 + $0x648] ss:$16 sps:$4 sm:$0xff]  }
 0x1bb   :  { %3115 = vmatmul.mubr.bf16.gmra.mrb[60].mxu0 %v8763_v48  ;;  %3543 = vmatprep.mubr.bf16.mxu1 %v9670_v51  ;;  %v6862_v51 = vld [vmem:[%s9521_s1 + $0x64c] ss:$16 sps:$4 sm:$0xff]  }
 0x1c2   :  { %3544 = vmatmul.mubr.bf16.vlgmr.msra.gmra.mrb[64].mxu1 %v9671_v7  ;;  %v6869_v7 = vld [vmem:[%s9521_s1 + $0x688] ss:$16 sps:$4 sm:$0xff]  }
 0x1c3   :  { %3705 = vmatpush1.bf16.msra.mxu1 %v6854_v55  ;;  %3553 = vmatprep.mubr.bf16.mxu1 %v9672_v31  ;;  %v6863_v55 = vld [vmem:[%s9521_s1 + $0x668] ss:$16 sps:$4 sm:$0xff]  }
 0x1c4   :  { %3706 = vmatprep.subr.bf16.mxu1 %v6859_v5  ;;  %v6871_v5 = vld [vmem:[%s9521_s1 + $0x68c] ss:$16 sps:$4 sm:$0xff]   ;;  %v6878_v31 = vld [vmem:[%s9521_s1 + $0x6a8] ss:$16 sps:$4 sm:$0xff]  }
 0x1c7   :  { %3707 = vmatpush1.bf16.msra.mxu1 %v6857_v17  ;;  %v6889_v17 = vld [vmem:[%s9521_s1 + $0x6cc] ss:$16 sps:$4 sm:$0xff]  }
 0x1c8   :  { %3708 = vmatprep.subr.bf16.mxu1 %v6862_v51  ;;  %v6887_v51 = vld [vmem:[%s9521_s1 + $0x6c8] ss:$16 sps:$4 sm:$0xff]  }
 0x1ca   :  { %3554 = vmatmul.mubr.bf16.gmra.mrb[68].mxu1 %v7861_v34  ;;  %v6880_v34 = vld [vmem:[%s9521_s1 + $0x6ac] ss:$16 sps:$4 sm:$0xff]  }
 0x1cb   :  { %3563 = vmatprep.mubr.bf16.mxu1 %v7863_v14  ;;  %3709 = vmatpush1.bf16.msra.mxu1 %v6860_v40  ;;  %v9673_v14 = vld [vmem:[#allocation15_spill] sm:$0xff] }
 0x1cc   :  { %3710 = vmatprep.subr.bf16.mxu1 %v6865_v9  ;;  %v6896_v40 = vld [vmem:[%s9521_s1 + $0x6e8] ss:$16 sps:$4 sm:$0xff]   ;;  %v6907_v9 = vld [vmem:[%s9521_s1 + $0x70c] ss:$16 sps:$4 sm:$0xff]  }
 0x1cf   :  { %3711 = vmatpush1.bf16.msra.mxu1 %v6863_v55  ;;  %v6905_v55 = vld [vmem:[%s9521_s1 + $0x708] ss:$16 sps:$4 sm:$0xff]  }
 0x1d0   :  { %3712 = vmatprep.subr.bf16.mxu1 %v6871_v5  ;;  %v6925_v5 = vld [vmem:[%s9521_s1 + $0x74c] ss:$16 sps:$4 sm:$0xff]  }
 0x1d2   :  { %3564 = vmatmul.mubr.bf16.gmra.mrb[72].mxu1 %v7899_v56  ;;  %v6898_v56 = vld [vmem:[%s9521_s1 + $0x6ec] ss:$16 sps:$4 sm:$0xff]  }
 0x1d3   :  { %3573 = vmatprep.mubr.bf16.mxu1 %v9673_v14  ;;  %3713 = vmatpush1.bf16.msra.mxu1 %v6869_v7  ;;  %v6923_v7 = vld [vmem:[%s9521_s1 + $0x748] ss:$16 sps:$4 sm:$0xff]  }
 0x1d4   :  { %3714 = vmatprep.subr.bf16.mxu1 %v6880_v34  ;;  %v6940_v34 = vld [vmem:[%s9521_s1 + $0x78c] ss:$16 sps:$4 sm:$0xff]   ;;  %v6938_v14 = vld [vmem:[%s9521_s1 + $0x788] ss:$16 sps:$4 sm:$0xff]  }
 0x1d7   :  { %3715 = vmatpush1.bf16.msra.mxu1 %v6878_v31  ;;  %v6946_v31 = vld [vmem:[%s9521_s1 + $0x7cc] ss:$16 sps:$4 sm:$0xff]  }
 0x1d8   :  { %3716 = vmatprep.subr.bf16.mxu1 %v6889_v17  ;;  %v6944_v17 = vld [vmem:[%s9521_s1 + $0x7c8] ss:$16 sps:$4 sm:$0xff]  }
 0x1da   :  { %3574 = vmatmul.mubr.bf16.gmra.mrb[76].mxu1 %v7937_v28  ;;  %v6914_v28 = vld [vmem:[%s9521_s1 + $0x728] ss:$16 sps:$4 sm:$0xff]  }
 0x1db   :  { %3583 = vmatprep.mubr.bf16.mxu1 %v7939_v52  ;;  %3717 = vmatpush1.bf16.msra.mxu1 %v6887_v51  ;;  %v6916_v52 = vld [vmem:[%s9521_s1 + $0x72c] ss:$16 sps:$4 sm:$0xff]   ;;  %v413_v51 = vlaneseq }
 0x1dc   :  { %3718 = vmatprep.subr.bf16.mxu1 %v6898_v56 }
 0x1dd   :  { %v8879_v56 = vshrl.u32 %v413_v51, 7 }
 0x1df   :  { %3719 = vmatpush1.bf16.msra.mxu1 %v6896_v40  ;;  %v419_v40 = vsub.s32 1, %v8879_v56 }
 0x1e0   :  { %3720 = vmatprep.subr.bf16.mxu1 %v6907_v9 }
 0x1e2   :  { %3584 = vmatmul.mubr.bf16.gmra.mrb[80].mxu1 %v7975_v20  ;;  %v6934_v20 = vld [vmem:[%s9521_s1 + $0x76c] ss:$16 sps:$4 sm:$0xff]  }
 0x1e3   :  { %3593 = vmatprep.mubr.bf16.mxu1 %v7977_v44  ;;  %3721 = vmatpush1.bf16.msra.mxu1 %v6905_v55  ;;  %v6932_v44 = vld [vmem:[%s9521_s1 + $0x768] ss:$16 sps:$4 sm:$0xff]  }
 0x1e4   :  { %3722 = vmatprep.subr.bf16.mxu1 %v6916_v52 }
 0x1e7   :  { %3723 = vmatpush1.bf16.msra.mxu1 %v6914_v28 }
 0x1e8   :  { %3724 = vmatprep.subr.bf16.mxu1 %v6925_v5 }
 0x1ea   :  { %3594 = vmatmul.mubr.bf16.gmra.mrb[84].mxu1 %v8013_v42  ;;  %v6943_v42 = vld [vmem:[%s9521_s1 + $0x7ac] ss:$16 sps:$4 sm:$0xff]  }
 0x1eb   :  { %3603 = vmatprep.mubr.bf16.mxu1 %v8015_v62  ;;  %3725 = vmatpush1.bf16.msra.mxu1 %v6923_v7  ;;  %v6941_v62 = vld [vmem:[%s9521_s1 + $0x7a8] ss:$16 sps:$4 sm:$0xff]  }
 0x1ec   :  { %3726 = vmatprep.subr.bf16.mxu1 %v6934_v20 }
 0x1ef   :  { %3727 = vmatpush1.bf16.msra.mxu1 %v6932_v44 }
 0x1f0   :  { %3728 = vmatprep.subr.bf16.mxu1 %v6940_v34 }
 0x1f2   :  { %3604 = vmatmul.mubr.bf16.gmra.mrb[88].mxu1 %v8051_v60  ;;  %v6949_v60 = vld [vmem:[%s9521_s1 + $0x7ec] ss:$16 sps:$4 sm:$0xff]  }
 0x1f3   :  { %3613 = vmatprep.mubr.bf16.mxu1 %v8053_v18  ;;  %3729 = vmatpush1.bf16.msra.mxu1 %v6938_v14  ;;  %v6947_v18 = vld [vmem:[%s9521_s1 + $0x7e8] ss:$16 sps:$4 sm:$0xff]   ;;  %v9674_v14 = vld [vmem:[#allocation16_spill] sm:$0xff] }
 0x1f4   :  { %3730 = vmatprep.subr.bf16.mxu1 %v6943_v42 }
 0x1f7   :  { %3731 = vmatpush1.bf16.msra.mxu1 %v6941_v62 }
 0x1f8   :  { %3732 = vmatprep.subr.bf16.mxu1 %v6946_v31  ;;  %v6952_v31 = vld [vmem:[%s9523_s3 + $0x104] ss:$8 sps:$4 sm:$0xff]  }
 0x1f9   :  { %4934 = vmatprep.subr.bf16.mxu0 %v6952_v31  ;;  %v6955_v31 = vld [vmem:[%s9523_s3 + $0x114] ss:$8 sps:$4 sm:$0xff]  }
 0x1fa   :  { %3614 = vmatmul.mubr.bf16.gmra.mrb[92].mxu1 %v8089_v16  ;;  %v415_v16 = vsub.s32 0, %v8879_v56 }
 0x1fb   :  { %3623 = vmatprep.mubr.bf16.mxu1 %v8091_v38  ;;  %3733 = vmatpush1.bf16.msra.mxu1 %v6944_v17  ;;  %v411_v38 = vld [vmem:[%s9524_s2] sm:$0xf] }
 0x1fc   :  { %3734 = vmatprep.subr.bf16.mxu1 %v6949_v60 }
 0x1ff   :  { %3735 = vmatpush1.bf16.msra.mxu1 %v6947_v18 }
 0x202   :  { %3624 = vmatmul.mubr.bf16.gmra.mrb[96].mxu1 %v8127_v36  ;;  %v8890_v36 = vrot.slane %v411_v38, %v415_v16 }
 0x203   :  { %3633 = vmatprep.mubr.bf16.mxu1 %v8129_v0  ;;  %v8894_v0 = vrot.slane %v411_v38, %v419_v40  ;;  %v9675_v38 = vld [vmem:[#allocation18_spill] sm:$0xff] }
 0x204   :  { %v2392_v55 = vadd.f32 %v8175_v22, %v8890_v36 }
 0x205   :  { %v2394_v5 = vadd.f32 %v8179_v24, %v8894_v0  ;;  %v2398_v24 = vadd.f32 %v8191_v3, %v8890_v36  ;;  %v2400_v17 = vadd.f32 %v8193_v13, %v8894_v0  ;;  %v6950_v3 = vld [vmem:[%s9523_s3 + $0x100] ss:$8 sps:$4 sm:$0xff]  }
 0x20a   :  { %3634 = vmatmul.mubr.bf16.gmra.mrb[100].mxu1 %v8141_v11  ;;  %v2388_v11 = vadd.f32 %v8169_v26, %v8890_v36 }
 0x20b   :  { %3643 = vmatprep.mubr.bf16.mxu1 %v8143_v35  ;;  %v2390_v35 = vadd.f32 %v8171_v57, %v8894_v0 }
 0x212   :  { %3644 = vmatmul.mubr.bf16.gmra.mrb[104].mxu1 %v8155_v33 }
 0x213   :  { %3653 = vmatprep.mubr.bf16.mxu1 %v8157_v47 }
 0x216   :  { %v2966_v9 = vpop.f32.mrb[0].mxu0 }
 0x217   :  { %v5877_v52 = vadd.f32 %v2966_v9, %v2388_v11  ;;  %v2968_v28 = vpop.f32.mrb[1].mxu0  ;;  %v2402_v11 = vadd.f32 %v9675_v38, %v8890_v36  ;;  %v9679_v38 = vld [vmem:[#allocation22_spill] sm:$0xff] }
 0x218   :  { %v5879_v7 = vadd.f32 %v2968_v28, %v2390_v35  ;;  %v2970_v20 = vpop.f32.mrb[2].mxu0 }
 0x219   :  { %v4025_v33 = vmul.f32 0.2, %v5877_v52  ;;  %v5881_v44 = vadd.f32 %v2970_v20, %v2392_v55  ;;  %v2972_v47 = vpop.f32.mrb[3].mxu0  ;;  %vm3897_vm0 = vcmp.gt.f32.partialorder %v5877_v52, 0.0 }
 0x21a   :  { %v4026_v34 = vmul.f32 0.2, %v5879_v7  ;;  %v5883_v26 = vadd.f32 %v2972_v47, %v2394_v5  ;;  %vm3898_vm1 = vcmp.gt.f32.partialorder %v5879_v7, 0.0  ;;  %3654 = vmatmul.mubr.bf16.gmra.mrb[108].mxu1 %v8173_v49 }
 0x21b   :  { %vm3901_vm2 = vcmp.gt.f32.partialorder %v5881_v44, 0.0  ;;  %v4029_v57 = vmul.f32 0.2, %v5881_v44  ;;  %3663 = vmatprep.mubr.bf16.mxu1 %v9674_v14  ;;  %v4153_v42 = vsel %vm3897_vm0, %v5877_v52, %v4025_v33  ;;  %v9676_v52 = vld [vmem:[#allocation20_spill] sm:$0xff] }
 0x21c   :  { %vm3902_vm3 = vcmp.gt.f32.partialorder %v5883_v26, 0.0  ;;  %v4030_v22 = vmul.f32 0.2, %v5883_v26  ;;  %v4154_v51 = vsel %vm3898_vm1, %v5879_v7, %v4026_v34  ;;  %v2404_v28 = vadd.f32 %v9676_v52, %v8894_v0  ;;  %v6953_v14 = vld [vmem:[%s9523_s3 + $0x110] ss:$8 sps:$4 sm:$0xff]  }
 0x21d   :  { %v4157_v62 = vsel %vm3901_vm2, %v5881_v44, %v4029_v57 }
 0x21e   :  { %v4281_v60 = vpack.c.bf16 %v4157_v62, %v4153_v42  ;;  %v2976_v18 = vpop.f32.mrb[4].mxu0  ;;  %v4158_v49 = vsel %vm3902_vm3, %v5883_v26, %v4030_v22  ;;  %v9677_v26 = vld [vmem:[#allocation17_spill] sm:$0xff]  ;;  %v9678_v22 = vld [vmem:[#allocation19_spill] sm:$0xff] }
 0x21f   :  { %v5885_v35 = vadd.f32 %v2976_v18, %v2398_v24  ;;  %v2978_v9 = vpop.f32.mrb[5].mxu0  ;;  %v4282_v55 = vpack.c.bf16 %v4158_v49, %v4154_v51  ;;  %v2408_v24 = vadd.f32 %v8213_v8, %v8890_v36  ;;  %v9680_v8 = vld [vmem:[#allocation24_spill] sm:$0xff] }
 0x220   :  { %v5887_v5 = vadd.f32 %v2978_v9, %v2400_v17  ;;  %v2980_v13 = vpop.f32.mrb[6].mxu0  ;;  %v2410_v17 = vadd.f32 %v8215_v53, %v8894_v0 }
 0x221   :  { %v4033_v20 = vmul.f32 0.2, %v5885_v35  ;;  %v5889_v33 = vadd.f32 %v2980_v13, %v2402_v11  ;;  %v2982_v7 = vpop.f32.mrb[7].mxu0  ;;  %4773 = vmatprep.mubr.bf16.mxu0 %v4282_v55  ;;  %vm3905_vm4 = vcmp.gt.f32.partialorder %v5885_v35, 0.0  ;;  %v2412_v11 = vadd.f32 %v9679_v38, %v8890_v36 }
 0x222   :  { %v4034_v44 = vmul.f32 0.2, %v5887_v5  ;;  %v5891_v47 = vadd.f32 %v2982_v7, %v2404_v28  ;;  %4774 = vmatmul.mubr.bf16.vlgmr.msra.gmra.mrb[64].mxu0 %v4281_v60  ;;  %vm3906_vm5 = vcmp.gt.f32.partialorder %v5887_v5, 0.0  ;;  %3664 = vmatmul.mubr.bf16.gmra.mrb[112].mxu1 %v9677_v26  ;;  %v6956_v26 = vld [vmem:[%s9523_s3 + $0x120] ss:$8 sps:$4 sm:$0xff]  }
 0x223   :  { %vm3909_vm6 = vcmp.gt.f32.partialorder %v5889_v33, 0.0  ;;  %v4037_v34 = vmul.f32 0.2, %v5889_v33  ;;  %4935 = vmatpush1.bf16.msra.mxu0 %v6950_v3  ;;  %3673 = vmatprep.mubr.bf16.mxu1 %v9678_v22  ;;  %v4161_v42 = vsel %vm3905_vm4, %v5885_v35, %v4033_v20  ;;  %v2414_v35 = vadd.f32 %v9680_v8, %v8894_v0 }
 0x224   :  { %vm3910_vm7 = vcmp.gt.f32.partialorder %v5891_v47, 0.0  ;;  %v4038_v57 = vmul.f32 0.2, %v5891_v47  ;;  %v4162_v18 = vsel %vm3906_vm5, %v5887_v5, %v4034_v44  ;;  %4936 = vmatprep.subr.bf16.mxu0 %v6955_v31  ;;  %v9681_v44 = vld [vmem:[#allocation21_spill] sm:$0xff] }
 0x225   :  { %v4165_v62 = vsel %vm3909_vm6, %v5889_v33, %v4037_v34  ;;  %v9682_v34 = vld [vmem:[#allocation23_spill] sm:$0xff] }
 0x226   :  { %v2986_v60 = vpop.f32.mrb[8].mxu0  ;;  %v4166_v51 = vsel %vm3910_vm7, %v5891_v47, %v4038_v57  ;;  %v4285_v49 = vpack.c.bf16 %v4165_v62, %v4161_v42  ;;  %v2418_v57 = vadd.f32 %v8235_v58, %v8890_v36  ;;  %v2420_v42 = vadd.f32 %v8237_v50, %v8894_v0  ;;  %v9684_v58 = vld [vmem:[#allocation28_spill] sm:$0xff] }
 0x227   :  { %v5893_v9 = vadd.f32 %v2986_v60, %v2408_v24  ;;  %v2988_v55 = vpop.f32.mrb[9].mxu0  ;;  %v4286_v3 = vpack.c.bf16 %v4166_v51, %v4162_v18  ;;  %4937 = vmatpush1.bf16.msra.mxu0 %v6953_v14  ;;  %v6958_v24 = vld [vmem:[%s9523_s3 + $0x124] ss:$8 sps:$4 sm:$0xff]  }
 0x228   :  { %v5895_v52 = vadd.f32 %v2988_v55, %v2410_v17  ;;  %v2990_v28 = vpop.f32.mrb[10].mxu0  ;;  %v9683_v18 = vld [vmem:[#allocation26_spill] sm:$0xff]  ;;  %4938 = vmatprep.subr.bf16.mxu0 %v6958_v24 }
 0x229   :  { %v4041_v13 = vmul.f32 0.2, %v5893_v9  ;;  %v5897_v20 = vadd.f32 %v2990_v28, %v2412_v11  ;;  %v2992_v53 = vpop.f32.mrb[11].mxu0  ;;  %4783 = vmatprep.mubr.bf16.mxu0 %v4286_v3  ;;  %vm3913_vm8 = vcmp.gt.f32.partialorder %v5893_v9, 0.0  ;;  %v2422_v51 = vadd.f32 %v9683_v18, %v8890_v36 }
 0x22a   :  { %v4042_v5 = vmul.f32 0.2, %v5895_v52  ;;  %v5899_v33 = vadd.f32 %v2992_v53, %v2414_v35  ;;  %4784 = vmatmul.mubr.bf16.gmra.mrb[68].mxu0 %v4285_v49  ;;  %vm3914_vm9 = vcmp.gt.f32.partialorder %v5895_v52, 0.0  ;;  %3674 = vmatmul.mubr.bf16.gmra.mrb[116].mxu1 %v9681_v44 }
 0x22b   :  { %vm3917_vm10 = vcmp.gt.f32.partialorder %v5897_v20, 0.0  ;;  %v4045_v7 = vmul.f32 0.2, %v5897_v20  ;;  %3683 = vmatprep.mubr.bf16.mxu1 %v9682_v34  ;;  %v4169_v22 = vsel %vm3913_vm8, %v5893_v9, %v4041_v13  ;;  %v2424_v9 = vadd.f32 %v9684_v58, %v8894_v0  ;;  %4939 = vmatpush1.bf16.msra.mxu0 %v6956_v26  ;;  %v6961_v34 = vld [vmem:[%s9523_s3 + $0x134] ss:$8 sps:$4 sm:$0xff]  }
 0x22c   :  { %vm3918_vm11 = vcmp.gt.f32.partialorder %v5899_v33, 0.0  ;;  %v4046_v47 = vmul.f32 0.2, %v5899_v33  ;;  %v4170_v31 = vsel %vm3914_vm9, %v5895_v52, %v4042_v5  ;;  %v9686_v5 = vld [vmem:[#allocation27_spill] sm:$0xff]  ;;  %v9687_v26 = vld [vmem:[#allocation29_spill] sm:$0xff]  ;;  %4940 = vmatprep.subr.bf16.mxu0 %v6961_v34 }
 0x22d   :  { %v4173_v14 = vsel %vm3917_vm10, %v5897_v20, %v4045_v7  ;;  %v9685_v20 = vld [vmem:[#allocation25_spill] sm:$0xff]  ;;  %v2428_v7 = vadd.f32 %v8257_v6, %v8890_v36 }
 0x22e   :  { %v2996_v62 = vpop.f32.mrb[12].mxu0  ;;  %v4174_v17 = vsel %vm3918_vm11, %v5899_v33, %v4046_v47  ;;  %v4289_v60 = vpack.c.bf16 %v4173_v14, %v4169_v22  ;;  %v6959_v33 = vld [vmem:[%s9523_s3 + $0x130] ss:$8 sps:$4 sm:$0xff]  }
 0x22f   :  { %v5901_v49 = vadd.f32 %v2996_v62, %v2418_v57  ;;  %v2998_v38 = vpop.f32.mrb[13].mxu0  ;;  %v4290_v11 = vpack.c.bf16 %v4174_v17, %v4170_v31  ;;  %v2430_v57 = vadd.f32 %v9687_v26, %v8894_v0  ;;  %v9688_v62 = vld [vmem:[#allocation31_spill] sm:$0xff]  ;;  %v9689_v6 = vld [vmem:[#allocation33_spill] sm:$0xff]  ;;  %4941 = vmatpush1.bf16.msra.mxu0 %v6959_v33 }
 0x230   :  { %v5903_v55 = vadd.f32 %v2998_v38, %v2420_v42  ;;  %v3000_v3 = vpop.f32.mrb[14].mxu0  ;;  %v2432_v31 = vadd.f32 %v9688_v62, %v8890_v36  ;;  %v6967_v33 = vld [vmem:[%s9523_s3 + $0x154] ss:$8 sps:$4 sm:$0xff]   ;;  %v6965_v62 = vld [vmem:[%s9523_s3 + $0x150] ss:$8 sps:$4 sm:$0xff]  }
 0x231   :  { %v4049_v8 = vmul.f32 0.2, %v5901_v49  ;;  %v5905_v35 = vadd.f32 %v3000_v3, %v2422_v51  ;;  %v3002_v50 = vpop.f32.mrb[15].mxu0  ;;  %4793 = vmatprep.mubr.bf16.mxu0 %v4290_v11  ;;  %vm3921_vm12 = vcmp.gt.f32.partialorder %v5901_v49, 0.0  ;;  %v2434_v51 = vadd.f32 %v9689_v6, %v8894_v0  ;;  %v6970_v6 = vld [vmem:[%s9523_s3 + $0x164] ss:$8 sps:$4 sm:$0xff]  }
 0x232   :  { %v4050_v52 = vmul.f32 0.2, %v5903_v55  ;;  %v5907_v28 = vadd.f32 %v3002_v50, %v2424_v9  ;;  %4794 = vmatmul.mubr.bf16.gmra.mrb[72].mxu0 %v4289_v60  ;;  %vm3922_vm13 = vcmp.gt.f32.partialorder %v5903_v55, 0.0  ;;  %3684 = vmatmul.mubr.bf16.gmra.mrb[120].mxu1 %v9685_v20  ;;  %v6962_v50 = vld [vmem:[%s9523_s3 + $0x140] ss:$8 sps:$4 sm:$0xff]   ;;  %v2438_v20 = vadd.f32 %v8279_v32, %v8890_v36 }
 0x233   :  { %vm3925_vm14 = vcmp.gt.f32.partialorder %v5905_v35, 0.0  ;;  %v4053_v13 = vmul.f32 0.2, %v5905_v35  ;;  %3693 = vmatprep.mubr.bf16.mxu1 %v9686_v5  ;;  %v4177_v44 = vsel %vm3921_vm12, %v5901_v49, %v4049_v8 }
 0x234   :  { %vm3926_vm15 = vcmp.gt.f32.partialorder %v5907_v28, 0.0  ;;  %v4054_v53 = vmul.f32 0.2, %v5907_v28  ;;  %v4178_v14 = vsel %vm3922_vm13, %v5903_v55, %v4050_v52 }
 0x235   :  { %v4181_v47 = vsel %vm3925_vm14, %v5905_v35, %v4053_v13  ;;  %v9690_v35 = vld [vmem:[#allocation30_spill] sm:$0xff] }
 0x236   :  { %v3006_v22 = vpop.f32.mrb[16].mxu0  ;;  %v4182_v24 = vsel %vm3926_vm15, %v5907_v28, %v4054_v53  ;;  %v4293_v42 = vpack.c.bf16 %v4181_v47, %v4177_v44  ;;  %v9691_v28 = vld [vmem:[#allocation32_spill] sm:$0xff]  ;;  %v6964_v13 = vld [vmem:[%s9523_s3 + $0x144] ss:$8 sps:$4 sm:$0xff]  }
 0x237   :  { %v5909_v17 = vadd.f32 %v3006_v22, %v2428_v7  ;;  %v3008_v60 = vpop.f32.mrb[17].mxu0  ;;  %v4294_v18 = vpack.c.bf16 %v4182_v24, %v4178_v14  ;;  %v9692_v7 = vld [vmem:[#allocation34_spill] sm:$0xff]  ;;  %4942 = vmatprep.subr.bf16.mxu0 %v6964_v13  ;;  %v9693_v22 = vld [vmem:[#allocation36_spill] sm:$0xff] }
 0x238   :  { %v5911_v49 = vadd.f32 %v3008_v60, %v2430_v57  ;;  %v3010_v38 = vpop.f32.mrb[18].mxu0  ;;  %v2440_v44 = vadd.f32 %v9692_v7, %v8894_v0  ;;  %v2442_v14 = vadd.f32 %v9693_v22, %v8890_v36  ;;  %4943 = vmatpush1.bf16.msra.mxu0 %v6962_v50  ;;  %v6973_v50 = vld [vmem:[%s9523_s3 + $0x174] ss:$8 sps:$4 sm:$0xff]   ;;  %v6971_v22 = vld [vmem:[%s9523_s3 + $0x170] ss:$8 sps:$4 sm:$0xff]  }
 0x239   :  { %v4057_v11 = vmul.f32 0.2, %v5909_v17  ;;  %v5913_v58 = vadd.f32 %v3010_v38, %v2432_v31  ;;  %v3012_v9 = vpop.f32.mrb[19].mxu0  ;;  %4803 = vmatprep.mubr.bf16.mxu0 %v4294_v18  ;;  %vm3929_vm0 = vcmp.gt.f32.partialorder %v5909_v17, 0.0  ;;  %v9694_v31 = vld [vmem:[#allocation38_spill] sm:$0xff]  ;;  %4944 = vmatprep.subr.bf16.mxu0 %v6967_v33 }
 0x23a   :  { %v4058_v55 = vmul.f32 0.2, %v5911_v49  ;;  %v5915_v3 = vadd.f32 %v3012_v9, %v2434_v51  ;;  %4804 = vmatmul.mubr.bf16.gmra.mrb[76].mxu0 %v4293_v42  ;;  %vm3930_vm1 = vcmp.gt.f32.partialorder %v5911_v49, 0.0  ;;  %3694 = vmatmul.mubr.bf16.gmra.mrb[124].mxu1 %v9690_v35  ;;  %v9696_v35 = vld [vmem:[#allocation37_spill] sm:$0xff] }
 0x23b   :  { %vm3933_vm2 = vcmp.gt.f32.partialorder %v5913_v58, 0.0  ;;  %v4061_v8 = vmul.f32 0.2, %v5913_v58  ;;  %3736 = vmatprep.mubr.bf16.mxu1 %v9691_v28  ;;  %v4185_v53 = vsel %vm3929_vm0, %v5909_v17, %v4057_v11  ;;  %v2444_v17 = vadd.f32 %v9694_v31, %v8894_v0 }
 0x23c   :  { %vm3934_vm3 = vcmp.gt.f32.partialorder %v5915_v3, 0.0  ;;  %v4062_v52 = vmul.f32 0.2, %v5915_v3  ;;  %v4186_v34 = vsel %vm3930_vm1, %v5911_v49, %v4058_v55  ;;  %v9695_v55 = vld [vmem:[#allocation35_spill] sm:$0xff]  ;;  %4945 = vmatpush1.bf16.msra.mxu0 %v6965_v62 }
 0x23d   :  { %v4189_v5 = vsel %vm3933_vm2, %v5913_v58, %v4061_v8  ;;  %4946 = vmatprep.subr.bf16.mxu0 %v6970_v6  ;;  %v9699_v6 = vld [vmem:[#allocation40_spill] sm:$0xff] }
 0x23e   :  { %v3016_v47 = vpop.f32.mrb[20].mxu0  ;;  %v4190_v26 = vsel %vm3934_vm3, %v5915_v3, %v4062_v52  ;;  %v4297_v57 = vpack.c.bf16 %v4189_v5, %v4185_v53  ;;  %v6968_v3 = vld [vmem:[%s9523_s3 + $0x160] ss:$8 sps:$4 sm:$0xff]   ;;  %v2450_v53 = vadd.f32 %v8315_v21, %v8894_v0 }
 0x23f   :  { %v5917_v24 = vadd.f32 %v3016_v47, %v2438_v20  ;;  %v3018_v42 = vpop.f32.mrb[21].mxu0  ;;  %v4298_v32 = vpack.c.bf16 %v4190_v26, %v4186_v34  ;;  %v9697_v52 = vld [vmem:[#allocation39_spill] sm:$0xff]  ;;  %v2452_v47 = vadd.f32 %v8319_v15, %v8890_v36 }
 0x240   :  { %v5919_v60 = vadd.f32 %v3018_v42, %v2440_v44  ;;  %v3020_v18 = vpop.f32.mrb[22].mxu0  ;;  %v2448_v28 = vadd.f32 %v9697_v52, %v8890_v36  ;;  %4947 = vmatpush1.bf16.msra.mxu0 %v6968_v3 }
 0x241   :  { %v4065_v51 = vmul.f32 0.2, %v5917_v24  ;;  %v5921_v49 = vadd.f32 %v3020_v18, %v2442_v14  ;;  %v3022_v38 = vpop.f32.mrb[23].mxu0  ;;  %4813 = vmatprep.mubr.bf16.mxu0 %v4298_v32  ;;  %vm3937_vm4 = vcmp.gt.f32.partialorder %v5917_v24, 0.0  ;;  %v9698_v14 = vld [vmem:[#allocation42_spill] sm:$0xff]  ;;  %4948 = vmatprep.subr.bf16.mxu0 %v6973_v50 }
 0x242   :  { %v4066_v11 = vmul.f32 0.2, %v5919_v60  ;;  %v5923_v58 = vadd.f32 %v3022_v38, %v2444_v17  ;;  %4814 = vmatmul.mubr.bf16.gmra.mrb[80].mxu0 %v4297_v57  ;;  %vm3938_vm5 = vcmp.gt.f32.partialorder %v5919_v60, 0.0  ;;  %3737 = vmatmul.mubr.bf16.vlgmr.msra.gmra.mrb[64].mxu1 %v9695_v55  ;;  %v6976_v32 = vld [vmem:[%s9523_s3 + $0x184] ss:$8 sps:$4 sm:$0xff]   ;;  %v9700_v38 = vld [vmem:[#allocation41_spill] sm:$0xff] }
 0x243   :  { %vm3941_vm6 = vcmp.gt.f32.partialorder %v5921_v49, 0.0  ;;  %v4069_v9 = vmul.f32 0.2, %v5921_v49  ;;  %3746 = vmatprep.mubr.bf16.mxu1 %v9696_v35  ;;  %v4193_v13 = vsel %vm3937_vm4, %v5917_v24, %v4065_v51  ;;  %v2454_v24 = vadd.f32 %v9698_v14, %v8894_v0  ;;  %v6974_v51 = vld [vmem:[%s9523_s3 + $0x180] ss:$8 sps:$4 sm:$0xff]  }
 0x244   :  { %vm3942_vm7 = vcmp.gt.f32.partialorder %v5923_v58, 0.0  ;;  %v4070_v8 = vmul.f32 0.2, %v5923_v58  ;;  %v4194_v33 = vsel %vm3938_vm5, %v5919_v60, %v4066_v11  ;;  %4949 = vmatpush1.bf16.msra.mxu0 %v6971_v22  ;;  %v6979_v11 = vld [vmem:[%s9523_s3 + $0x194] ss:$8 sps:$4 sm:$0xff]  }
 0x245   :  { %v4197_v20 = vsel %vm3941_vm6, %v5921_v49, %v4069_v9  ;;  %4950 = vmatprep.subr.bf16.mxu0 %v6976_v32 }
 0x246   :  { %v3026_v5 = vpop.f32.mrb[24].mxu0  ;;  %v4198_v7 = vsel %vm3942_vm7, %v5923_v58, %v4070_v8  ;;  %v4301_v44 = vpack.c.bf16 %v4197_v20, %v4193_v13  ;;  %v9701_v58 = vld [vmem:[#allocation43_spill] sm:$0xff]  ;;  %v2460_v8 = vadd.f32 %v8349_v29, %v8894_v0  ;;  %v2462_v13 = vadd.f32 %v8353_v30, %v8890_v36 }
 0x247   :  { %v5925_v34 = vadd.f32 %v3026_v5, %v2448_v28  ;;  %v3028_v26 = vpop.f32.mrb[25].mxu0  ;;  %v4302_v57 = vpack.c.bf16 %v4198_v7, %v4194_v33  ;;  %v2458_v9 = vadd.f32 %v9701_v58, %v8890_v36  ;;  %v6977_v33 = vld [vmem:[%s9523_s3 + $0x190] ss:$8 sps:$4 sm:$0xff]   ;;  %v9702_v7 = vld [vmem:[#allocation46_spill] sm:$0xff] }
 0x248   :  { %v5927_v21 = vadd.f32 %v3028_v26, %v2450_v53  ;;  %v3030_v42 = vpop.f32.mrb[26].mxu0  ;;  %4951 = vmatpush1.bf16.msra.mxu0 %v6974_v51 }
 0x249   :  { %v4073_v62 = vmul.f32 0.2, %v5925_v34  ;;  %v5929_v15 = vadd.f32 %v3030_v42, %v2452_v47  ;;  %v3032_v31 = vpop.f32.mrb[27].mxu0  ;;  %4823 = vmatprep.mubr.bf16.mxu0 %v4302_v57  ;;  %vm3945_vm8 = vcmp.gt.f32.partialorder %v5925_v34, 0.0  ;;  %4952 = vmatprep.subr.bf16.mxu0 %v6979_v11  ;;  %v6980_v42 = vld [vmem:[%s9523_s3 + $0x1a0] ss:$8 sps:$4 sm:$0xff]  }
 0x24a   :  { %v4074_v17 = vmul.f32 0.2, %v5927_v21  ;;  %v5931_v60 = vadd.f32 %v3032_v31, %v2454_v24  ;;  %4824 = vmatmul.mubr.bf16.gmra.mrb[84].mxu0 %v4301_v44  ;;  %vm3946_vm9 = vcmp.gt.f32.partialorder %v5927_v21, 0.0  ;;  %3747 = vmatmul.mubr.bf16.gmra.mrb[68].mxu1 %v9699_v6  ;;  %v2464_v44 = vadd.f32 %v9702_v7, %v8894_v0  ;;  %v9705_v31 = vld [vmem:[#allocation47_spill] sm:$0xff]  ;;  %v9706_v6 = vld [vmem:[#allocation48_spill] sm:$0xff] }
 0x24b   :  { %vm3949_vm10 = vcmp.gt.f32.partialorder %v5929_v15, 0.0  ;;  %v4077_v18 = vmul.f32 0.2, %v5929_v15  ;;  %3756 = vmatprep.mubr.bf16.mxu1 %v9700_v38  ;;  %v4201_v55 = vsel %vm3945_vm8, %v5925_v34, %v4073_v62  ;;  %v6982_v34 = vld [vmem:[%s9523_s3 + $0x1a4] ss:$8 sps:$4 sm:$0xff]   ;;  %v9704_v62 = vld [vmem:[#allocation45_spill] sm:$0xff]  ;;  %v2470_v51 = vadd.f32 %v9706_v6, %v8894_v0 }
 0x24c   :  { %vm3950_vm11 = vcmp.gt.f32.partialorder %v5931_v60, 0.0  ;;  %v4078_v49 = vmul.f32 0.2, %v5931_v60  ;;  %v4202_v50 = vsel %vm3946_vm9, %v5927_v21, %v4074_v17  ;;  %v9703_v21 = vld [vmem:[#allocation44_spill] sm:$0xff]  ;;  %4953 = vmatpush1.bf16.msra.mxu0 %v6977_v33  ;;  %v2468_v17 = vadd.f32 %v9705_v31, %v8890_v36 }
 0x24d   :  { %v4205_v3 = vsel %vm3949_vm10, %v5929_v15, %v4077_v18  ;;  %4954 = vmatprep.subr.bf16.mxu0 %v6982_v34  ;;  %v6985_v15 = vld [vmem:[%s9523_s3 + $0x1b4] ss:$8 sps:$4 sm:$0xff]  }
 0x24e   :  { %v3036_v35 = vpop.f32.mrb[28].mxu0  ;;  %v4206_v52 = vsel %vm3950_vm11, %v5931_v60, %v4078_v49  ;;  %v4305_v28 = vpack.c.bf16 %v4205_v3, %v4201_v55  ;;  %v9709_v34 = vld [vmem:[#allocation49_spill] sm:$0xff] }
 0x24f   :  { %v5933_v20 = vadd.f32 %v3036_v35, %v2458_v9  ;;  %v3038_v53 = vpop.f32.mrb[29].mxu0  ;;  %v4306_v5 = vpack.c.bf16 %v4206_v52, %v4202_v50  ;;  %v9707_v9 = vld [vmem:[#allocation50_spill] sm:$0xff]  ;;  %v6983_v50 = vld [vmem:[%s9523_s3 + $0x1b0] ss:$8 sps:$4 sm:$0xff]  }
 0x250   :  { %v5935_v29 = vadd.f32 %v3038_v53, %v2460_v8  ;;  %v3040_v47 = vpop.f32.mrb[30].mxu0  ;;  %v2472_v55 = vadd.f32 %v9707_v9, %v8890_v36  ;;  %4955 = vmatpush1.bf16.msra.mxu0 %v6980_v42  ;;  %v9708_v52 = vld [vmem:[#allocation52_spill] sm:$0xff]  ;;  %v6988_v53 = vld [vmem:[%s9523_s3 + $0x1c4] ss:$8 sps:$4 sm:$0xff]  }
 0x251   :  { %v4081_v26 = vmul.f32 0.2, %v5933_v20  ;;  %v5937_v30 = vadd.f32 %v3040_v47, %v2462_v13  ;;  %v3042_v57 = vpop.f32.mrb[31].mxu0  ;;  %4833 = vmatprep.mubr.bf16.mxu0 %v4306_v5  ;;  %vm3953_vm12 = vcmp.gt.f32.partialorder %v5933_v20, 0.0  ;;  %4956 = vmatprep.subr.bf16.mxu0 %v6985_v15 }
 0x252   :  { %v4082_v22 = vmul.f32 0.2, %v5935_v29  ;;  %v5939_v14 = vadd.f32 %v3042_v57, %v2464_v44  ;;  %4834 = vmatmul.mubr.bf16.gmra.mrb[88].mxu0 %v4305_v28  ;;  %vm3954_vm13 = vcmp.gt.f32.partialorder %v5935_v29, 0.0  ;;  %3757 = vmatmul.mubr.bf16.gmra.mrb[72].mxu1 %v9703_v21  ;;  %v2474_v28 = vadd.f32 %v9708_v52, %v8894_v0  ;;  %v9710_v57 = vld [vmem:[#allocation51_spill] sm:$0xff] }
 0x253   :  { %vm3957_vm14 = vcmp.gt.f32.partialorder %v5937_v30, 0.0  ;;  %v4085_v24 = vmul.f32 0.2, %v5937_v30  ;;  %3766 = vmatprep.mubr.bf16.mxu1 %v9704_v62  ;;  %v4209_v60 = vsel %vm3953_vm12, %v5933_v20, %v4081_v26  ;;  %v6986_v26 = vld [vmem:[%s9523_s3 + $0x1c0] ss:$8 sps:$4 sm:$0xff]  }
 0x254   :  { %vm3958_vm15 = vcmp.gt.f32.partialorder %v5939_v14, 0.0  ;;  %v4086_v32 = vmul.f32 0.2, %v5939_v14  ;;  %v4210_v38 = vsel %vm3954_vm13, %v5935_v29, %v4082_v22  ;;  %4957 = vmatpush1.bf16.msra.mxu0 %v6983_v50  ;;  %v6991_v22 = vld [vmem:[%s9523_s3 + $0x1d4] ss:$8 sps:$4 sm:$0xff]  }
 0x255   :  { %v4213_v18 = vsel %vm3957_vm14, %v5937_v30, %v4085_v24  ;;  %4958 = vmatprep.subr.bf16.mxu0 %v6988_v53  ;;  %v9715_v53 = vld [vmem:[#allocation55_spill] sm:$0xff] }
 0x256   :  { %v3046_v49 = vpop.f32.mrb[32].mxu0  ;;  %v4214_v11 = vsel %vm3958_vm15, %v5939_v14, %v4086_v32  ;;  %v4309_v58 = vpack.c.bf16 %v4213_v18, %v4209_v60  ;;  %v9711_v14 = vld [vmem:[#allocation53_spill] sm:$0xff]  ;;  %v9712_v32 = vld [vmem:[#allocation54_spill] sm:$0xff]  ;;  %v9713_v18 = vld [vmem:[#allocation56_spill] sm:$0xff] }
 0x257   :  { %v5941_v3 = vadd.f32 %v3046_v49, %v2468_v17  ;;  %v3048_v8 = vpop.f32.mrb[33].mxu0  ;;  %v4310_v35 = vpack.c.bf16 %v4214_v11, %v4210_v38  ;;  %v2478_v24 = vadd.f32 %v9711_v14, %v8890_v36  ;;  %v2480_v62 = vadd.f32 %v9712_v32, %v8894_v0  ;;  %v6989_v11 = vld [vmem:[%s9523_s3 + $0x1d0] ss:$8 sps:$4 sm:$0xff]  }
 0x258   :  { %v5943_v13 = vadd.f32 %v3048_v8, %v2470_v51  ;;  %v3050_v20 = vpop.f32.mrb[34].mxu0  ;;  %v2482_v6 = vadd.f32 %v9713_v18, %v8890_v36  ;;  %4959 = vmatpush1.bf16.msra.mxu0 %v6986_v26  ;;  %v6994_v8 = vld [vmem:[%s9523_s3 + $0x1e4] ss:$8 sps:$4 sm:$0xff]  }
 0x259   :  { %v4089_v5 = vmul.f32 0.2, %v5941_v3  ;;  %v5945_v33 = vadd.f32 %v3050_v20, %v2472_v55  ;;  %v3052_v7 = vpop.f32.mrb[35].mxu0  ;;  %4843 = vmatprep.mubr.bf16.mxu0 %v4310_v35  ;;  %vm3961_vm0 = vcmp.gt.f32.partialorder %v5941_v3, 0.0  ;;  %4960 = vmatprep.subr.bf16.mxu0 %v6991_v22 }
 0x25a   :  { %v4090_v44 = vmul.f32 0.2, %v5943_v13  ;;  %v5947_v29 = vadd.f32 %v3052_v7, %v2474_v28  ;;  %4844 = vmatmul.mubr.bf16.gmra.mrb[92].mxu0 %v4309_v58  ;;  %vm3962_vm1 = vcmp.gt.f32.partialorder %v5943_v13, 0.0  ;;  %3767 = vmatmul.mubr.bf16.gmra.mrb[76].mxu1 %v9709_v34  ;;  %v9714_v58 = vld [vmem:[#allocation58_spill] sm:$0xff]  ;;  %v9716_v7 = vld [vmem:[#allocation57_spill] sm:$0xff]  ;;  %v9717_v34 = vld [vmem:[#allocation59_spill] sm:$0xff] }
 0x25b   :  { %vm3965_vm2 = vcmp.gt.f32.partialorder %v5945_v33, 0.0  ;;  %v4093_v47 = vmul.f32 0.2, %v5945_v33  ;;  %3776 = vmatprep.mubr.bf16.mxu1 %v9710_v57  ;;  %v4217_v21 = vsel %vm3961_vm0, %v5941_v3, %v4089_v5  ;;  %v2484_v9 = vadd.f32 %v9714_v58, %v8894_v0  ;;  %v6992_v5 = vld [vmem:[%s9523_s3 + $0x1e0] ss:$8 sps:$4 sm:$0xff]  }
 0x25c   :  { %vm3966_vm3 = vcmp.gt.f32.partialorder %v5947_v29, 0.0  ;;  %v4094_v30 = vmul.f32 0.2, %v5947_v29  ;;  %v4218_v31 = vsel %vm3962_vm1, %v5943_v13, %v4090_v44  ;;  %4961 = vmatpush1.bf16.msra.mxu0 %v6989_v11  ;;  %v2488_v44 = vadd.f32 %v8464_v12, %v8890_v36  ;;  %v9720_v11 = vld [vmem:[#allocation60_spill] sm:$0xff] }
 0x25d   :  { %v4221_v42 = vsel %vm3965_vm2, %v5945_v33, %v4093_v47  ;;  %4962 = vmatprep.subr.bf16.mxu0 %v6994_v8  ;;  %v2490_v26 = vadd.f32 %v9717_v34, %v8894_v0 }
 0x25e   :  { %v3056_v15 = vpop.f32.mrb[36].mxu0  ;;  %v4222_v17 = vsel %vm3966_vm3, %v5947_v29, %v4094_v30  ;;  %v4313_v60 = vpack.c.bf16 %v4221_v42, %v4217_v21 }
 0x25f   :  { %v5949_v51 = vadd.f32 %v3056_v15, %v2478_v24  ;;  %v3058_v49 = vpop.f32.mrb[37].mxu0  ;;  %v4314_v38 = vpack.c.bf16 %v4222_v17, %v4218_v31  ;;  %v9718_v24 = vld [vmem:[#allocation61_spill] sm:$0xff]  ;;  %v9719_v15 = vld [vmem:[#allocation63_spill] sm:$0xff] }
 0x260   :  { %v5951_v55 = vadd.f32 %v3058_v49, %v2480_v62  ;;  %v3060_v3 = vpop.f32.mrb[38].mxu0  ;;  %v2492_v21 = vadd.f32 %v9718_v24, %v8890_v36  ;;  %4963 = vmatpush1.bf16.msra.mxu0 %v6992_v5  ;;  %v2494_v31 = vadd.f32 %v9719_v15, %v8894_v0  ;;  %v2510_v15 = vadd.f32 %v8558_v1, %v8894_v0 }
 0x261   :  { %v4097_v35 = vmul.f32 0.2, %v5949_v51  ;;  %v5953_v50 = vadd.f32 %v3060_v3, %v2482_v6  ;;  %v3062_v52 = vpop.f32.mrb[39].mxu0  ;;  %4853 = vmatprep.mubr.bf16.mxu0 %v4314_v38  ;;  %vm3969_vm4 = vcmp.gt.f32.partialorder %v5949_v51, 0.0 }
 0x262   :  { %v4098_v28 = vmul.f32 0.2, %v5951_v55  ;;  %v5955_v13 = vadd.f32 %v3062_v52, %v2484_v9  ;;  %4854 = vmatmul.mubr.bf16.gmra.mrb[96].mxu0 %v4313_v60  ;;  %vm3970_vm5 = vcmp.gt.f32.partialorder %v5951_v55, 0.0  ;;  %3777 = vmatmul.mubr.bf16.gmra.mrb[80].mxu1 %v9715_v53  ;;  %v9721_v9 = vld [vmem:[#allocation62_spill] sm:$0xff] }
 0x263   :  { %vm3973_vm6 = vcmp.gt.f32.partialorder %v5953_v50, 0.0  ;;  %v4101_v20 = vmul.f32 0.2, %v5953_v50  ;;  %3786 = vmatprep.mubr.bf16.mxu1 %v9716_v7  ;;  %v4225_v29 = vsel %vm3969_vm4, %v5949_v51, %v4097_v35  ;;  %v2500_v35 = vadd.f32 %v8512_v39, %v8894_v0 }
 0x264   :  { %vm3974_vm7 = vcmp.gt.f32.partialorder %v5955_v13, 0.0  ;;  %v4102_v33 = vmul.f32 0.2, %v5955_v13  ;;  %v4226_v57 = vsel %vm3970_vm5, %v5951_v55, %v4098_v28  ;;  %v2498_v55 = vadd.f32 %v8510_v46, %v8890_v36 }
 0x265   :  { %v4229_v47 = vsel %vm3973_vm6, %v5953_v50, %v4101_v20  ;;  %v9722_v20 = vld [vmem:[#allocation65_spill] sm:$0xff] }
 0x266   :  { %v3066_v30 = vpop.f32.mrb[40].mxu0  ;;  %v4230_v22 = vsel %vm3974_vm7, %v5955_v13, %v4102_v33  ;;  %v4317_v14 = vpack.c.bf16 %v4229_v47, %v4225_v29  ;;  %v2502_v53 = vadd.f32 %v9722_v20, %v8890_v36 }
 0x267   :  { %v5957_v42 = vadd.f32 %v3066_v30, %v2488_v44  ;;  %v3068_v32 = vpop.f32.mrb[41].mxu0  ;;  %v4318_v62 = vpack.c.bf16 %v4230_v22, %v4226_v57  ;;  %v9723_v44 = vld [vmem:[#allocation67_spill] sm:$0xff] }
 0x268   :  { %v5959_v12 = vadd.f32 %v3068_v32, %v2490_v26  ;;  %v3070_v17 = vpop.f32.mrb[42].mxu0  ;;  %v2504_v29 = vadd.f32 %v9723_v44, %v8894_v0 }
 0x269   :  { %v4105_v60 = vmul.f32 0.2, %v5957_v42  ;;  %v5961_v18 = vadd.f32 %v3070_v17, %v2492_v21  ;;  %v3072_v6 = vpop.f32.mrb[43].mxu0  ;;  %4863 = vmatprep.mubr.bf16.mxu0 %v4318_v62  ;;  %vm3977_vm8 = vcmp.gt.f32.partialorder %v5957_v42, 0.0  ;;  %v9725_v21 = vld [vmem:[#allocation66_spill] sm:$0xff] }
 0x26a   :  { %v4106_v51 = vmul.f32 0.2, %v5959_v12  ;;  %v5963_v49 = vadd.f32 %v3072_v6, %v2494_v31  ;;  %4864 = vmatmul.mubr.bf16.gmra.mrb[100].mxu0 %v4317_v14  ;;  %vm3978_vm9 = vcmp.gt.f32.partialorder %v5959_v12, 0.0  ;;  %3787 = vmatmul.mubr.bf16.gmra.mrb[84].mxu1 %v9720_v11  ;;  %v9724_v14 = vld [vmem:[#allocation64_spill] sm:$0xff] }
 0x26b   :  { %vm3981_vm10 = vcmp.gt.f32.partialorder %v5961_v18, 0.0  ;;  %v4109_v38 = vmul.f32 0.2, %v5961_v18  ;;  %3796 = vmatprep.mubr.bf16.mxu1 %v9721_v9  ;;  %v4233_v3 = vsel %vm3977_vm8, %v5957_v42, %v4105_v60  ;;  %v2508_v42 = vadd.f32 %v8556_v43, %v8890_v36 }
 0x26c   :  { %vm3982_vm11 = vcmp.gt.f32.partialorder %v5963_v49, 0.0  ;;  %v4110_v58 = vmul.f32 0.2, %v5963_v49  ;;  %v4234_v52 = vsel %vm3978_vm9, %v5959_v12, %v4106_v51 }
 0x26d   :  { %v4237_v8 = vsel %vm3981_vm10, %v5961_v18, %v4109_v38  ;;  %v2512_v18 = vadd.f32 %v8562_v19, %v8890_v36  ;;  %v2514_v38 = vadd.f32 %v8566_v45, %v8894_v0  ;;  %v9726_v19 = vld [vmem:[#allocation68_spill] sm:$0xff]  ;;  %v2518_v45 = vadd.f32 %v8596_v59, %v8890_v36 }
 0x26e   :  { %v3076_v50 = vpop.f32.mrb[44].mxu0  ;;  %v4238_v28 = vsel %vm3982_vm11, %v5963_v49, %v4110_v58  ;;  %v4321_v13 = vpack.c.bf16 %v4237_v8, %v4233_v3 }
 0x26f   :  { %v5965_v5 = vadd.f32 %v3076_v50, %v2498_v55  ;;  %v3078_v33 = vpop.f32.mrb[45].mxu0  ;;  %v4322_v7 = vpack.c.bf16 %v4238_v28, %v4234_v52  ;;  %v9727_v50 = vld [vmem:[#allocation69_spill] sm:$0xff] }
 0x270   :  { %v5967_v47 = vadd.f32 %v3078_v33, %v2500_v35  ;;  %v3080_v46 = vpop.f32.mrb[46].mxu0 }
 0x271   :  { %v4113_v34 = vmul.f32 0.2, %v5965_v5  ;;  %v5969_v26 = vadd.f32 %v3080_v46, %v2502_v53  ;;  %v3082_v30 = vpop.f32.mrb[47].mxu0  ;;  %4873 = vmatprep.mubr.bf16.mxu0 %v4322_v7  ;;  %vm3985_vm12 = vcmp.gt.f32.partialorder %v5965_v5, 0.0  ;;  %v2522_v7 = vadd.f32 %v8608_v2, %v8890_v36 }
 0x272   :  { %v4114_v39 = vmul.f32 0.2, %v5967_v47  ;;  %v5971_v57 = vadd.f32 %v3082_v30, %v2504_v29  ;;  %4874 = vmatmul.mubr.bf16.gmra.mrb[104].mxu0 %v4321_v13  ;;  %vm3986_vm13 = vcmp.gt.f32.partialorder %v5967_v47, 0.0  ;;  %3797 = vmatmul.mubr.bf16.gmra.mrb[88].mxu1 %v9724_v14  ;;  %v2520_v13 = vadd.f32 %v8604_v63, %v8894_v0  ;;  %v9728_v14 = vld [vmem:[#allocation70_spill] sm:$0xff] }
 0x273   :  { %vm3989_vm14 = vcmp.gt.f32.partialorder %v5969_v26, 0.0  ;;  %v4117_v22 = vmul.f32 0.2, %v5969_v26  ;;  %3806 = vmatprep.mubr.bf16.mxu1 %v9725_v21  ;;  %v4241_v32 = vsel %vm3985_vm12, %v5965_v5, %v4113_v34  ;;  %v2524_v46 = vadd.f32 %v8612_v4, %v8894_v0  ;;  %v9729_v4 = vld [vmem:[#allocation71_spill] sm:$0xff] }
 0x274   :  { %vm3990_vm15 = vcmp.gt.f32.partialorder %v5971_v57, 0.0  ;;  %v4118_v24 = vmul.f32 0.2, %v5971_v57  ;;  %v4242_v12 = vsel %vm3986_vm13, %v5967_v47, %v4114_v39 }
 0x275   :  { %v4245_v62 = vsel %vm3989_vm14, %v5969_v26, %v4117_v22 }
 0x276   :  { %v3086_v31 = vpop.f32.mrb[48].mxu0  ;;  %v4246_v17 = vsel %vm3990_vm15, %v5971_v57, %v4118_v24  ;;  %v4325_v60 = vpack.c.bf16 %v4245_v62, %v4241_v32  ;;  %v2528_v24 = vadd.f32 %v9729_v4, %v8890_v36  ;;  %v2530_v32 = vadd.f32 %v8638_v25, %v8894_v0  ;;  %v9737_v4 = vld [vmem:[#allocation78_spill] sm:$0xff] }
 0x277   :  { %v5973_v6 = vadd.f32 %v3086_v31, %v2508_v42  ;;  %v3088_v51 = vpop.f32.mrb[49].mxu0  ;;  %v4326_v49 = vpack.c.bf16 %v4246_v17, %v4242_v12  ;;  %v2532_v17 = vadd.f32 %v8642_v37, %v8890_v36  ;;  %v9731_v37 = vld [vmem:[#allocation72_spill] sm:$0xff] }
 0x278   :  { %v5975_v11 = vadd.f32 %v3088_v51, %v2510_v15  ;;  %v3090_v43 = vpop.f32.mrb[50].mxu0 }
 0x279   :  { %v4121_v58 = vmul.f32 0.2, %v5973_v6  ;;  %v5977_v9 = vadd.f32 %v3090_v43, %v2512_v18  ;;  %v3092_v55 = vpop.f32.mrb[51].mxu0  ;;  %4883 = vmatprep.mubr.bf16.mxu0 %v4326_v49  ;;  %vm3993_vm0 = vcmp.gt.f32.partialorder %v5973_v6, 0.0 }
 0x27a   :  { %v4122_v1 = vmul.f32 0.2, %v5975_v11  ;;  %v5979_v3 = vadd.f32 %v3092_v55, %v2514_v38  ;;  %4884 = vmatmul.mubr.bf16.gmra.mrb[108].mxu0 %v4325_v60  ;;  %vm3994_vm1 = vcmp.gt.f32.partialorder %v5975_v11, 0.0  ;;  %3807 = vmatmul.mubr.bf16.gmra.mrb[92].mxu1 %v9726_v19 }
 0x27b   :  { %vm3997_vm2 = vcmp.gt.f32.partialorder %v5977_v9, 0.0  ;;  %v4125_v8 = vmul.f32 0.2, %v5977_v9  ;;  %3816 = vmatprep.mubr.bf16.mxu1 %v9727_v50  ;;  %v4249_v52 = vsel %vm3993_vm0, %v5973_v6, %v4121_v58  ;;  %v9730_v6 = vld [vmem:[#allocation74_spill] sm:$0xff] }
 0x27c   :  { %vm3998_vm3 = vcmp.gt.f32.partialorder %v5979_v3, 0.0  ;;  %v4126_v35 = vmul.f32 0.2, %v5979_v3  ;;  %v4250_v53 = vsel %vm3994_vm1, %v5975_v11, %v4122_v1  ;;  %v2534_v51 = vadd.f32 %v9730_v6, %v8894_v0 }
 0x27d   :  { %v4253_v28 = vsel %vm3997_vm2, %v5977_v9, %v4125_v8  ;;  %v9733_v8 = vld [vmem:[#allocation75_spill] sm:$0xff] }
 0x27e   :  { %v3096_v20 = vpop.f32.mrb[52].mxu0  ;;  %v4254_v5 = vsel %vm3998_vm3, %v5979_v3, %v4126_v35  ;;  %v4329_v33 = vpack.c.bf16 %v4253_v28, %v4249_v52  ;;  %v9732_v3 = vld [vmem:[#allocation73_spill] sm:$0xff]  ;;  %v2538_v19 = vadd.f32 %v9733_v8, %v8890_v36 }
 0x27f   :  { %v5981_v44 = vadd.f32 %v3096_v20, %v2518_v45  ;;  %v3098_v29 = vpop.f32.mrb[53].mxu0  ;;  %v4330_v47 = vpack.c.bf16 %v4254_v5, %v4250_v53  ;;  %v2540_v45 = vadd.f32 %v8672_v54, %v8894_v0  ;;  %v2542_v53 = vadd.f32 %v8676_v61, %v8890_v36  ;;  %v9734_v61 = vld [vmem:[#allocation76_spill] sm:$0xff] }
 0x280   :  { %v5983_v34 = vadd.f32 %v3098_v29, %v2520_v13  ;;  %v3100_v59 = vpop.f32.mrb[54].mxu0 }
 0x281   :  { %v4129_v26 = vmul.f32 0.2, %v5981_v44  ;;  %v5985_v30 = vadd.f32 %v3100_v59, %v2522_v7  ;;  %v3102_v39 = vpop.f32.mrb[55].mxu0  ;;  %4893 = vmatprep.mubr.bf16.mxu0 %v4330_v47  ;;  %vm4001_vm4 = vcmp.gt.f32.partialorder %v5981_v44, 0.0 }
 0x282   :  { %v4130_v63 = vmul.f32 0.2, %v5983_v34  ;;  %v5987_v57 = vadd.f32 %v3102_v39, %v2524_v46  ;;  %4894 = vmatmul.mubr.bf16.gmra.mrb[112].mxu0 %v4329_v33  ;;  %vm4002_vm5 = vcmp.gt.f32.partialorder %v5983_v34, 0.0  ;;  %3817 = vmatmul.mubr.bf16.gmra.mrb[96].mxu1 %v8606_v41  ;;  %v9735_v39 = vld [vmem:[#allocation77_spill] sm:$0xff] }
 0x283   :  { %vm4005_vm6 = vcmp.gt.f32.partialorder %v5985_v30, 0.0  ;;  %v4133_v22 = vmul.f32 0.2, %v5985_v30  ;;  %3826 = vmatprep.mubr.bf16.mxu1 %v9728_v14  ;;  %v4257_v21 = vsel %vm4001_vm4, %v5981_v44, %v4129_v26  ;;  %v2544_v44 = vadd.f32 %v8680_v23, %v8894_v0  ;;  %v9736_v14 = vld [vmem:[#allocation2_spill] sm:$0xff] }
 0x284   :  { %vm4006_vm7 = vcmp.gt.f32.partialorder %v5987_v57, 0.0  ;;  %v4134_v2 = vmul.f32 0.2, %v5987_v57  ;;  %v4258_v15 = vsel %vm4002_vm5, %v5983_v34, %v4130_v63 }
 0x285   :  { %v4261_v42 = vsel %vm4005_vm6, %v5985_v30, %v4133_v22 }
 0x286   :  { %v3106_v62 = vpop.f32.mrb[56].mxu0  ;;  %v4262_v31 = vsel %vm4006_vm7, %v5987_v57, %v4134_v2  ;;  %v4333_v12 = vpack.c.bf16 %v4261_v42, %v4257_v21  ;;  %v6995_v21 = vld [vmem:[%s9523_s3 + $0x1f0] ss:$8 sps:$4 sm:$0xff]   ;;  %v9738_v42 = vld [vmem:[#allocation3_spill] sm:$0xff] }
 0x287   :  { %v5989_v41 = vadd.f32 %v3106_v62, %v2528_v24  ;;  %v3108_v60 = vpop.f32.mrb[57].mxu0  ;;  %v4334_v18 = vpack.c.bf16 %v4262_v31, %v4258_v15  ;;  %v6997_v24 = vld [vmem:[%s9523_s3 + $0x1f4] ss:$8 sps:$4 sm:$0xff]   ;;  %v9741_v15 = vld [vmem:[#allocation6_spill] sm:$0xff]  ;;  %v423_v31 = vsub.s32 2, %v8879_v56 }
 0x288   :  { %v5991_v49 = vadd.f32 %v3108_v60, %v2530_v32  ;;  %v3110_v38 = vpop.f32.mrb[58].mxu0  ;;  %4964 = vmatprep.subr.bf16.mxu0 %v6997_v24  ;;  %v9739_v32 = vld [vmem:[#allocation4_spill] sm:$0xff]  ;;  %v9740_v62 = vld [vmem:[#allocation5_spill] sm:$0xff] }
 0x289   :  { %v4137_v11 = vmul.f32 0.2, %v5989_v41  ;;  %v5993_v43 = vadd.f32 %v3110_v38, %v2532_v17  ;;  %v3112_v58 = vpop.f32.mrb[59].mxu0  ;;  %4903 = vmatprep.mubr.bf16.mxu0 %v4334_v18  ;;  %vm4009_vm8 = vcmp.gt.f32.partialorder %v5989_v41, 0.0  ;;  %4965 = vmatpush1.bf16.msra.mxu0 %v6995_v21  ;;  %v6998_v17 = vld [vmem:[%s9524_s2] sm:$0xf] }
 0x28a   :  { %v4138_v25 = vmul.f32 0.2, %v5991_v49  ;;  %v5995_v9 = vadd.f32 %v3112_v58, %v2534_v51  ;;  %4904 = vmatmul.mubr.bf16.gmra.mrb[116].mxu0 %v4333_v12  ;;  %vm4010_vm9 = vcmp.gt.f32.partialorder %v5991_v49, 0.0  ;;  %3827 = vmatmul.mubr.bf16.gmra.mrb[100].mxu1 %v9731_v37  ;;  %v427_v12 = vsub.s32 3, %v8879_v56 }
 0x28b   :  { %vm4013_vm10 = vcmp.gt.f32.partialorder %v5993_v43, 0.0  ;;  %v4141_v55 = vmul.f32 0.2, %v5993_v43  ;;  %3836 = vmatprep.mubr.bf16.mxu1 %v9732_v3  ;;  %v4265_v35 = vsel %vm4009_vm8, %v5989_v41, %v4137_v11  ;;  %v9176_v41 = vrot.slane %v6998_v17, %v423_v31 }
 0x28c   :  { %vm4014_vm11 = vcmp.gt.f32.partialorder %v5995_v9, 0.0  ;;  %v4142_v1 = vmul.f32 0.2, %v5995_v9  ;;  %v4266_v28 = vsel %vm4010_vm9, %v5991_v49, %v4138_v25  ;;  %v9178_v60 = vrot.slane %v6998_v17, %v427_v12 }
 0x28d   :  { %v4269_v50 = vsel %vm4013_vm10, %v5993_v43, %v4141_v55 }
 0x28e   :  { %v3116_v52 = vpop.f32.mrb[60].mxu0  ;;  %v4270_v13 = vsel %vm4014_vm11, %v5995_v9, %v4142_v1  ;;  %v4337_v20 = vpack.c.bf16 %v4269_v50, %v4265_v35 }
 0x28f   :  { %v5997_v5 = vadd.f32 %v3116_v52, %v2538_v19  ;;  %v3118_v33 = vpop.f32.mrb[61].mxu0  ;;  %v4338_v7 = vpack.c.bf16 %v4270_v13, %v4266_v28 }
 0x290   :  { %v5999_v29 = vadd.f32 %v3118_v33, %v2540_v45  ;;  %v3120_v47 = vpop.f32.mrb[62].mxu0 }
 0x291   :  { %v4145_v46 = vmul.f32 0.2, %v5997_v5  ;;  %v6001_v34 = vadd.f32 %v3120_v47, %v2542_v53  ;;  %v3122_v59 = vpop.f32.mrb[63].mxu0  ;;  %4913 = vmatprep.mubr.bf16.mxu0 %v4338_v7  ;;  %vm4017_vm12 = vcmp.gt.f32.partialorder %v5997_v5, 0.0 }
 0x292   :  { %v4146_v54 = vmul.f32 0.2, %v5999_v29  ;;  %v6003_v26 = vadd.f32 %v3122_v59, %v2544_v44  ;;  %4914 = vmatmul.mubr.bf16.gmra.mrb[120].mxu0 %v4337_v20  ;;  %vm4018_vm13 = vcmp.gt.f32.partialorder %v5999_v29, 0.0  ;;  %3837 = vmatmul.mubr.bf16.gmra.mrb[104].mxu1 %v9734_v61 }
 0x293   :  { %vm4021_vm14 = vcmp.gt.f32.partialorder %v6001_v34, 0.0  ;;  %v4149_v30 = vmul.f32 0.2, %v6001_v34  ;;  %3846 = vmatprep.mubr.bf16.mxu1 %v9735_v39  ;;  %v4273_v23 = vsel %vm4017_vm12, %v5997_v5, %v4145_v46 }
 0x294   :  { %vm4022_vm15 = vcmp.gt.f32.partialorder %v6003_v26, 0.0  ;;  %v4150_v36 = vmul.f32 0.2, %v6003_v26  ;;  %v4274_v63 = vsel %vm4018_vm13, %v5999_v29, %v4146_v54 }
 0x295   :  { %v4277_v0 = vsel %vm4021_vm14, %v6001_v34, %v4149_v30 }
 0x296   :  { %v4278_v57 = vsel %vm4022_vm15, %v6003_v26, %v4150_v36  ;;  %v4341_v22 = vpack.c.bf16 %v4277_v0, %v4273_v23 }
 0x297   :  { %v4342_v2 = vpack.c.bf16 %v4278_v57, %v4274_v63 }
 0x299   :  { %4923 = vmatprep.mubr.bf16.mxu0 %v4342_v2 }
 0x29a   :  { %4924 = vmatmul.mubr.bf16.gmra.mrb[124].mxu0 %v4341_v22  ;;  %3847 = vmatmul.mubr.bf16.gmra.mrb[108].mxu1 %v9736_v14 }
 0x29b   :  { %3856 = vmatprep.mubr.bf16.mxu1 %v9737_v4 }
 0x2a2   :  { %3857 = vmatmul.mubr.bf16.gmra.mrb[112].mxu1 %v9738_v42 }
 0x2a3   :  { %3866 = vmatprep.mubr.bf16.mxu1 %v9739_v32 }
 0x2aa   :  { %3867 = vmatmul.mubr.bf16.gmra.mrb[116].mxu1 %v9740_v62 }
 0x2ab   :  { %3876 = vmatprep.mubr.bf16.mxu1 %v9741_v15 }
 0x2b2   :  { %3877 = vmatmul.mubr.bf16.gmra.mrb[120].mxu1 %v8755_v27 }
 0x2b3   :  { %3886 = vmatprep.mubr.bf16.mxu1 %v8757_v10 }
 0x2ba   :  { %3887 = vmatmul.mubr.bf16.gmra.mrb[124].mxu1 %v8763_v48 }
 0x315   :  { %v3738_v18 = vpop.f32.mrb[64].mxu1 }
 0x316   :  { %v6004_v6 = vadd.f32 %v3738_v18, %v9176_v41  ;;  %v3740_v27 = vpop.f32.mrb[65].mxu1 }
 0x317   :  { %v6005_v10 = vadd.f32 %v3740_v27, %v9178_v60  ;;  %v3742_v51 = vpop.f32.mrb[66].mxu1 }
 0x318   :  { %v4027_v48 = vmul.f32 0.2, %v6004_v6  ;;  %v6006_v49 = vadd.f32 %v3742_v51, %v9176_v41  ;;  %v3744_v38 = vpop.f32.mrb[67].mxu1  ;;  %vm3899_vm0 = vcmp.gt.f32.partialorder %v6004_v6, 0.0 }
 0x319   :  { %v4028_v11 = vmul.f32 0.2, %v6005_v10  ;;  %v6007_v43 = vadd.f32 %v3744_v38, %v9178_v60  ;;  %vm3900_vm1 = vcmp.gt.f32.partialorder %v6005_v10, 0.0 }
 0x31a   :  { %vm3903_vm2 = vcmp.gt.f32.partialorder %v6006_v49, 0.0  ;;  %v4031_v58 = vmul.f32 0.2, %v6006_v49  ;;  %v4155_v9 = vsel %vm3899_vm0, %v6004_v6, %v4027_v48 }
 0x31b   :  { %vm3904_vm3 = vcmp.gt.f32.partialorder %v6007_v43, 0.0  ;;  %v4032_v25 = vmul.f32 0.2, %v6007_v43  ;;  %v4156_v3 = vsel %vm3900_vm1, %v6005_v10, %v4028_v11 }
 0x31c   :  { %v4159_v55 = vsel %vm3903_vm2, %v6006_v49, %v4031_v58 }
 0x31d   :  { %v4283_v37 = vpack.c.bf16 %v4159_v55, %v4155_v9  ;;  %v3748_v1 = vpop.f32.mrb[68].mxu1  ;;  %v4160_v8 = vsel %vm3904_vm3, %v6007_v43, %v4032_v25 }
 0x31e   :  { %v6008_v19 = vadd.f32 %v3748_v1, %v9176_v41  ;;  %v3750_v35 = vpop.f32.mrb[69].mxu1  ;;  %v4284_v50 = vpack.c.bf16 %v4160_v8, %v4156_v3 }
 0x31f   :  { %v6009_v45 = vadd.f32 %v3750_v35, %v9178_v60  ;;  %v3752_v52 = vpop.f32.mrb[70].mxu1 }
 0x320   :  { %v4035_v28 = vmul.f32 0.2, %v6008_v19  ;;  %v6010_v13 = vadd.f32 %v3752_v52, %v9176_v41  ;;  %v3754_v20 = vpop.f32.mrb[71].mxu1  ;;  %4966 = vmatprep.mubr.bf16.mxu0 %v4284_v50  ;;  %vm3907_vm4 = vcmp.gt.f32.partialorder %v6008_v19, 0.0 }
 0x321   :  { %v4036_v53 = vmul.f32 0.2, %v6009_v45  ;;  %v6011_v5 = vadd.f32 %v3754_v20, %v9178_v60  ;;  %4967 = vmatmul.mubr.bf16.vlgmr.msra.gmra.mrb[64].mxu0 %v4283_v37  ;;  %vm3908_vm5 = vcmp.gt.f32.partialorder %v6009_v45, 0.0 }
 0x322   :  { %vm3911_vm6 = vcmp.gt.f32.partialorder %v6010_v13, 0.0  ;;  %v4039_v33 = vmul.f32 0.2, %v6010_v13  ;;  %v4163_v44 = vsel %vm3907_vm4, %v6008_v19, %v4035_v28 }
 0x323   :  { %vm3912_vm7 = vcmp.gt.f32.partialorder %v6011_v5, 0.0  ;;  %v4040_v7 = vmul.f32 0.2, %v6011_v5  ;;  %v4164_v46 = vsel %vm3908_vm5, %v6009_v45, %v4036_v53 }
 0x324   :  { %v4167_v29 = vsel %vm3911_vm6, %v6010_v13, %v4039_v33 }
 0x325   :  { %v3758_v47 = vpop.f32.mrb[72].mxu1  ;;  %v4168_v34 = vsel %vm3912_vm7, %v6011_v5, %v4040_v7  ;;  %v4287_v59 = vpack.c.bf16 %v4167_v29, %v4163_v44 }
 0x326   :  { %v6012_v54 = vadd.f32 %v3758_v47, %v9176_v41  ;;  %v3760_v26 = vpop.f32.mrb[73].mxu1  ;;  %v4288_v30 = vpack.c.bf16 %v4168_v34, %v4164_v46 }
 0x327   :  { %v6013_v61 = vadd.f32 %v3760_v26, %v9178_v60  ;;  %v3762_v36 = vpop.f32.mrb[74].mxu1 }
 0x328   :  { %v4043_v39 = vmul.f32 0.2, %v6012_v54  ;;  %v6014_v23 = vadd.f32 %v3762_v36, %v9176_v41  ;;  %v3764_v0 = vpop.f32.mrb[75].mxu1  ;;  %4976 = vmatprep.mubr.bf16.mxu0 %v4288_v30  ;;  %vm3915_vm8 = vcmp.gt.f32.partialorder %v6012_v54, 0.0 }
 0x329   :  { %v4044_v63 = vmul.f32 0.2, %v6013_v61  ;;  %v6015_v57 = vadd.f32 %v3764_v0, %v9178_v60  ;;  %4977 = vmatmul.mubr.bf16.gmra.mrb[68].mxu0 %v4287_v59  ;;  %vm3916_vm9 = vcmp.gt.f32.partialorder %v6013_v61, 0.0 }
 0x32a   :  { %vm3919_vm10 = vcmp.gt.f32.partialorder %v6014_v23, 0.0  ;;  %v4047_v22 = vmul.f32 0.2, %v6014_v23  ;;  %v4171_v14 = vsel %vm3915_vm8, %v6012_v54, %v4043_v39 }
 0x32b   :  { %vm3920_vm11 = vcmp.gt.f32.partialorder %v6015_v57, 0.0  ;;  %v4048_v2 = vmul.f32 0.2, %v6015_v57  ;;  %v4172_v21 = vsel %vm3916_vm9, %v6013_v61, %v4044_v63 }
 0x32c   :  { %v4175_v4 = vsel %vm3919_vm10, %v6014_v23, %v4047_v22 }
 0x32d   :  { %v3768_v24 = vpop.f32.mrb[76].mxu1  ;;  %v4176_v42 = vsel %vm3920_vm11, %v6015_v57, %v4048_v2  ;;  %v4291_v32 = vpack.c.bf16 %v4175_v4, %v4171_v14 }
 0x32e   :  { %v6016_v62 = vadd.f32 %v3768_v24, %v9176_v41  ;;  %v3770_v15 = vpop.f32.mrb[77].mxu1  ;;  %v4292_v31 = vpack.c.bf16 %v4176_v42, %v4172_v21 }
 0x32f   :  { %v6017_v12 = vadd.f32 %v3770_v15, %v9178_v60  ;;  %v3772_v17 = vpop.f32.mrb[78].mxu1 }
 0x330   :  { %v4051_v18 = vmul.f32 0.2, %v6016_v62  ;;  %v6018_v6 = vadd.f32 %v3772_v17, %v9176_v41  ;;  %v3774_v27 = vpop.f32.mrb[79].mxu1  ;;  %4986 = vmatprep.mubr.bf16.mxu0 %v4292_v31  ;;  %vm3923_vm12 = vcmp.gt.f32.partialorder %v6016_v62, 0.0 }
 0x331   :  { %v4052_v10 = vmul.f32 0.2, %v6017_v12  ;;  %v6019_v51 = vadd.f32 %v3774_v27, %v9178_v60  ;;  %4987 = vmatmul.mubr.bf16.gmra.mrb[72].mxu0 %v4291_v32  ;;  %vm3924_vm13 = vcmp.gt.f32.partialorder %v6017_v12, 0.0 }
 0x332   :  { %vm3927_vm14 = vcmp.gt.f32.partialorder %v6018_v6, 0.0  ;;  %v4055_v48 = vmul.f32 0.2, %v6018_v6  ;;  %v4179_v38 = vsel %vm3923_vm12, %v6016_v62, %v4051_v18 }
 0x333   :  { %vm3928_vm15 = vcmp.gt.f32.partialorder %v6019_v51, 0.0  ;;  %v4056_v49 = vmul.f32 0.2, %v6019_v51  ;;  %v4180_v58 = vsel %vm3924_vm13, %v6017_v12, %v4052_v10 }
 0x334   :  { %v4183_v11 = vsel %vm3927_vm14, %v6018_v6, %v4055_v48 }
 0x335   :  { %v3778_v43 = vpop.f32.mrb[80].mxu1  ;;  %v4184_v25 = vsel %vm3928_vm15, %v6019_v51, %v4056_v49  ;;  %v4295_v9 = vpack.c.bf16 %v4183_v11, %v4179_v38 }
 0x336   :  { %v6020_v55 = vadd.f32 %v3778_v43, %v9176_v41  ;;  %v3780_v37 = vpop.f32.mrb[81].mxu1  ;;  %v4296_v1 = vpack.c.bf16 %v4184_v25, %v4180_v58 }
 0x337   :  { %v6021_v3 = vadd.f32 %v3780_v37, %v9178_v60  ;;  %v3782_v8 = vpop.f32.mrb[82].mxu1 }
 0x338   :  { %v4059_v19 = vmul.f32 0.2, %v6020_v55  ;;  %v6022_v35 = vadd.f32 %v3782_v8, %v9176_v41  ;;  %v3784_v50 = vpop.f32.mrb[83].mxu1  ;;  %4996 = vmatprep.mubr.bf16.mxu0 %v4296_v1  ;;  %vm3931_vm0 = vcmp.gt.f32.partialorder %v6020_v55, 0.0 }
 0x339   :  { %v4060_v45 = vmul.f32 0.2, %v6021_v3  ;;  %v6023_v52 = vadd.f32 %v3784_v50, %v9178_v60  ;;  %4997 = vmatmul.mubr.bf16.gmra.mrb[76].mxu0 %v4295_v9  ;;  %vm3932_vm1 = vcmp.gt.f32.partialorder %v6021_v3, 0.0 }
 0x33a   :  { %vm3935_vm2 = vcmp.gt.f32.partialorder %v6022_v35, 0.0  ;;  %v4063_v28 = vmul.f32 0.2, %v6022_v35  ;;  %v4187_v20 = vsel %vm3931_vm0, %v6020_v55, %v4059_v19 }
 0x33b   :  { %vm3936_vm3 = vcmp.gt.f32.partialorder %v6023_v52, 0.0  ;;  %v4064_v13 = vmul.f32 0.2, %v6023_v52  ;;  %v4188_v33 = vsel %vm3932_vm1, %v6021_v3, %v4060_v45 }
 0x33c   :  { %v4191_v53 = vsel %vm3935_vm2, %v6022_v35, %v4063_v28 }
 0x33d   :  { %v3788_v5 = vpop.f32.mrb[84].mxu1  ;;  %v4192_v7 = vsel %vm3936_vm3, %v6023_v52, %v4064_v13  ;;  %v4299_v44 = vpack.c.bf16 %v4191_v53, %v4187_v20 }
 0x33e   :  { %v6024_v29 = vadd.f32 %v3788_v5, %v9176_v41  ;;  %v3790_v47 = vpop.f32.mrb[85].mxu1  ;;  %v4300_v46 = vpack.c.bf16 %v4192_v7, %v4188_v33 }
 0x33f   :  { %v6025_v34 = vadd.f32 %v3790_v47, %v9178_v60  ;;  %v3792_v59 = vpop.f32.mrb[86].mxu1 }
 0x340   :  { %v4067_v54 = vmul.f32 0.2, %v6024_v29  ;;  %v6026_v26 = vadd.f32 %v3792_v59, %v9176_v41  ;;  %v3794_v30 = vpop.f32.mrb[87].mxu1  ;;  %5006 = vmatprep.mubr.bf16.mxu0 %v4300_v46  ;;  %vm3939_vm4 = vcmp.gt.f32.partialorder %v6024_v29, 0.0 }
 0x341   :  { %v4068_v61 = vmul.f32 0.2, %v6025_v34  ;;  %v6027_v36 = vadd.f32 %v3794_v30, %v9178_v60  ;;  %5007 = vmatmul.mubr.bf16.gmra.mrb[80].mxu0 %v4299_v44  ;;  %vm3940_vm5 = vcmp.gt.f32.partialorder %v6025_v34, 0.0 }
 0x342   :  { %vm3943_vm6 = vcmp.gt.f32.partialorder %v6026_v26, 0.0  ;;  %v4071_v39 = vmul.f32 0.2, %v6026_v26  ;;  %v4195_v0 = vsel %vm3939_vm4, %v6024_v29, %v4067_v54 }
 0x343   :  { %vm3944_vm7 = vcmp.gt.f32.partialorder %v6027_v36, 0.0  ;;  %v4072_v23 = vmul.f32 0.2, %v6027_v36  ;;  %v4196_v22 = vsel %vm3940_vm5, %v6025_v34, %v4068_v61 }
 0x344   :  { %v4199_v63 = vsel %vm3943_vm6, %v6026_v26, %v4071_v39 }
 0x345   :  { %v3798_v57 = vpop.f32.mrb[88].mxu1  ;;  %v4200_v2 = vsel %vm3944_vm7, %v6027_v36, %v4072_v23  ;;  %v4303_v14 = vpack.c.bf16 %v4199_v63, %v4195_v0 }
 0x346   :  { %v6028_v4 = vadd.f32 %v3798_v57, %v9176_v41  ;;  %v3800_v24 = vpop.f32.mrb[89].mxu1  ;;  %v4304_v21 = vpack.c.bf16 %v4200_v2, %v4196_v22 }
 0x347   :  { %v6029_v42 = vadd.f32 %v3800_v24, %v9178_v60  ;;  %v3802_v32 = vpop.f32.mrb[90].mxu1 }
 0x348   :  { %v4075_v62 = vmul.f32 0.2, %v6028_v4  ;;  %v6030_v15 = vadd.f32 %v3802_v32, %v9176_v41  ;;  %v3804_v31 = vpop.f32.mrb[91].mxu1  ;;  %5016 = vmatprep.mubr.bf16.mxu0 %v4304_v21  ;;  %vm3947_vm8 = vcmp.gt.f32.partialorder %v6028_v4, 0.0 }
 0x349   :  { %v4076_v12 = vmul.f32 0.2, %v6029_v42  ;;  %v6031_v17 = vadd.f32 %v3804_v31, %v9178_v60  ;;  %5017 = vmatmul.mubr.bf16.gmra.mrb[84].mxu0 %v4303_v14  ;;  %vm3948_vm9 = vcmp.gt.f32.partialorder %v6029_v42, 0.0 }
 0x34a   :  { %vm3951_vm10 = vcmp.gt.f32.partialorder %v6030_v15, 0.0  ;;  %v4079_v18 = vmul.f32 0.2, %v6030_v15  ;;  %v4203_v27 = vsel %vm3947_vm8, %v6028_v4, %v4075_v62 }
 0x34b   :  { %vm3952_vm11 = vcmp.gt.f32.partialorder %v6031_v17, 0.0  ;;  %v4080_v6 = vmul.f32 0.2, %v6031_v17  ;;  %v4204_v48 = vsel %vm3948_vm9, %v6029_v42, %v4076_v12 }
 0x34c   :  { %v4207_v10 = vsel %vm3951_vm10, %v6030_v15, %v4079_v18 }
 0x34d   :  { %v3808_v51 = vpop.f32.mrb[92].mxu1  ;;  %v4208_v49 = vsel %vm3952_vm11, %v6031_v17, %v4080_v6  ;;  %v4307_v38 = vpack.c.bf16 %v4207_v10, %v4203_v27 }
 0x34e   :  { %v6032_v11 = vadd.f32 %v3808_v51, %v9176_v41  ;;  %v3810_v43 = vpop.f32.mrb[93].mxu1  ;;  %v4308_v58 = vpack.c.bf16 %v4208_v49, %v4204_v48 }
 0x34f   :  { %v6033_v25 = vadd.f32 %v3810_v43, %v9178_v60  ;;  %v3812_v9 = vpop.f32.mrb[94].mxu1 }
 0x350   :  { %v4083_v55 = vmul.f32 0.2, %v6032_v11  ;;  %v6034_v37 = vadd.f32 %v3812_v9, %v9176_v41  ;;  %v3814_v1 = vpop.f32.mrb[95].mxu1  ;;  %5026 = vmatprep.mubr.bf16.mxu0 %v4308_v58  ;;  %vm3955_vm12 = vcmp.gt.f32.partialorder %v6032_v11, 0.0 }
 0x351   :  { %v4084_v3 = vmul.f32 0.2, %v6033_v25  ;;  %v6035_v8 = vadd.f32 %v3814_v1, %v9178_v60  ;;  %5027 = vmatmul.mubr.bf16.gmra.mrb[88].mxu0 %v4307_v38  ;;  %vm3956_vm13 = vcmp.gt.f32.partialorder %v6033_v25, 0.0 }
 0x352   :  { %vm3959_vm14 = vcmp.gt.f32.partialorder %v6034_v37, 0.0  ;;  %v4087_v19 = vmul.f32 0.2, %v6034_v37  ;;  %v4211_v50 = vsel %vm3955_vm12, %v6032_v11, %v4083_v55 }
 0x353   :  { %vm3960_vm15 = vcmp.gt.f32.partialorder %v6035_v8, 0.0  ;;  %v4088_v35 = vmul.f32 0.2, %v6035_v8  ;;  %v4212_v28 = vsel %vm3956_vm13, %v6033_v25, %v4084_v3 }
 0x354   :  { %v4215_v45 = vsel %vm3959_vm14, %v6034_v37, %v4087_v19 }
 0x355   :  { %v3818_v52 = vpop.f32.mrb[96].mxu1  ;;  %v4216_v13 = vsel %vm3960_vm15, %v6035_v8, %v4088_v35  ;;  %v4311_v20 = vpack.c.bf16 %v4215_v45, %v4211_v50 }
 0x356   :  { %v6036_v53 = vadd.f32 %v3818_v52, %v9176_v41  ;;  %v3820_v5 = vpop.f32.mrb[97].mxu1  ;;  %v4312_v33 = vpack.c.bf16 %v4216_v13, %v4212_v28 }
 0x357   :  { %v6037_v7 = vadd.f32 %v3820_v5, %v9178_v60  ;;  %v3822_v44 = vpop.f32.mrb[98].mxu1 }
 0x358   :  { %v4091_v29 = vmul.f32 0.2, %v6036_v53  ;;  %v6038_v47 = vadd.f32 %v3822_v44, %v9176_v41  ;;  %v3824_v46 = vpop.f32.mrb[99].mxu1  ;;  %5036 = vmatprep.mubr.bf16.mxu0 %v4312_v33  ;;  %vm3963_vm0 = vcmp.gt.f32.partialorder %v6036_v53, 0.0 }
 0x359   :  { %v4092_v34 = vmul.f32 0.2, %v6037_v7  ;;  %v6039_v59 = vadd.f32 %v3824_v46, %v9178_v60  ;;  %5037 = vmatmul.mubr.bf16.gmra.mrb[92].mxu0 %v4311_v20  ;;  %vm3964_vm1 = vcmp.gt.f32.partialorder %v6037_v7, 0.0 }
 0x35a   :  { %vm3967_vm2 = vcmp.gt.f32.partialorder %v6038_v47, 0.0  ;;  %v4095_v54 = vmul.f32 0.2, %v6038_v47  ;;  %v4219_v30 = vsel %vm3963_vm0, %v6036_v53, %v4091_v29 }
 0x35b   :  { %vm3968_vm3 = vcmp.gt.f32.partialorder %v6039_v59, 0.0  ;;  %v4096_v26 = vmul.f32 0.2, %v6039_v59  ;;  %v4220_v39 = vsel %vm3964_vm1, %v6037_v7, %v4092_v34 }
 0x35c   :  { %v4223_v61 = vsel %vm3967_vm2, %v6038_v47, %v4095_v54 }
 0x35d   :  { %v3828_v36 = vpop.f32.mrb[100].mxu1  ;;  %v4224_v23 = vsel %vm3968_vm3, %v6039_v59, %v4096_v26  ;;  %v4315_v0 = vpack.c.bf16 %v4223_v61, %v4219_v30 }
 0x35e   :  { %v6040_v63 = vadd.f32 %v3828_v36, %v9176_v41  ;;  %v3830_v57 = vpop.f32.mrb[101].mxu1  ;;  %v4316_v22 = vpack.c.bf16 %v4224_v23, %v4220_v39 }
 0x35f   :  { %v6041_v2 = vadd.f32 %v3830_v57, %v9178_v60  ;;  %v3832_v14 = vpop.f32.mrb[102].mxu1 }
 0x360   :  { %v4099_v4 = vmul.f32 0.2, %v6040_v63  ;;  %v6042_v24 = vadd.f32 %v3832_v14, %v9176_v41  ;;  %v3834_v21 = vpop.f32.mrb[103].mxu1  ;;  %5046 = vmatprep.mubr.bf16.mxu0 %v4316_v22  ;;  %vm3971_vm4 = vcmp.gt.f32.partialorder %v6040_v63, 0.0 }
 0x361   :  { %v4100_v42 = vmul.f32 0.2, %v6041_v2  ;;  %v6043_v32 = vadd.f32 %v3834_v21, %v9178_v60  ;;  %5047 = vmatmul.mubr.bf16.gmra.mrb[96].mxu0 %v4315_v0  ;;  %vm3972_vm5 = vcmp.gt.f32.partialorder %v6041_v2, 0.0 }
 0x362   :  { %vm3975_vm6 = vcmp.gt.f32.partialorder %v6042_v24, 0.0  ;;  %v4103_v62 = vmul.f32 0.2, %v6042_v24  ;;  %v4227_v31 = vsel %vm3971_vm4, %v6040_v63, %v4099_v4 }
 0x363   :  { %vm3976_vm7 = vcmp.gt.f32.partialorder %v6043_v32, 0.0  ;;  %v4104_v15 = vmul.f32 0.2, %v6043_v32  ;;  %v4228_v18 = vsel %vm3972_vm5, %v6041_v2, %v4100_v42 }
 0x364   :  { %v4231_v12 = vsel %vm3975_vm6, %v6042_v24, %v4103_v62 }
 0x365   :  { %v3838_v17 = vpop.f32.mrb[104].mxu1  ;;  %v4232_v6 = vsel %vm3976_vm7, %v6043_v32, %v4104_v15  ;;  %v4319_v27 = vpack.c.bf16 %v4231_v12, %v4227_v31 }
 0x366   :  { %v6044_v10 = vadd.f32 %v3838_v17, %v9176_v41  ;;  %v3840_v51 = vpop.f32.mrb[105].mxu1  ;;  %v4320_v48 = vpack.c.bf16 %v4232_v6, %v4228_v18 }
 0x367   :  { %v6045_v49 = vadd.f32 %v3840_v51, %v9178_v60  ;;  %v3842_v38 = vpop.f32.mrb[106].mxu1 }
 0x368   :  { %v4107_v11 = vmul.f32 0.2, %v6044_v10  ;;  %v6046_v43 = vadd.f32 %v3842_v38, %v9176_v41  ;;  %v3844_v58 = vpop.f32.mrb[107].mxu1  ;;  %5056 = vmatprep.mubr.bf16.mxu0 %v4320_v48  ;;  %vm3979_vm8 = vcmp.gt.f32.partialorder %v6044_v10, 0.0 }
 0x369   :  { %v4108_v25 = vmul.f32 0.2, %v6045_v49  ;;  %v6047_v9 = vadd.f32 %v3844_v58, %v9178_v60  ;;  %5057 = vmatmul.mubr.bf16.gmra.mrb[100].mxu0 %v4319_v27  ;;  %vm3980_vm9 = vcmp.gt.f32.partialorder %v6045_v49, 0.0 }
 0x36a   :  { %vm3983_vm10 = vcmp.gt.f32.partialorder %v6046_v43, 0.0  ;;  %v4111_v55 = vmul.f32 0.2, %v6046_v43  ;;  %v4235_v1 = vsel %vm3979_vm8, %v6044_v10, %v4107_v11 }
 0x36b   :  { %vm3984_vm11 = vcmp.gt.f32.partialorder %v6047_v9, 0.0  ;;  %v4112_v37 = vmul.f32 0.2, %v6047_v9  ;;  %v4236_v19 = vsel %vm3980_vm9, %v6045_v49, %v4108_v25 }
 0x36c   :  { %v4239_v3 = vsel %vm3983_vm10, %v6046_v43, %v4111_v55 }
 0x36d   :  { %v3848_v8 = vpop.f32.mrb[108].mxu1  ;;  %v4240_v35 = vsel %vm3984_vm11, %v6047_v9, %v4112_v37  ;;  %v4323_v50 = vpack.c.bf16 %v4239_v3, %v4235_v1 }
 0x36e   :  { %v6048_v45 = vadd.f32 %v3848_v8, %v9176_v41  ;;  %v3850_v52 = vpop.f32.mrb[109].mxu1  ;;  %v4324_v28 = vpack.c.bf16 %v4240_v35, %v4236_v19 }
 0x36f   :  { %v6049_v13 = vadd.f32 %v3850_v52, %v9178_v60  ;;  %v3852_v20 = vpop.f32.mrb[110].mxu1 }
 0x370   :  { %v4115_v53 = vmul.f32 0.2, %v6048_v45  ;;  %v6050_v5 = vadd.f32 %v3852_v20, %v9176_v41  ;;  %v3854_v33 = vpop.f32.mrb[111].mxu1  ;;  %5066 = vmatprep.mubr.bf16.mxu0 %v4324_v28  ;;  %vm3987_vm12 = vcmp.gt.f32.partialorder %v6048_v45, 0.0 }
 0x371   :  { %v4116_v7 = vmul.f32 0.2, %v6049_v13  ;;  %v6051_v44 = vadd.f32 %v3854_v33, %v9178_v60  ;;  %5067 = vmatmul.mubr.bf16.gmra.mrb[104].mxu0 %v4323_v50  ;;  %vm3988_vm13 = vcmp.gt.f32.partialorder %v6049_v13, 0.0 }
 0x372   :  { %vm3991_vm14 = vcmp.gt.f32.partialorder %v6050_v5, 0.0  ;;  %v4119_v29 = vmul.f32 0.2, %v6050_v5  ;;  %v4243_v46 = vsel %vm3987_vm12, %v6048_v45, %v4115_v53 }
 0x373   :  { %vm3992_vm15 = vcmp.gt.f32.partialorder %v6051_v44, 0.0  ;;  %v4120_v47 = vmul.f32 0.2, %v6051_v44  ;;  %v4244_v54 = vsel %vm3988_vm13, %v6049_v13, %v4116_v7 }
 0x374   :  { %v4247_v34 = vsel %vm3991_vm14, %v6050_v5, %v4119_v29 }
 0x375   :  { %v3858_v59 = vpop.f32.mrb[112].mxu1  ;;  %v4248_v26 = vsel %vm3992_vm15, %v6051_v44, %v4120_v47  ;;  %v4327_v30 = vpack.c.bf16 %v4247_v34, %v4243_v46 }
 0x376   :  { %v6052_v61 = vadd.f32 %v3858_v59, %v9176_v41  ;;  %v3860_v36 = vpop.f32.mrb[113].mxu1  ;;  %v4328_v39 = vpack.c.bf16 %v4248_v26, %v4244_v54 }
 0x377   :  { %v6053_v23 = vadd.f32 %v3860_v36, %v9178_v60  ;;  %v3862_v0 = vpop.f32.mrb[114].mxu1 }
 0x378   :  { %v4123_v63 = vmul.f32 0.2, %v6052_v61  ;;  %v6054_v57 = vadd.f32 %v3862_v0, %v9176_v41  ;;  %v3864_v22 = vpop.f32.mrb[115].mxu1  ;;  %5076 = vmatprep.mubr.bf16.mxu0 %v4328_v39  ;;  %vm3995_vm0 = vcmp.gt.f32.partialorder %v6052_v61, 0.0 }
 0x379   :  { %v4124_v2 = vmul.f32 0.2, %v6053_v23  ;;  %v6055_v14 = vadd.f32 %v3864_v22, %v9178_v60  ;;  %5077 = vmatmul.mubr.bf16.gmra.mrb[108].mxu0 %v4327_v30  ;;  %vm3996_vm1 = vcmp.gt.f32.partialorder %v6053_v23, 0.0 }
 0x37a   :  { %vm3999_vm2 = vcmp.gt.f32.partialorder %v6054_v57, 0.0  ;;  %v4127_v4 = vmul.f32 0.2, %v6054_v57  ;;  %v4251_v21 = vsel %vm3995_vm0, %v6052_v61, %v4123_v63  ;;  %vm5404_vm0 = vcmask 1040384  }
 0x37b   :  { %vm4000_vm3 = vcmp.gt.f32.partialorder %v6055_v14, 0.0  ;;  %v4128_v24 = vmul.f32 0.2, %v6055_v14  ;;  %v4252_v62 = vsel %vm3996_vm1, %v6053_v23, %v4124_v2 }
 0x37c   :  { %v4255_v42 = vsel %vm3999_vm2, %v6054_v57, %v4127_v4 }
 0x37d   :  { %v3868_v32 = vpop.f32.mrb[116].mxu1  ;;  %v4256_v15 = vsel %vm4000_vm3, %v6055_v14, %v4128_v24  ;;  %v4331_v31 = vpack.c.bf16 %v4255_v42, %v4251_v21 }
 0x37e   :  { %v6056_v12 = vadd.f32 %v3868_v32, %v9176_v41  ;;  %v3870_v17 = vpop.f32.mrb[117].mxu1  ;;  %v4332_v18 = vpack.c.bf16 %v4256_v15, %v4252_v62 }
 0x37f   :  { %v6057_v6 = vadd.f32 %v3870_v17, %v9178_v60  ;;  %v3872_v27 = vpop.f32.mrb[118].mxu1 }
 0x380   :  { %v4131_v10 = vmul.f32 0.2, %v6056_v12  ;;  %v6058_v51 = vadd.f32 %v3872_v27, %v9176_v41  ;;  %v3874_v48 = vpop.f32.mrb[119].mxu1  ;;  %5086 = vmatprep.mubr.bf16.mxu0 %v4332_v18  ;;  %vm4003_vm4 = vcmp.gt.f32.partialorder %v6056_v12, 0.0 }
 0x381   :  { %v4132_v49 = vmul.f32 0.2, %v6057_v6  ;;  %v6059_v38 = vadd.f32 %v3874_v48, %v9178_v60  ;;  %5087 = vmatmul.mubr.bf16.gmra.mrb[112].mxu0 %v4331_v31  ;;  %vm4004_vm5 = vcmp.gt.f32.partialorder %v6057_v6, 0.0 }
 0x382   :  { %vm4007_vm6 = vcmp.gt.f32.partialorder %v6058_v51, 0.0  ;;  %v4135_v11 = vmul.f32 0.2, %v6058_v51  ;;  %v4259_v58 = vsel %vm4003_vm4, %v6056_v12, %v4131_v10 }
 0x383   :  { %vm4008_vm7 = vcmp.gt.f32.partialorder %v6059_v38, 0.0  ;;  %v4136_v43 = vmul.f32 0.2, %v6059_v38  ;;  %v4260_v55 = vsel %vm4004_vm5, %v6057_v6, %v4132_v49 }
 0x384   :  { %v4263_v25 = vsel %vm4007_vm6, %v6058_v51, %v4135_v11 }
 0x385   :  { %v3878_v9 = vpop.f32.mrb[120].mxu1  ;;  %v4264_v37 = vsel %vm4008_vm7, %v6059_v38, %v4136_v43  ;;  %v4335_v1 = vpack.c.bf16 %v4263_v25, %v4259_v58 }
 0x386   :  { %v6060_v3 = vadd.f32 %v3878_v9, %v9176_v41  ;;  %v3880_v8 = vpop.f32.mrb[121].mxu1  ;;  %v4336_v19 = vpack.c.bf16 %v4264_v37, %v4260_v55 }
 0x387   :  { %v6061_v35 = vadd.f32 %v3880_v8, %v9178_v60  ;;  %v3882_v50 = vpop.f32.mrb[122].mxu1  ;;  %v6999_v8 = vmov 0.0  }
 0x388   :  { %v4139_v45 = vmul.f32 0.2, %v6060_v3  ;;  %v6062_v52 = vadd.f32 %v3882_v50, %v9176_v41  ;;  %v3884_v28 = vpop.f32.mrb[123].mxu1  ;;  %5096 = vmatprep.mubr.bf16.mxu0 %v4336_v19  ;;  %vm4011_vm8 = vcmp.gt.f32.partialorder %v6060_v3, 0.0  ;;  %26 = vst [vmem:[%s9527_s6] sm:$0xf] %v6999_v8 }
 0x389   :  { %v4140_v13 = vmul.f32 0.2, %v6061_v35  ;;  %v6063_v20 = vadd.f32 %v3884_v28, %v9178_v60  ;;  %5097 = vmatmul.mubr.bf16.gmra.mrb[116].mxu0 %v4335_v1  ;;  %vm4012_vm9 = vcmp.gt.f32.partialorder %v6061_v35, 0.0 }
 0x38a   :  { %vm4015_vm10 = vcmp.gt.f32.partialorder %v6062_v52, 0.0  ;;  %v4143_v53 = vmul.f32 0.2, %v6062_v52  ;;  %v4267_v33 = vsel %vm4011_vm8, %v6060_v3, %v4139_v45 }
 0x38b   :  { %vm4016_vm11 = vcmp.gt.f32.partialorder %v6063_v20, 0.0  ;;  %v4144_v5 = vmul.f32 0.2, %v6063_v20  ;;  %v4268_v29 = vsel %vm4012_vm9, %v6061_v35, %v4140_v13 }
 0x38c   :  { %v4271_v7 = vsel %vm4015_vm10, %v6062_v52, %v4143_v53 }
 0x38d   :  { %v3888_v44 = vpop.f32.mrb[124].mxu1  ;;  %v4272_v47 = vsel %vm4016_vm11, %v6063_v20, %v4144_v5  ;;  %v4339_v46 = vpack.c.bf16 %v4271_v7, %v4267_v33 }
 0x38e   :  { %v6064_v34 = vadd.f32 %v3888_v44, %v9176_v41  ;;  %v3890_v59 = vpop.f32.mrb[125].mxu1  ;;  %v4340_v54 = vpack.c.bf16 %v4272_v47, %v4268_v29 }
 0x38f   :  { %v6065_v26 = vadd.f32 %v3890_v59, %v9178_v60  ;;  %v3892_v30 = vpop.f32.mrb[126].mxu1 }
 0x390   :  { %v4147_v61 = vmul.f32 0.2, %v6064_v34  ;;  %v6066_v36 = vadd.f32 %v3892_v30, %v9176_v41  ;;  %v3894_v39 = vpop.f32.mrb[127].mxu1  ;;  %5106 = vmatprep.mubr.bf16.mxu0 %v4340_v54  ;;  %vm4019_vm12 = vcmp.gt.f32.partialorder %v6064_v34, 0.0  ;;  %v4409_v41 = vld [vmem:[%s9525_s4] sm:$0x3] }
 0x391   :  { %v4148_v23 = vmul.f32 0.2, %v6065_v26  ;;  %v6067_v0 = vadd.f32 %v3894_v39, %v9178_v60  ;;  %5107 = vmatmul.mubr.bf16.gmra.mrb[120].mxu0 %v4339_v46  ;;  %vm4020_vm13 = vcmp.gt.f32.partialorder %v6065_v26, 0.0  ;;  %v9249_v60 = vrot.slane %v4409_v41, %v415_v16 }
 0x392   :  { %vm4023_vm14 = vcmp.gt.f32.partialorder %v6066_v36, 0.0  ;;  %v4151_v63 = vmul.f32 0.2, %v6066_v36  ;;  %v4275_v22 = vsel %vm4019_vm12, %v6064_v34, %v4147_v61  ;;  %v9253_v42 = vrot.slane %v4409_v41, %v419_v40 }
 0x393   :  { %vm4024_vm15 = vcmp.gt.f32.partialorder %v6067_v0, 0.0  ;;  %v4152_v57 = vmul.f32 0.2, %v6067_v0  ;;  %v4276_v14 = vsel %vm4020_vm13, %v6065_v26, %v4148_v23 }
 0x394   :  { %v4279_v2 = vsel %vm4023_vm14, %v6066_v36, %v4151_v63 }
 0x395   :  { %v4280_v4 = vsel %vm4024_vm15, %v6067_v0, %v4152_v57  ;;  %v4343_v24 = vpack.c.bf16 %v4279_v2, %v4275_v22 }
 0x396   :  { %v4344_v21 = vpack.c.bf16 %v4280_v4, %v4276_v14 }
 0x398   :  { %5116 = vmatprep.mubr.bf16.mxu0 %v4344_v21 }
 0x399   :  { %5117 = vmatmul.mubr.bf16.gmra.mrb[124].mxu0 %v4343_v24 }
 0x3f4   :  { %v4968_v32 = vpop.f32.mrb[64].mxu0 }
 0x3f5   :  { %v6068_v62 = vadd.f32 %v4968_v32, %v9249_v60  ;;  %v4970_v15 = vpop.f32.mrb[65].mxu0 }
 0x3f6   :  { %v6069_v31 = vadd.f32 %v4970_v15, %v9253_v42  ;;  %v4972_v12 = vpop.f32.mrb[66].mxu0 }
 0x3f7   :  { %5127 = vst [vmem:[%s9526_s5] sm:$0xff] %v6068_v62  ;;  %v6070_v17 = vadd.f32 %v4972_v12, %v9249_v60  ;;  %v4974_v18 = vpop.f32.mrb[67].mxu0  ;;  %v5265_v40 = vmul.f32 %v6068_v62, %v6068_v62 }
 0x3f8   :  { %5128 = vst [vmem:[%s9526_s5 + $0x8] sm:$0xff] %v6069_v31  ;;  %v6071_v16 = vadd.f32 %v4974_v18, %v9253_v42  ;;  %v5266_v10 = vmul.f32 %v6069_v31, %v6069_v31 }
 0x3f9   :  { %5129 = vst [vmem:[%s9526_s5 + $0x10] sm:$0xff] %v6070_v17  ;;  %v5191_v6 = vadd.f32 %v6070_v17, %v6068_v62  ;;  %v5267_v27 = vmul.f32 %v6070_v17, %v6070_v17 }
 0x3fa   :  { %5130 = vst [vmem:[%s9526_s5 + $0x18] sm:$0xff] %v6071_v16  ;;  %v5228_v51 = vadd.f32 %v6071_v16, %v6069_v31  ;;  %v5268_v48 = vmul.f32 %v6071_v16, %v6071_v16 }
 0x3fb   :  { %v5329_v49 = vadd.f32 %v5267_v27, %v5265_v40 }
 0x3fc   :  { %v5366_v38 = vadd.f32 %v5268_v48, %v5266_v10  ;;  %v4978_v11 = vpop.f32.mrb[68].mxu0 }
 0x3fd   :  { %v6072_v43 = vadd.f32 %v4978_v11, %v9249_v60  ;;  %v4980_v58 = vpop.f32.mrb[69].mxu0 }
 0x3fe   :  { %v6073_v25 = vadd.f32 %v4980_v58, %v9253_v42  ;;  %v4982_v9 = vpop.f32.mrb[70].mxu0 }
 0x3ff   :  { %5131 = vst [vmem:[%s9526_s5 + $0x20] sm:$0xff] %v6072_v43  ;;  %v5192_v55 = vadd.f32 %v6072_v43, %v5191_v6  ;;  %v5269_v37 = vmul.f32 %v6072_v43, %v6072_v43  ;;  %v6074_v1 = vadd.f32 %v4982_v9, %v9249_v60  ;;  %v4984_v3 = vpop.f32.mrb[71].mxu0 }
 0x400   :  { %5132 = vst [vmem:[%s9526_s5 + $0x28] sm:$0xff] %v6073_v25  ;;  %v5229_v19 = vadd.f32 %v6073_v25, %v5228_v51  ;;  %v5270_v35 = vmul.f32 %v6073_v25, %v6073_v25  ;;  %v6075_v50 = vadd.f32 %v4984_v3, %v9253_v42 }
 0x401   :  { %v5330_v45 = vadd.f32 %v5329_v49, %v5269_v37  ;;  %5133 = vst [vmem:[%s9526_s5 + $0x30] sm:$0xff] %v6074_v1  ;;  %v5193_v52 = vadd.f32 %v6074_v1, %v5192_v55  ;;  %v5271_v28 = vmul.f32 %v6074_v1, %v6074_v1 }
 0x402   :  { %v5367_v13 = vadd.f32 %v5366_v38, %v5270_v35  ;;  %5134 = vst [vmem:[%s9526_s5 + $0x38] sm:$0xff] %v6075_v50  ;;  %v5230_v20 = vadd.f32 %v6075_v50, %v5229_v19  ;;  %v5272_v53 = vmul.f32 %v6075_v50, %v6075_v50 }
 0x403   :  { %v5331_v5 = vadd.f32 %v5330_v45, %v5271_v28 }
 0x404   :  { %v5368_v33 = vadd.f32 %v5367_v13, %v5272_v53  ;;  %v4988_v7 = vpop.f32.mrb[72].mxu0 }
 0x405   :  { %v6076_v44 = vadd.f32 %v4988_v7, %v9249_v60  ;;  %v4990_v29 = vpop.f32.mrb[73].mxu0 }
 0x406   :  { %v6077_v47 = vadd.f32 %v4990_v29, %v9253_v42  ;;  %v4992_v46 = vpop.f32.mrb[74].mxu0 }
 0x407   :  { %5135 = vst [vmem:[%s9526_s5 + $0x40] sm:$0xff] %v6076_v44  ;;  %v5194_v34 = vadd.f32 %v6076_v44, %v5193_v52  ;;  %v5273_v59 = vmul.f32 %v6076_v44, %v6076_v44  ;;  %v6078_v54 = vadd.f32 %v4992_v46, %v9249_v60  ;;  %v4994_v26 = vpop.f32.mrb[75].mxu0 }
 0x408   :  { %5136 = vst [vmem:[%s9526_s5 + $0x48] sm:$0xff] %v6077_v47  ;;  %v5231_v30 = vadd.f32 %v6077_v47, %v5230_v20  ;;  %v5274_v61 = vmul.f32 %v6077_v47, %v6077_v47  ;;  %v6079_v36 = vadd.f32 %v4994_v26, %v9253_v42 }
 0x409   :  { %v5332_v39 = vadd.f32 %v5331_v5, %v5273_v59  ;;  %5137 = vst [vmem:[%s9526_s5 + $0x50] sm:$0xff] %v6078_v54  ;;  %v5195_v23 = vadd.f32 %v6078_v54, %v5194_v34  ;;  %v5275_v0 = vmul.f32 %v6078_v54, %v6078_v54 }
 0x40a   :  { %v5369_v63 = vadd.f32 %v5368_v33, %v5274_v61  ;;  %5138 = vst [vmem:[%s9526_s5 + $0x58] sm:$0xff] %v6079_v36  ;;  %v5232_v57 = vadd.f32 %v6079_v36, %v5231_v30  ;;  %v5276_v22 = vmul.f32 %v6079_v36, %v6079_v36 }
 0x40b   :  { %v5333_v2 = vadd.f32 %v5332_v39, %v5275_v0 }
 0x40c   :  { %v5370_v14 = vadd.f32 %v5369_v63, %v5276_v22  ;;  %v4998_v4 = vpop.f32.mrb[76].mxu0 }
 0x40d   :  { %v6080_v24 = vadd.f32 %v4998_v4, %v9249_v60  ;;  %v5000_v21 = vpop.f32.mrb[77].mxu0 }
 0x40e   :  { %v6081_v41 = vadd.f32 %v5000_v21, %v9253_v42  ;;  %v5002_v32 = vpop.f32.mrb[78].mxu0 }
 0x40f   :  { %5139 = vst [vmem:[%s9526_s5 + $0x60] sm:$0xff] %v6080_v24  ;;  %v5196_v62 = vadd.f32 %v6080_v24, %v5195_v23  ;;  %v5277_v15 = vmul.f32 %v6080_v24, %v6080_v24  ;;  %v6082_v31 = vadd.f32 %v5002_v32, %v9249_v60  ;;  %v5004_v12 = vpop.f32.mrb[79].mxu0 }
 0x410   :  { %5140 = vst [vmem:[%s9526_s5 + $0x68] sm:$0xff] %v6081_v41  ;;  %v5233_v17 = vadd.f32 %v6081_v41, %v5232_v57  ;;  %v5278_v18 = vmul.f32 %v6081_v41, %v6081_v41  ;;  %v6083_v16 = vadd.f32 %v5004_v12, %v9253_v42 }
 0x411   :  { %v5334_v40 = vadd.f32 %v5333_v2, %v5277_v15  ;;  %5141 = vst [vmem:[%s9526_s5 + $0x70] sm:$0xff] %v6082_v31  ;;  %v5197_v6 = vadd.f32 %v6082_v31, %v5196_v62  ;;  %v5279_v27 = vmul.f32 %v6082_v31, %v6082_v31 }
 0x412   :  { %v5371_v10 = vadd.f32 %v5370_v14, %v5278_v18  ;;  %5142 = vst [vmem:[%s9526_s5 + $0x78] sm:$0xff] %v6083_v16  ;;  %v5234_v51 = vadd.f32 %v6083_v16, %v5233_v17  ;;  %v5280_v48 = vmul.f32 %v6083_v16, %v6083_v16 }
 0x413   :  { %v5335_v49 = vadd.f32 %v5334_v40, %v5279_v27 }
 0x414   :  { %v5372_v38 = vadd.f32 %v5371_v10, %v5280_v48  ;;  %v5008_v11 = vpop.f32.mrb[80].mxu0 }
 0x415   :  { %v6084_v43 = vadd.f32 %v5008_v11, %v9249_v60  ;;  %v5010_v58 = vpop.f32.mrb[81].mxu0 }
 0x416   :  { %v6085_v25 = vadd.f32 %v5010_v58, %v9253_v42  ;;  %v5012_v9 = vpop.f32.mrb[82].mxu0 }
 0x417   :  { %5143 = vst [vmem:[%s9526_s5 + $0x80] sm:$0xff] %v6084_v43  ;;  %v5198_v55 = vadd.f32 %v6084_v43, %v5197_v6  ;;  %v5281_v37 = vmul.f32 %v6084_v43, %v6084_v43  ;;  %v6086_v1 = vadd.f32 %v5012_v9, %v9249_v60  ;;  %v5014_v3 = vpop.f32.mrb[83].mxu0 }
 0x418   :  { %5144 = vst [vmem:[%s9526_s5 + $0x88] sm:$0xff] %v6085_v25  ;;  %v5235_v8 = vadd.f32 %v6085_v25, %v5234_v51  ;;  %v5282_v19 = vmul.f32 %v6085_v25, %v6085_v25  ;;  %v6087_v35 = vadd.f32 %v5014_v3, %v9253_v42 }
 0x419   :  { %v5336_v50 = vadd.f32 %v5335_v49, %v5281_v37  ;;  %5145 = vst [vmem:[%s9526_s5 + $0x90] sm:$0xff] %v6086_v1  ;;  %v5199_v45 = vadd.f32 %v6086_v1, %v5198_v55  ;;  %v5283_v52 = vmul.f32 %v6086_v1, %v6086_v1 }
 0x41a   :  { %v5373_v28 = vadd.f32 %v5372_v38, %v5282_v19  ;;  %5146 = vst [vmem:[%s9526_s5 + $0x98] sm:$0xff] %v6087_v35  ;;  %v5236_v13 = vadd.f32 %v6087_v35, %v5235_v8  ;;  %v5284_v20 = vmul.f32 %v6087_v35, %v6087_v35 }
 0x41b   :  { %v5337_v53 = vadd.f32 %v5336_v50, %v5283_v52 }
 0x41c   :  { %v5374_v5 = vadd.f32 %v5373_v28, %v5284_v20  ;;  %v5018_v33 = vpop.f32.mrb[84].mxu0 }
 0x41d   :  { %v6088_v7 = vadd.f32 %v5018_v33, %v9249_v60  ;;  %v5020_v44 = vpop.f32.mrb[85].mxu0 }
 0x41e   :  { %v6089_v29 = vadd.f32 %v5020_v44, %v9253_v42  ;;  %v5022_v47 = vpop.f32.mrb[86].mxu0 }
 0x41f   :  { %5147 = vst [vmem:[%s9526_s5 + $0xa0] sm:$0xff] %v6088_v7  ;;  %v5200_v46 = vadd.f32 %v6088_v7, %v5199_v45  ;;  %v5285_v34 = vmul.f32 %v6088_v7, %v6088_v7  ;;  %v6090_v59 = vadd.f32 %v5022_v47, %v9249_v60  ;;  %v5024_v54 = vpop.f32.mrb[87].mxu0 }
 0x420   :  { %5148 = vst [vmem:[%s9526_s5 + $0xa8] sm:$0xff] %v6089_v29  ;;  %v5237_v26 = vadd.f32 %v6089_v29, %v5236_v13  ;;  %v5286_v30 = vmul.f32 %v6089_v29, %v6089_v29  ;;  %v6091_v61 = vadd.f32 %v5024_v54, %v9253_v42 }
 0x421   :  { %v5338_v36 = vadd.f32 %v5337_v53, %v5285_v34  ;;  %5149 = vst [vmem:[%s9526_s5 + $0xb0] sm:$0xff] %v6090_v59  ;;  %v5201_v39 = vadd.f32 %v6090_v59, %v5200_v46  ;;  %v5287_v23 = vmul.f32 %v6090_v59, %v6090_v59 }
 0x422   :  { %v5375_v0 = vadd.f32 %v5374_v5, %v5286_v30  ;;  %5150 = vst [vmem:[%s9526_s5 + $0xb8] sm:$0xff] %v6091_v61  ;;  %v5238_v63 = vadd.f32 %v6091_v61, %v5237_v26  ;;  %v5288_v57 = vmul.f32 %v6091_v61, %v6091_v61 }
 0x423   :  { %v5339_v22 = vadd.f32 %v5338_v36, %v5287_v23 }
 0x424   :  { %v5376_v2 = vadd.f32 %v5375_v0, %v5288_v57  ;;  %v5028_v14 = vpop.f32.mrb[88].mxu0 }
 0x425   :  { %v6092_v4 = vadd.f32 %v5028_v14, %v9249_v60  ;;  %v5030_v24 = vpop.f32.mrb[89].mxu0 }
 0x426   :  { %v6093_v21 = vadd.f32 %v5030_v24, %v9253_v42  ;;  %v5032_v41 = vpop.f32.mrb[90].mxu0 }
 0x427   :  { %5151 = vst [vmem:[%s9526_s5 + $0xc0] sm:$0xff] %v6092_v4  ;;  %v5202_v32 = vadd.f32 %v6092_v4, %v5201_v39  ;;  %v5289_v62 = vmul.f32 %v6092_v4, %v6092_v4  ;;  %v6094_v15 = vadd.f32 %v5032_v41, %v9249_v60  ;;  %v5034_v31 = vpop.f32.mrb[91].mxu0 }
 0x428   :  { %5152 = vst [vmem:[%s9526_s5 + $0xc8] sm:$0xff] %v6093_v21  ;;  %v5239_v12 = vadd.f32 %v6093_v21, %v5238_v63  ;;  %v5290_v17 = vmul.f32 %v6093_v21, %v6093_v21  ;;  %v6095_v18 = vadd.f32 %v5034_v31, %v9253_v42 }
 0x429   :  { %v5340_v16 = vadd.f32 %v5339_v22, %v5289_v62  ;;  %5153 = vst [vmem:[%s9526_s5 + $0xd0] sm:$0xff] %v6094_v15  ;;  %v5203_v40 = vadd.f32 %v6094_v15, %v5202_v32  ;;  %v5291_v6 = vmul.f32 %v6094_v15, %v6094_v15 }
 0x42a   :  { %v5377_v27 = vadd.f32 %v5376_v2, %v5290_v17  ;;  %5154 = vst [vmem:[%s9526_s5 + $0xd8] sm:$0xff] %v6095_v18  ;;  %v5240_v10 = vadd.f32 %v6095_v18, %v5239_v12  ;;  %v5292_v51 = vmul.f32 %v6095_v18, %v6095_v18 }
 0x42b   :  { %v5341_v48 = vadd.f32 %v5340_v16, %v5291_v6 }
 0x42c   :  { %v5378_v49 = vadd.f32 %v5377_v27, %v5292_v51  ;;  %v5038_v38 = vpop.f32.mrb[92].mxu0 }
 0x42d   :  { %v6096_v11 = vadd.f32 %v5038_v38, %v9249_v60  ;;  %v5040_v43 = vpop.f32.mrb[93].mxu0 }
 0x42e   :  { %v6097_v58 = vadd.f32 %v5040_v43, %v9253_v42  ;;  %v5042_v25 = vpop.f32.mrb[94].mxu0 }
 0x42f   :  { %5155 = vst [vmem:[%s9526_s5 + $0xe0] sm:$0xff] %v6096_v11  ;;  %v5204_v9 = vadd.f32 %v6096_v11, %v5203_v40  ;;  %v5293_v55 = vmul.f32 %v6096_v11, %v6096_v11  ;;  %v6098_v37 = vadd.f32 %v5042_v25, %v9249_v60  ;;  %v5044_v1 = vpop.f32.mrb[95].mxu0 }
 0x430   :  { %5156 = vst [vmem:[%s9526_s5 + $0xe8] sm:$0xff] %v6097_v58  ;;  %v5241_v3 = vadd.f32 %v6097_v58, %v5240_v10  ;;  %v5294_v8 = vmul.f32 %v6097_v58, %v6097_v58  ;;  %v6099_v19 = vadd.f32 %v5044_v1, %v9253_v42 }
 0x431   :  { %v5342_v35 = vadd.f32 %v5341_v48, %v5293_v55  ;;  %5157 = vst [vmem:[%s9526_s5 + $0xf0] sm:$0xff] %v6098_v37  ;;  %v5205_v50 = vadd.f32 %v6098_v37, %v5204_v9  ;;  %v5295_v45 = vmul.f32 %v6098_v37, %v6098_v37 }
 0x432   :  { %v5379_v52 = vadd.f32 %v5378_v49, %v5294_v8  ;;  %5158 = vst [vmem:[%s9526_s5 + $0xf8] sm:$0xff] %v6099_v19  ;;  %v5242_v28 = vadd.f32 %v6099_v19, %v5241_v3  ;;  %v5296_v13 = vmul.f32 %v6099_v19, %v6099_v19 }
 0x433   :  { %v5343_v20 = vadd.f32 %v5342_v35, %v5295_v45 }
 0x434   :  { %v5380_v53 = vadd.f32 %v5379_v52, %v5296_v13  ;;  %v5048_v5 = vpop.f32.mrb[96].mxu0 }
 0x435   :  { %v6100_v33 = vadd.f32 %v5048_v5, %v9249_v60  ;;  %v5050_v7 = vpop.f32.mrb[97].mxu0 }
 0x436   :  { %v6101_v44 = vadd.f32 %v5050_v7, %v9253_v42  ;;  %v5052_v29 = vpop.f32.mrb[98].mxu0 }
 0x437   :  { %5159 = vst [vmem:[%s9526_s5 + $0x100] sm:$0xff] %v6100_v33  ;;  %v5206_v47 = vadd.f32 %v6100_v33, %v5205_v50  ;;  %v5297_v46 = vmul.f32 %v6100_v33, %v6100_v33  ;;  %v6102_v34 = vadd.f32 %v5052_v29, %v9249_v60  ;;  %v5054_v59 = vpop.f32.mrb[99].mxu0 }
 0x438   :  { %5160 = vst [vmem:[%s9526_s5 + $0x108] sm:$0xff] %v6101_v44  ;;  %v5243_v54 = vadd.f32 %v6101_v44, %v5242_v28  ;;  %v5298_v26 = vmul.f32 %v6101_v44, %v6101_v44  ;;  %v6103_v30 = vadd.f32 %v5054_v59, %v9253_v42 }
 0x439   :  { %v5344_v61 = vadd.f32 %v5343_v20, %v5297_v46  ;;  %5161 = vst [vmem:[%s9526_s5 + $0x110] sm:$0xff] %v6102_v34  ;;  %v5207_v36 = vadd.f32 %v6102_v34, %v5206_v47  ;;  %v5299_v39 = vmul.f32 %v6102_v34, %v6102_v34 }
 0x43a   :  { %v5381_v23 = vadd.f32 %v5380_v53, %v5298_v26  ;;  %5162 = vst [vmem:[%s9526_s5 + $0x118] sm:$0xff] %v6103_v30  ;;  %v5244_v0 = vadd.f32 %v6103_v30, %v5243_v54  ;;  %v5300_v63 = vmul.f32 %v6103_v30, %v6103_v30 }
 0x43b   :  { %v5345_v57 = vadd.f32 %v5344_v61, %v5299_v39 }
 0x43c   :  { %v5382_v22 = vadd.f32 %v5381_v23, %v5300_v63  ;;  %v5058_v2 = vpop.f32.mrb[100].mxu0 }
 0x43d   :  { %v6104_v14 = vadd.f32 %v5058_v2, %v9249_v60  ;;  %v5060_v4 = vpop.f32.mrb[101].mxu0 }
 0x43e   :  { %v6105_v24 = vadd.f32 %v5060_v4, %v9253_v42  ;;  %v5062_v21 = vpop.f32.mrb[102].mxu0 }
 0x43f   :  { %5163 = vst [vmem:[%s9526_s5 + $0x120] sm:$0xff] %v6104_v14  ;;  %v5208_v41 = vadd.f32 %v6104_v14, %v5207_v36  ;;  %v5301_v32 = vmul.f32 %v6104_v14, %v6104_v14  ;;  %v6106_v62 = vadd.f32 %v5062_v21, %v9249_v60  ;;  %v5064_v15 = vpop.f32.mrb[103].mxu0 }
 0x440   :  { %5164 = vst [vmem:[%s9526_s5 + $0x128] sm:$0xff] %v6105_v24  ;;  %v5245_v31 = vadd.f32 %v6105_v24, %v5244_v0  ;;  %v5302_v12 = vmul.f32 %v6105_v24, %v6105_v24  ;;  %v6107_v17 = vadd.f32 %v5064_v15, %v9253_v42 }
 0x441   :  { %v5346_v18 = vadd.f32 %v5345_v57, %v5301_v32  ;;  %5165 = vst [vmem:[%s9526_s5 + $0x130] sm:$0xff] %v6106_v62  ;;  %v5209_v16 = vadd.f32 %v6106_v62, %v5208_v41  ;;  %v5303_v40 = vmul.f32 %v6106_v62, %v6106_v62 }
 0x442   :  { %v5383_v6 = vadd.f32 %v5382_v22, %v5302_v12  ;;  %5166 = vst [vmem:[%s9526_s5 + $0x138] sm:$0xff] %v6107_v17  ;;  %v5246_v27 = vadd.f32 %v6107_v17, %v5245_v31  ;;  %v5304_v10 = vmul.f32 %v6107_v17, %v6107_v17 }
 0x443   :  { %v5347_v51 = vadd.f32 %v5346_v18, %v5303_v40 }
 0x444   :  { %v5384_v48 = vadd.f32 %v5383_v6, %v5304_v10  ;;  %v5068_v49 = vpop.f32.mrb[104].mxu0 }
 0x445   :  { %v6108_v38 = vadd.f32 %v5068_v49, %v9249_v60  ;;  %v5070_v11 = vpop.f32.mrb[105].mxu0 }
 0x446   :  { %v6109_v43 = vadd.f32 %v5070_v11, %v9253_v42  ;;  %v5072_v58 = vpop.f32.mrb[106].mxu0 }
 0x447   :  { %5167 = vst [vmem:[%s9526_s5 + $0x140] sm:$0xff] %v6108_v38  ;;  %v5210_v25 = vadd.f32 %v6108_v38, %v5209_v16  ;;  %v5305_v9 = vmul.f32 %v6108_v38, %v6108_v38  ;;  %v6110_v55 = vadd.f32 %v5072_v58, %v9249_v60  ;;  %v5074_v37 = vpop.f32.mrb[107].mxu0 }
 0x448   :  { %5168 = vst [vmem:[%s9526_s5 + $0x148] sm:$0xff] %v6109_v43  ;;  %v5247_v1 = vadd.f32 %v6109_v43, %v5246_v27  ;;  %v5306_v3 = vmul.f32 %v6109_v43, %v6109_v43  ;;  %v6111_v8 = vadd.f32 %v5074_v37, %v9253_v42 }
 0x449   :  { %v5348_v19 = vadd.f32 %v5347_v51, %v5305_v9  ;;  %5169 = vst [vmem:[%s9526_s5 + $0x150] sm:$0xff] %v6110_v55  ;;  %v5211_v35 = vadd.f32 %v6110_v55, %v5210_v25  ;;  %v5307_v50 = vmul.f32 %v6110_v55, %v6110_v55 }
 0x44a   :  { %v5385_v45 = vadd.f32 %v5384_v48, %v5306_v3  ;;  %5170 = vst [vmem:[%s9526_s5 + $0x158] sm:$0xff] %v6111_v8  ;;  %v5248_v52 = vadd.f32 %v6111_v8, %v5247_v1  ;;  %v5308_v28 = vmul.f32 %v6111_v8, %v6111_v8 }
 0x44b   :  { %v5349_v13 = vadd.f32 %v5348_v19, %v5307_v50 }
 0x44c   :  { %v5386_v20 = vadd.f32 %v5385_v45, %v5308_v28  ;;  %v5078_v53 = vpop.f32.mrb[108].mxu0 }
 0x44d   :  { %v6112_v5 = vadd.f32 %v5078_v53, %v9249_v60  ;;  %v5080_v33 = vpop.f32.mrb[109].mxu0 }
 0x44e   :  { %v6113_v7 = vadd.f32 %v5080_v33, %v9253_v42  ;;  %v5082_v44 = vpop.f32.mrb[110].mxu0 }
 0x44f   :  { %5171 = vst [vmem:[%s9526_s5 + $0x160] sm:$0xff] %v6112_v5  ;;  %v5212_v29 = vadd.f32 %v6112_v5, %v5211_v35  ;;  %v5309_v47 = vmul.f32 %v6112_v5, %v6112_v5  ;;  %v6114_v46 = vadd.f32 %v5082_v44, %v9249_v60  ;;  %v5084_v34 = vpop.f32.mrb[111].mxu0 }
 0x450   :  { %5172 = vst [vmem:[%s9526_s5 + $0x168] sm:$0xff] %v6113_v7  ;;  %v5249_v59 = vadd.f32 %v6113_v7, %v5248_v52  ;;  %v5310_v54 = vmul.f32 %v6113_v7, %v6113_v7  ;;  %v6115_v26 = vadd.f32 %v5084_v34, %v9253_v42 }
 0x451   :  { %v5350_v30 = vadd.f32 %v5349_v13, %v5309_v47  ;;  %5173 = vst [vmem:[%s9526_s5 + $0x170] sm:$0xff] %v6114_v46  ;;  %v5213_v61 = vadd.f32 %v6114_v46, %v5212_v29  ;;  %v5311_v36 = vmul.f32 %v6114_v46, %v6114_v46 }
 0x452   :  { %v5387_v39 = vadd.f32 %v5386_v20, %v5310_v54  ;;  %5174 = vst [vmem:[%s9526_s5 + $0x178] sm:$0xff] %v6115_v26  ;;  %v5250_v23 = vadd.f32 %v6115_v26, %v5249_v59  ;;  %v5312_v0 = vmul.f32 %v6115_v26, %v6115_v26 }
 0x453   :  { %v5351_v63 = vadd.f32 %v5350_v30, %v5311_v36 }
 0x454   :  { %v5388_v57 = vadd.f32 %v5387_v39, %v5312_v0  ;;  %v5088_v22 = vpop.f32.mrb[112].mxu0 }
 0x455   :  { %v6116_v2 = vadd.f32 %v5088_v22, %v9249_v60  ;;  %v5090_v14 = vpop.f32.mrb[113].mxu0 }
 0x456   :  { %v6117_v4 = vadd.f32 %v5090_v14, %v9253_v42  ;;  %v5092_v24 = vpop.f32.mrb[114].mxu0 }
 0x457   :  { %5175 = vst [vmem:[%s9526_s5 + $0x180] sm:$0xff] %v6116_v2  ;;  %v5214_v21 = vadd.f32 %v6116_v2, %v5213_v61  ;;  %v5313_v41 = vmul.f32 %v6116_v2, %v6116_v2  ;;  %v6118_v32 = vadd.f32 %v5092_v24, %v9249_v60  ;;  %v5094_v62 = vpop.f32.mrb[115].mxu0 }
 0x458   :  { %5176 = vst [vmem:[%s9526_s5 + $0x188] sm:$0xff] %v6117_v4  ;;  %v5251_v15 = vadd.f32 %v6117_v4, %v5250_v23  ;;  %v5314_v31 = vmul.f32 %v6117_v4, %v6117_v4  ;;  %v6119_v12 = vadd.f32 %v5094_v62, %v9253_v42 }
 0x459   :  { %v5352_v17 = vadd.f32 %v5351_v63, %v5313_v41  ;;  %5177 = vst [vmem:[%s9526_s5 + $0x190] sm:$0xff] %v6118_v32  ;;  %v5215_v18 = vadd.f32 %v6118_v32, %v5214_v21  ;;  %v5315_v16 = vmul.f32 %v6118_v32, %v6118_v32 }
 0x45a   :  { %v5389_v40 = vadd.f32 %v5388_v57, %v5314_v31  ;;  %5178 = vst [vmem:[%s9526_s5 + $0x198] sm:$0xff] %v6119_v12  ;;  %v5252_v6 = vadd.f32 %v6119_v12, %v5251_v15  ;;  %v5316_v27 = vmul.f32 %v6119_v12, %v6119_v12 }
 0x45b   :  { %v5353_v10 = vadd.f32 %v5352_v17, %v5315_v16 }
 0x45c   :  { %v5390_v51 = vadd.f32 %v5389_v40, %v5316_v27  ;;  %v5098_v48 = vpop.f32.mrb[116].mxu0 }
 0x45d   :  { %v6120_v49 = vadd.f32 %v5098_v48, %v9249_v60  ;;  %v5100_v38 = vpop.f32.mrb[117].mxu0 }
 0x45e   :  { %v6121_v11 = vadd.f32 %v5100_v38, %v9253_v42  ;;  %v5102_v43 = vpop.f32.mrb[118].mxu0 }
 0x45f   :  { %5179 = vst [vmem:[%s9526_s5 + $0x1a0] sm:$0xff] %v6120_v49  ;;  %v5216_v58 = vadd.f32 %v6120_v49, %v5215_v18  ;;  %v5317_v25 = vmul.f32 %v6120_v49, %v6120_v49  ;;  %v6122_v9 = vadd.f32 %v5102_v43, %v9249_v60  ;;  %v5104_v55 = vpop.f32.mrb[119].mxu0 }
 0x460   :  { %5180 = vst [vmem:[%s9526_s5 + $0x1a8] sm:$0xff] %v6121_v11  ;;  %v5253_v37 = vadd.f32 %v6121_v11, %v5252_v6  ;;  %v5318_v1 = vmul.f32 %v6121_v11, %v6121_v11  ;;  %v6123_v3 = vadd.f32 %v5104_v55, %v9253_v42 }
 0x461   :  { %v5354_v8 = vadd.f32 %v5353_v10, %v5317_v25  ;;  %5181 = vst [vmem:[%s9526_s5 + $0x1b0] sm:$0xff] %v6122_v9  ;;  %v5217_v19 = vadd.f32 %v6122_v9, %v5216_v58  ;;  %v5319_v35 = vmul.f32 %v6122_v9, %v6122_v9 }
 0x462   :  { %v5391_v50 = vadd.f32 %v5390_v51, %v5318_v1  ;;  %5182 = vst [vmem:[%s9526_s5 + $0x1b8] sm:$0xff] %v6123_v3  ;;  %v5254_v45 = vadd.f32 %v6123_v3, %v5253_v37  ;;  %v5320_v52 = vmul.f32 %v6123_v3, %v6123_v3  ;;  %v7000_v37 = vmov 1983009808  }
 0x463   :  { %v5355_v28 = vadd.f32 %v5354_v8, %v5319_v35  ;;  %v5411_v1 = vunpack.c.l.s4 %v7000_v37 }
 0x464   :  { %v5392_v13 = vadd.f32 %v5391_v50, %v5320_v52  ;;  %v5108_v20 = vpop.f32.mrb[120].mxu0 }
 0x465   :  { %v6124_v53 = vadd.f32 %v5108_v20, %v9249_v60  ;;  %v5110_v5 = vpop.f32.mrb[121].mxu0 }
 0x466   :  { %v6125_v33 = vadd.f32 %v5110_v5, %v9253_v42  ;;  %v5112_v7 = vpop.f32.mrb[122].mxu0 }
 0x467   :  { %5183 = vst [vmem:[%s9526_s5 + $0x1c0] sm:$0xff] %v6124_v53  ;;  %v5218_v44 = vadd.f32 %v6124_v53, %v5217_v19  ;;  %v5321_v29 = vmul.f32 %v6124_v53, %v6124_v53  ;;  %v6126_v47 = vadd.f32 %v5112_v7, %v9249_v60  ;;  %v5114_v46 = vpop.f32.mrb[123].mxu0 }
 0x468   :  { %5184 = vst [vmem:[%s9526_s5 + $0x1c8] sm:$0xff] %v6125_v33  ;;  %v5255_v34 = vadd.f32 %v6125_v33, %v5254_v45  ;;  %v5322_v59 = vmul.f32 %v6125_v33, %v6125_v33  ;;  %v6127_v54 = vadd.f32 %v5114_v46, %v9253_v42  ;;  %v5403_v46 = vld [vmem:[%s9527_s6] sm:$0xf] }
 0x469   :  { %v5356_v26 = vadd.f32 %v5355_v28, %v5321_v29  ;;  %5185 = vst [vmem:[%s9526_s5 + $0x1d0] sm:$0xff] %v6126_v47  ;;  %v5219_v30 = vadd.f32 %v6126_v47, %v5218_v44  ;;  %v5323_v61 = vmul.f32 %v6126_v47, %v6126_v47  ;;  %v5412_v28 = vunpack.c.0.s8 %v5411_v1 }
 0x46a   :  { %v5393_v36 = vadd.f32 %v5392_v13, %v5322_v59  ;;  %5186 = vst [vmem:[%s9526_s5 + $0x1d8] sm:$0xff] %v6127_v54  ;;  %v5256_v39 = vadd.f32 %v6127_v54, %v5255_v34  ;;  %v5324_v23 = vmul.f32 %v6127_v54, %v6127_v54 }
 0x46b   :  { %v5357_v0 = vadd.f32 %v5356_v26, %v5323_v61  ;;  %v5415_v44 = vsub.s32 %v5412_v28, %v8879_v56 }
 0x46c   :  { %v5394_v63 = vadd.f32 %v5393_v36, %v5324_v23  ;;  %v5118_v57 = vpop.f32.mrb[124].mxu0 }
 0x46d   :  { %v6128_v22 = vadd.f32 %v5118_v57, %v9249_v60  ;;  %v5120_v2 = vpop.f32.mrb[125].mxu0 }
 0x46e   :  { %v6129_v14 = vadd.f32 %v5120_v2, %v9253_v42  ;;  %v5122_v4 = vpop.f32.mrb[126].mxu0 }
 0x46f   :  { %5187 = vst [vmem:[%s9526_s5 + $0x1e0] sm:$0xff] %v6128_v22  ;;  %v5220_v24 = vadd.f32 %v6128_v22, %v5219_v30  ;;  %v5325_v21 = vmul.f32 %v6128_v22, %v6128_v22  ;;  %v6130_v41 = vadd.f32 %v5122_v4, %v9249_v60  ;;  %v5124_v32 = vpop.f32.mrb[127].mxu0 }
 0x470   :  { %5188 = vst [vmem:[%s9526_s5 + $0x1e8] sm:$0xff] %v6129_v14  ;;  %v5257_v62 = vadd.f32 %v6129_v14, %v5256_v39  ;;  %v5326_v15 = vmul.f32 %v6129_v14, %v6129_v14  ;;  %v6131_v31 = vadd.f32 %v5124_v32, %v9253_v42 }
 0x471   :  { %v5358_v12 = vadd.f32 %v5357_v0, %v5325_v21  ;;  %5189 = vst [vmem:[%s9526_s5 + $0x1f0] sm:$0xff] %v6130_v41  ;;  %v5221_v17 = vadd.f32 %v6130_v41, %v5220_v24  ;;  %v5327_v18 = vmul.f32 %v6130_v41, %v6130_v41 }
 0x472   :  { %v5395_v16 = vadd.f32 %v5394_v63, %v5326_v15  ;;  %5190 = vst [vmem:[%s9526_s5 + $0x1f8] sm:$0xff] %v6131_v31  ;;  %v5258_v60 = vadd.f32 %v6131_v31, %v5257_v62  ;;  %v5328_v40 = vmul.f32 %v6131_v31, %v6131_v31 }
 0x473   :  { %v5222_v6 = vrot.slane %v5221_v17, 4  ;;  %v5359_v27 = vadd.f32 %v5358_v12, %v5327_v18 }
 0x474   :  { %v5259_v10 = vrot.slane %v5258_v60, 4  ;;  %v5396_v51 = vadd.f32 %v5395_v16, %v5328_v40 }
 0x475   :  { %v5223_v48 = vadd.f32 %v5222_v6, %v5221_v17  ;;  %v5360_v42 = vrot.slane %v5359_v27, 4 }
 0x476   :  { %v5260_v49 = vadd.f32 %v5259_v10, %v5258_v60  ;;  %v5397_v38 = vrot.slane %v5396_v51, 4 }
 0x477   :  { %v5224_v11 = vrot.slane %v5223_v48, 2  ;;  %v5361_v43 = vadd.f32 %v5360_v42, %v5359_v27 }
 0x478   :  { %v5261_v58 = vrot.slane %v5260_v49, 2  ;;  %v5398_v25 = vadd.f32 %v5397_v38, %v5396_v51 }
 0x479   :  { %v5225_v9 = vadd.f32 %v5224_v11, %v5223_v48  ;;  %v5362_v55 = vrot.slane %v5361_v43, 2 }
 0x47a   :  { %v5262_v3 = vadd.f32 %v5261_v58, %v5260_v49  ;;  %v5399_v8 = vrot.slane %v5398_v25, 2 }
 0x47b   :  { %v5226_v19 = vrot.slane %v5225_v9, 1  ;;  %v5363_v35 = vadd.f32 %v5362_v55, %v5361_v43 }
 0x47c   :  { %v5263_v50 = vrot.slane %v5262_v3, 1  ;;  %v5400_v45 = vadd.f32 %v5399_v8, %v5398_v25 }
 0x47d   :  { %v5364_v52 = vrot.slane %v5363_v35, 1  ;;  %v5227_v20 = vadd.f32 %v5226_v19, %v5225_v9 }
 0x47e   :  { %v5401_v13 = vrot.slane %v5400_v45, 1  ;;  %v5264_v5 = vadd.f32 %v5263_v50, %v5262_v3 }
 0x47f   :  { %v5365_v53 = vadd.f32 %v5364_v52, %v5363_v35 }
 0x480   :  { %v5402_v33 = vadd.f32 %v5401_v13, %v5400_v45 }
 0x481   :  { %v5405_v7 = vsel %vm5404_vm0, %v5227_v20, %v5365_v53 }
 0x482   :  { %v5406_v29 = vsel %vm5404_vm0, %v5264_v5, %v5402_v33 }
 0x483   :  { %v5409_v47 = vcombine.low %v5405_v7, %v5406_v29 }
 0x485   :  { %v5416_v34 = vrot.slane %v5409_v47, %v5415_v44 }
 0x487   :  { %v5418_v59 = vadd.f32 %v5416_v34, %v5403_v46 }
 0x489   :  { %5419 = vst [vmem:[%s9527_s6] sm:$0xf] %v5418_v59 }

</bundles_post_ra>
